<compile_context>
chip_gen: v7x
topology: tpu7x:2x2x1
jax: 0.10.0
libtpu: 0.0.40
codegen_flags: <defaults>
</compile_context>

<pallas_src>
import numpy as np
import jax
import jax.numpy as jnp
from jax.experimental import pallas as pl


def _round_up(v, m):
    return ((v + m - 1) // m) * m


def _pad2d(a, rows, cols):
    return jnp.pad(a, ((0, rows - a.shape[0]), (0, cols - a.shape[1])))


# ----------------------------------------------------------------------------
# The single fused Pallas kernel
# ----------------------------------------------------------------------------
def _make_lenet_kernel(np_):
    """np_ = batch size zero-padded to a multiple of 8 (sublane alignment)."""

    def kernel(lhs1_ref, w1t_ref, b1r_ref, w2t_ref, b2r_ref,
               x3_ref, fw1_ref, fb1_ref, fw2_ref, fb2_ref, fw3_ref, fb3_ref,
               x2_ref, x5_ref, x6_ref):
        # ================= conv1 (pad=2) + bias + ReLU + 2x2 maxpool ==========
        # lhs1 rows = (dy, s, hp, n): conv-output row y = 4*hp + 2*s + dy,
        #   pooled row py = 2*hp + s, pool row-phase dy.  K = (r, ix) = 160.
        # w1t cols  = (dx, px, c):    conv-output col 2*px + dx, pool col-phase dx.
        raw1 = jnp.dot(lhs1_ref[...], w1t_ref[...],
                       preferred_element_type=jnp.float32)          # (32*np_, 256)
        half = 16 * np_
        m_dy = jnp.maximum(raw1[:half, :], raw1[half:, :])          # pool rows  (16*np_, 256)
        m_dx = jnp.maximum(m_dy[:, :128], m_dy[:, 128:])            # pool cols  (16*np_, 128)
        # relu(max(raw)+b) == maxpool(relu(raw+b)): bias shared, ReLU monotone.
        x1 = jnp.maximum(m_dx + b1r_ref[...], 0.0).astype(jnp.bfloat16)
        # x1 rows = (s, hp, n) -> pooled row 2*hp+s; cols = (px, c) 128-wide.

        # ================= conv2 (valid) + bias + ReLU + 2x2 maxpool ==========
        # Patch matrix built IN-KERNEL from x1 (never leaves VMEM):
        #   rows = (ay, py2, n), K = (ki, px, c) = 5*128 = 640,
        #   conv2 output row oy = 2*py2 + ay uses x1 pooled row 2*py2+ay+ki,
        #   i.e. parity plane s=(ay+ki)%2 at hp = py2 + (ay+ki)//2  -> a
        #   contiguous, 32-row-aligned slice; 5 ki-pieces are 128-lane aligned.
        ay_groups = []
        for ay in (0, 1):
            pieces = []
            for ki in range(5):
                s = (ay + ki) % 2
                off = (ay + ki) // 2
                start = (s * 8 + off) * np_
                pieces.append(x1[start:start + 5 * np_, :])          # (5*np_, 128)
            ay_groups.append(jnp.concatenate(pieces, axis=1))        # (5*np_, 640)
        lhs2 = jnp.concatenate(ay_groups, axis=0)                    # (10*np_, 640)
        raw2 = jnp.dot(lhs2, w2t_ref[...],
                       preferred_element_type=jnp.float32)           # (10*np_, 256)
        h2 = 5 * np_
        m_ay = jnp.maximum(raw2[:h2, :], raw2[h2:, :])               # pool rows (5*np_, 256)
        m_ax = jnp.maximum(m_ay[:, :128], m_ay[:, 128:])             # pool cols (5*np_, 128)
        x2_ref[...] = jnp.maximum(m_ax + b2r_ref[...], 0.0)
        # x2 rows = (py2, n), cols = (px2, co) (px2<5, co<16 valid; rest cropped).

        # ================= FC head (reference flattens the ORIGINAL x) ========
        h = jnp.dot(x3_ref[...], fw1_ref[...], preferred_element_type=jnp.float32)
        h = jnp.maximum(h + fb1_ref[...], 0.0).astype(jnp.bfloat16)
        h = jnp.dot(h, fw2_ref[...], preferred_element_type=jnp.float32)
        x5 = jnp.maximum(h + fb2_ref[...], 0.0)
        x5_ref[...] = x5
        x6_ref[...] = jnp.dot(x5.astype(jnp.bfloat16), fw3_ref[...],
                              preferred_element_type=jnp.float32) + fb3_ref[...]

    return kernel


# ----------------------------------------------------------------------------
# Plain-JAX prep: conv1 row-window LHS + Toeplitz weight matrices (tiny)
# ----------------------------------------------------------------------------
def _build_conv1_lhs(x, n, np_):
    # TODO(synk): this 5-row window (partial im2col, x5 data, ~330 KB bf16) and
    # the Toeplitz weight construction below stay in plain XLA; they could move
    # in-kernel once unaligned (32-lane) in-kernel concatenation is verified.
    xp = jnp.pad(x[:, 0], ((0, np_ - n), (2, 6), (2, 2))).astype(jnp.bfloat16)  # (np_,36,32)
    groups = []
    for dy in (0, 1):
        for s in (0, 1):
            a = 2 * s + dy
            pieces = [xp[:, a + r:a + r + 29:4, :] for r in range(5)]   # each (np_,8,32)
            groups.append(jnp.concatenate(pieces, axis=-1))             # (np_,8,160)
    lhs1 = jnp.stack(groups, axis=0)                                     # (4,np_,8,160)
    return lhs1.transpose(0, 2, 1, 3).reshape(32 * np_, 160)             # rows (dy,s,hp,n)


def _build_conv1_wmat(w1, b1):
    # W1T[(r,ix), (dx,px,c)] = w1[c,0,r, ix-(2*px+dx)] if 0<=kj<=4 and ox<=27 else 0
    w = jnp.pad(w1[:, 0], ((0, 2), (0, 0), (0, 0)))        # (8,5,5)  [c, r, kj]
    r = jnp.arange(5)[:, None, None, None, None]
    ix = jnp.arange(32)[None, :, None, None, None]
    dx = jnp.arange(2)[None, None, :, None, None]
    px = jnp.arange(16)[None, None, None, :, None]
    c = jnp.arange(8)[None, None, None, None, :]
    ox = 2 * px + dx
    kj = ix - ox
    valid = (kj >= 0) & (kj <= 4) & (ox <= 27)
    vals = w[c, r, jnp.clip(kj, 0, 4)]                     # (5,32,2,16,8)
    w1t = jnp.where(valid, vals, 0.0).reshape(5 * 32, 2 * 16 * 8)
    b1r = jnp.concatenate([jnp.tile(jnp.pad(b1, (0, 2)), 14),
                           jnp.zeros((16,), b1.dtype)]).reshape(1, 128)
    return w1t.astype(jnp.bfloat16), b1r.astype(jnp.float32)


def _build_conv2_wmat(w2, b2):
    # W2T[(ki,px,ci), (ax,px2,co)] = w2[co,ci,ki, px-(2*px2+ax)] if valid else 0
    wp = jnp.pad(w2, ((0, 0), (0, 2), (0, 0), (0, 0)))     # (16,8,5,5)
    ki = jnp.arange(5)[:, None, None, None, None, None]
    px = jnp.arange(16)[None, :, None, None, None, None]
    ci = jnp.arange(8)[None, None, :, None, None, None]
    ax = jnp.arange(2)[None, None, None, :, None, None]
    px2 = jnp.arange(8)[None, None, None, None, :, None]
    co = jnp.arange(16)[None, None, None, None, None, :]
    ox2 = 2 * px2 + ax
    kj = px - ox2
    valid = (kj >= 0) & (kj <= 4) & (ox2 <= 9)
    vals = wp[co, ci, ki, jnp.clip(kj, 0, 4)]              # (5,16,8,2,8,16)
    w2t = jnp.where(valid, vals, 0.0).reshape(5 * 16 * 8, 2 * 8 * 16)
    b2r = jnp.tile(b2, 8).reshape(1, 128)
    return w2t.astype(jnp.bfloat16), b2r.astype(jnp.float32)


# ----------------------------------------------------------------------------
# Parameters (deterministic, PyTorch-default-style uniform init)
# ----------------------------------------------------------------------------
def init_params(key):
    def u(k, shape, fan_in):
        bound = 1.0 / float(np.sqrt(fan_in))
        return jax.random.uniform(k, shape, jnp.float32, -bound, bound)

    ks = jax.random.split(key, 10)
    return {
        "conv1_w": u(ks[0], (6, 1, 5, 5), 25), "conv1_b": u(ks[1], (6,), 25),
        "conv2_w": u(ks[2], (16, 6, 5, 5), 150), "conv2_b": u(ks[3], (16,), 150),
        "fc1_w": u(ks[4], (120, 400), 400), "fc1_b": u(ks[5], (120,), 400),
        "fc2_w": u(ks[6], (84, 120), 120), "fc2_b": u(ks[7], (84,), 120),
        "fc3_w": u(ks[8], (10, 84), 84), "fc3_b": u(ks[9], (10,), 84),
    }


# ----------------------------------------------------------------------------
# LeNet forward (single fused Pallas call)
# ----------------------------------------------------------------------------
def lenet_forward(params, x):
    n = x.shape[0]
    assert x.shape[1:] == (1, 28, 28), "reference flatten requires 1x28x28 input"
    assert (n * 28 * 28) % 400 == 0, "batch must be a multiple of 25"
    np_ = _round_up(max(n, 8), 8)                     # batch padded (25 -> 32)

    # Activation prep (a handful of cheap XLA ops, < 0.5 MB total).
    lhs1 = _build_conv1_lhs(x, n, np_)                # (32*np_, 160) bf16
    x3 = x.reshape(-1, 400)                           # faithful to x.view(-1, 400)
    m0 = x3.shape[0]
    mp = _round_up(m0, 8)
    x3p = jnp.pad(x3, ((0, mp - m0), (0, 0))).astype(jnp.bfloat16)

    # Weight prep (tiny; would be precomputed/cached in a real deployment).
    w1t, b1r = _build_conv1_wmat(params["conv1_w"], params["conv1_b"])
    w2t, b2r = _build_conv2_wmat(params["conv2_w"], params["conv2_b"])
    fw1 = _pad2d(params["fc1_w"].T, 400, 128).astype(jnp.bfloat16)
    fb1 = _pad2d(params["fc1_b"].reshape(1, -1), 1, 128)
    fw2 = _pad2d(params["fc2_w"].T, 128, 128).astype(jnp.bfloat16)
    fb2 = _pad2d(params["fc2_b"].reshape(1, -1), 1, 128)
    fw3 = _pad2d(params["fc3_w"].T, 128, 128).astype(jnp.bfloat16)
    fb3 = _pad2d(params["fc3_b"].reshape(1, -1), 1, 128)

    x2k, x5f, x6f = pl.pallas_call(
        _make_lenet_kernel(np_),
        out_shape=(jax.ShapeDtypeStruct((5 * np_, 128), jnp.float32),
                   jax.ShapeDtypeStruct((mp, 128), jnp.float32),
                   jax.ShapeDtypeStruct((mp, 128), jnp.float32)),
    )(lhs1, w1t, b1r, w2t, b2r, x3p, fw1, fb1, fw2, fb2, fw3, fb3)

    x5 = x5f[:m0, :84]
    x6 = x6f[:m0, :10]
    # x2 aux (for the self-check): rows (py2, n), cols (px2, co) -> (N,5,5,16) NHWC.
    x2 = x2k.reshape(5, np_, 8, 16)[:, :n, :5, :].transpose(1, 0, 2, 3)
    return (x6, x5), {"x2": x2}


# ----------------------------------------------------------------------------
# Pure-JAX reference (for the self-check)
# ----------------------------------------------------------------------------
def lenet_reference(params, x):
    dn1 = jax.lax.conv_dimension_numbers(x.shape, params["conv1_w"].shape,
                                         ("NCHW", "OIHW", "NCHW"))
    c1 = jax.lax.conv_general_dilated(x, params["conv1_w"], (1, 1),
                                      ((2, 2), (2, 2)), dimension_numbers=dn1)
    c1 = jax.nn.relu(c1 + params["conv1_b"].reshape(1, -1, 1, 1))
    x1 = jax.lax.reduce_window(c1, -jnp.inf, jax.lax.max,
                               (1, 1, 2, 2), (1, 1, 2, 2), "VALID")
    dn2 = jax.lax.conv_dimension_numbers(x1.shape, params["conv2_w"].shape,
                                         ("NCHW", "OIHW", "NCHW"))
    c2 = jax.lax.conv_general_dilated(x1, params["conv2_w"], (1, 1), "VALID",
                                      dimension_numbers=dn2)
    c2 = jax.nn.relu(c2 + params["conv2_b"].reshape(1, -1, 1, 1))
    x2 = jax.lax.reduce_window(c2, -jnp.inf, jax.lax.max,
                               (1, 1, 2, 2), (1, 1, 2, 2), "VALID")
    x3 = x.reshape(-1, x2.shape[1] * x2.shape[2] * x2.shape[3])
    x4 = jax.nn.relu(x3 @ params["fc1_w"].T + params["fc1_b"])
    x5 = jax.nn.relu(x4 @ params["fc2_w"].T + params["fc2_b"])
    x6 = x5 @ params["fc3_w"].T + params["fc3_b"]
    return (x6, x5), {"x2": x2}


if __name__ == "__main__":
    key = jax.random.PRNGKey(0)
    pkey, xkey = jax.random.split(key)
    params = init_params(pkey)

    # Batch must be a multiple of 25: the module reshapes the ORIGINAL input x
    # to width 400 (25 * 1 * 28 * 28 == 49 * 400).
    x = jax.random.normal(xkey, (25, 1, 28, 28), dtype=jnp.float32)

    fwd = jax.jit(lenet_forward)
    (x6, x5), aux = fwd(params, x)
    jax.block_until_ready((x6, x5, aux))

    (r6, r5), raux = jax.jit(lenet_reference)(params, x)
    assert x6.shape == (49, 10) and x5.shape == (49, 84)
    # Conv + FC paths use bf16 MXU operands (f32 accumulate) -> bf16-level tol.
    np.testing.assert_allclose(np.asarray(aux["x2"]),
                               np.asarray(raux["x2"].transpose(0, 2, 3, 1)),
                               atol=2e-2, rtol=2e-2)
    np.testing.assert_allclose(np.asarray(x5), np.asarray(r5), atol=2e-2, rtol=2e-2)
    np.testing.assert_allclose(np.asarray(x6), np.asarray(r6), atol=2e-2, rtol=2e-2)

    print("KERNEL_OK")
</pallas_src>

<mosaic_0001>
module attributes {stable_mosaic.version = 11 : i64} {
  func.func @kernel(%arg0: memref<1024x160xbf16, #tpu.memory_space<vmem>>, %arg1: memref<160x256xbf16, #tpu.memory_space<vmem>>, %arg2: memref<1x128xf32, #tpu.memory_space<vmem>>, %arg3: memref<640x256xbf16, #tpu.memory_space<vmem>>, %arg4: memref<1x128xf32, #tpu.memory_space<vmem>>, %arg5: memref<56x400xbf16, #tpu.memory_space<vmem>>, %arg6: memref<400x128xbf16, #tpu.memory_space<vmem>>, %arg7: memref<1x128xf32, #tpu.memory_space<vmem>>, %arg8: memref<128x128xbf16, #tpu.memory_space<vmem>>, %arg9: memref<1x128xf32, #tpu.memory_space<vmem>>, %arg10: memref<128x128xbf16, #tpu.memory_space<vmem>>, %arg11: memref<1x128xf32, #tpu.memory_space<vmem>>, %arg12: memref<160x128xf32, #tpu.memory_space<vmem>>, %arg13: memref<56x128xf32, #tpu.memory_space<vmem>>, %arg14: memref<56x128xf32, #tpu.memory_space<vmem>>) attributes {dimension_semantics = [], scalar_prefetch = 0 : i64, scratch_operands = 0 : i64, tpu.core_type = #tpu.core_type<tc>} {
    %c0 = arith.constant 0 : index
    %c0_0 = arith.constant 0 : index
    %0 = vector.load %arg0[%c0, %c0_0] : memref<1024x160xbf16, #tpu.memory_space<vmem>>, vector<1024x160xbf16>
    %c0_1 = arith.constant 0 : index
    %c0_2 = arith.constant 0 : index
    %1 = vector.load %arg1[%c0_1, %c0_2] : memref<160x256xbf16, #tpu.memory_space<vmem>>, vector<160x256xbf16>
    %cst = arith.constant dense<0.000000e+00> : vector<1024x256xf32>
    %2 = tpu.matmul %0, %1, %cst {dimension_numbers = #tpu.dot_dimension_numbers<[1], [0], [0], [1], [0, 0, 1, 1], [], []>} : vector<1024x160xbf16>, vector<160x256xbf16>, vector<1024x256xf32> -> vector<1024x256xf32>
    %3 = vector.extract_strided_slice %2 {offsets = [0, 0], sizes = [512, 256], strides = [1, 1]} : vector<1024x256xf32> to vector<512x256xf32>
    %4 = vector.extract_strided_slice %2 {offsets = [512, 0], sizes = [512, 256], strides = [1, 1]} : vector<1024x256xf32> to vector<512x256xf32>
    %5 = arith.maximumf %3, %4 : vector<512x256xf32>
    %6 = vector.extract_strided_slice %5 {offsets = [0, 0], sizes = [512, 128], strides = [1, 1]} : vector<512x256xf32> to vector<512x128xf32>
    %7 = vector.extract_strided_slice %5 {offsets = [0, 128], sizes = [512, 128], strides = [1, 1]} : vector<512x256xf32> to vector<512x128xf32>
    %8 = arith.maximumf %6, %7 : vector<512x128xf32>
    %c0_3 = arith.constant 0 : index
    %c0_4 = arith.constant 0 : index
    %9 = vector.load %arg2[%c0_3, %c0_4] : memref<1x128xf32, #tpu.memory_space<vmem>>, vector<1x128xf32>
    %10 = vector.broadcast %9 : vector<1x128xf32> to vector<512x128xf32>
    %11 = arith.addf %8, %10 : vector<512x128xf32>
    %cst_5 = arith.constant 0.000000e+00 : f32
    %12 = vector.broadcast %cst_5 : f32 to vector<512x128xf32>
    %13 = arith.maximumf %11, %12 : vector<512x128xf32>
    %14 = arith.truncf %13 : vector<512x128xf32> to vector<512x128xbf16>
    %15 = vector.extract_strided_slice %14 {offsets = [0, 0], sizes = [160, 128], strides = [1, 1]} : vector<512x128xbf16> to vector<160x128xbf16>
    %16 = vector.extract_strided_slice %14 {offsets = [256, 0], sizes = [160, 128], strides = [1, 1]} : vector<512x128xbf16> to vector<160x128xbf16>
    %17 = vector.extract_strided_slice %14 {offsets = [32, 0], sizes = [160, 128], strides = [1, 1]} : vector<512x128xbf16> to vector<160x128xbf16>
    %18 = vector.extract_strided_slice %14 {offsets = [288, 0], sizes = [160, 128], strides = [1, 1]} : vector<512x128xbf16> to vector<160x128xbf16>
    %19 = vector.extract_strided_slice %14 {offsets = [64, 0], sizes = [160, 128], strides = [1, 1]} : vector<512x128xbf16> to vector<160x128xbf16>
    %20 = tpu.concatenate %15, %16, %17, %18, %19 in 1 : vector<160x128xbf16>, vector<160x128xbf16>, vector<160x128xbf16>, vector<160x128xbf16>, vector<160x128xbf16> -> vector<160x640xbf16>
    %21 = vector.extract_strided_slice %14 {offsets = [256, 0], sizes = [160, 128], strides = [1, 1]} : vector<512x128xbf16> to vector<160x128xbf16>
    %22 = vector.extract_strided_slice %14 {offsets = [32, 0], sizes = [160, 128], strides = [1, 1]} : vector<512x128xbf16> to vector<160x128xbf16>
    %23 = vector.extract_strided_slice %14 {offsets = [288, 0], sizes = [160, 128], strides = [1, 1]} : vector<512x128xbf16> to vector<160x128xbf16>
    %24 = vector.extract_strided_slice %14 {offsets = [64, 0], sizes = [160, 128], strides = [1, 1]} : vector<512x128xbf16> to vector<160x128xbf16>
    %25 = vector.extract_strided_slice %14 {offsets = [320, 0], sizes = [160, 128], strides = [1, 1]} : vector<512x128xbf16> to vector<160x128xbf16>
    %26 = tpu.concatenate %21, %22, %23, %24, %25 in 1 : vector<160x128xbf16>, vector<160x128xbf16>, vector<160x128xbf16>, vector<160x128xbf16>, vector<160x128xbf16> -> vector<160x640xbf16>
    %27 = tpu.concatenate %20, %26 in 0 : vector<160x640xbf16>, vector<160x640xbf16> -> vector<320x640xbf16>
    %c0_6 = arith.constant 0 : index
    %c0_7 = arith.constant 0 : index
    %28 = vector.load %arg3[%c0_6, %c0_7] : memref<640x256xbf16, #tpu.memory_space<vmem>>, vector<640x256xbf16>
    %cst_8 = arith.constant dense<0.000000e+00> : vector<320x256xf32>
    %29 = tpu.matmul %27, %28, %cst_8 {dimension_numbers = #tpu.dot_dimension_numbers<[1], [0], [0], [1], [0, 0, 1, 1], [], []>} : vector<320x640xbf16>, vector<640x256xbf16>, vector<320x256xf32> -> vector<320x256xf32>
    %30 = vector.extract_strided_slice %29 {offsets = [0, 0], sizes = [160, 256], strides = [1, 1]} : vector<320x256xf32> to vector<160x256xf32>
    %31 = vector.extract_strided_slice %29 {offsets = [160, 0], sizes = [160, 256], strides = [1, 1]} : vector<320x256xf32> to vector<160x256xf32>
    %32 = arith.maximumf %30, %31 : vector<160x256xf32>
    %33 = vector.extract_strided_slice %32 {offsets = [0, 0], sizes = [160, 128], strides = [1, 1]} : vector<160x256xf32> to vector<160x128xf32>
    %34 = vector.extract_strided_slice %32 {offsets = [0, 128], sizes = [160, 128], strides = [1, 1]} : vector<160x256xf32> to vector<160x128xf32>
    %35 = arith.maximumf %33, %34 : vector<160x128xf32>
    %c0_9 = arith.constant 0 : index
    %c0_10 = arith.constant 0 : index
    %36 = vector.load %arg4[%c0_9, %c0_10] : memref<1x128xf32, #tpu.memory_space<vmem>>, vector<1x128xf32>
    %37 = vector.broadcast %36 : vector<1x128xf32> to vector<160x128xf32>
    %38 = arith.addf %35, %37 : vector<160x128xf32>
    %cst_11 = arith.constant 0.000000e+00 : f32
    %39 = vector.broadcast %cst_11 : f32 to vector<160x128xf32>
    %40 = arith.maximumf %38, %39 : vector<160x128xf32>
    %c0_12 = arith.constant 0 : index
    %c0_13 = arith.constant 0 : index
    %41 = vector.load %arg12[%c0_12, %c0_13] : memref<160x128xf32, #tpu.memory_space<vmem>>, vector<160x128xf32>
    tpu.vector_store %arg12[%c0_12, %c0_13], %40 {strides = array<i32>} : memref<160x128xf32, #tpu.memory_space<vmem>>, vector<160x128xf32>,
    %c0_14 = arith.constant 0 : index
    %c0_15 = arith.constant 0 : index
    %42 = vector.load %arg5[%c0_14, %c0_15] : memref<56x400xbf16, #tpu.memory_space<vmem>>, vector<56x400xbf16>
    %c0_16 = arith.constant 0 : index
    %c0_17 = arith.constant 0 : index
    %43 = vector.load %arg6[%c0_16, %c0_17] : memref<400x128xbf16, #tpu.memory_space<vmem>>, vector<400x128xbf16>
    %cst_18 = arith.constant dense<0.000000e+00> : vector<56x128xf32>
    %44 = tpu.matmul %42, %43, %cst_18 {dimension_numbers = #tpu.dot_dimension_numbers<[1], [0], [0], [1], [0, 0, 1, 1], [], []>} : vector<56x400xbf16>, vector<400x128xbf16>, vector<56x128xf32> -> vector<56x128xf32>
    %c0_19 = arith.constant 0 : index
    %c0_20 = arith.constant 0 : index
    %45 = vector.load %arg7[%c0_19, %c0_20] : memref<1x128xf32, #tpu.memory_space<vmem>>, vector<1x128xf32>
    %46 = vector.broadcast %45 : vector<1x128xf32> to vector<56x128xf32>
    %47 = arith.addf %44, %46 : vector<56x128xf32>
    %cst_21 = arith.constant 0.000000e+00 : f32
    %48 = vector.broadcast %cst_21 : f32 to vector<56x128xf32>
    %49 = arith.maximumf %47, %48 : vector<56x128xf32>
    %50 = arith.truncf %49 : vector<56x128xf32> to vector<56x128xbf16>
    %c0_22 = arith.constant 0 : index
    %c0_23 = arith.constant 0 : index
    %51 = vector.load %arg8[%c0_22, %c0_23] : memref<128x128xbf16, #tpu.memory_space<vmem>>, vector<128x128xbf16>
    %cst_24 = arith.constant dense<0.000000e+00> : vector<56x128xf32>
    %52 = tpu.matmul %50, %51, %cst_24 {dimension_numbers = #tpu.dot_dimension_numbers<[1], [0], [0], [1], [0, 0, 1, 1], [], []>} : vector<56x128xbf16>, vector<128x128xbf16>, vector<56x128xf32> -> vector<56x128xf32>
    %c0_25 = arith.constant 0 : index
    %c0_26 = arith.constant 0 : index
    %53 = vector.load %arg9[%c0_25, %c0_26] : memref<1x128xf32, #tpu.memory_space<vmem>>, vector<1x128xf32>
    %54 = vector.broadcast %53 : vector<1x128xf32> to vector<56x128xf32>
    %55 = arith.addf %52, %54 : vector<56x128xf32>
    %cst_27 = arith.constant 0.000000e+00 : f32
    %56 = vector.broadcast %cst_27 : f32 to vector<56x128xf32>
    %57 = arith.maximumf %55, %56 : vector<56x128xf32>
    %c0_28 = arith.constant 0 : index
    %c0_29 = arith.constant 0 : index
    %58 = vector.load %arg13[%c0_28, %c0_29] : memref<56x128xf32, #tpu.memory_space<vmem>>, vector<56x128xf32>
    tpu.vector_store %arg13[%c0_28, %c0_29], %57 {strides = array<i32>} : memref<56x128xf32, #tpu.memory_space<vmem>>, vector<56x128xf32>,
    %59 = arith.truncf %57 : vector<56x128xf32> to vector<56x128xbf16>
    %c0_30 = arith.constant 0 : index
    %c0_31 = arith.constant 0 : index
    %60 = vector.load %arg10[%c0_30, %c0_31] : memref<128x128xbf16, #tpu.memory_space<vmem>>, vector<128x128xbf16>
    %cst_32 = arith.constant dense<0.000000e+00> : vector<56x128xf32>
    %61 = tpu.matmul %59, %60, %cst_32 {dimension_numbers = #tpu.dot_dimension_numbers<[1], [0], [0], [1], [0, 0, 1, 1], [], []>} : vector<56x128xbf16>, vector<128x128xbf16>, vector<56x128xf32> -> vector<56x128xf32>
    %c0_33 = arith.constant 0 : index
    %c0_34 = arith.constant 0 : index
    %62 = vector.load %arg11[%c0_33, %c0_34] : memref<1x128xf32, #tpu.memory_space<vmem>>, vector<1x128xf32>
    %63 = vector.broadcast %62 : vector<1x128xf32> to vector<56x128xf32>
    %64 = arith.addf %61, %63 : vector<56x128xf32>
    %c0_35 = arith.constant 0 : index
    %c0_36 = arith.constant 0 : index
    %65 = vector.load %arg14[%c0_35, %c0_36] : memref<56x128xf32, #tpu.memory_space<vmem>>, vector<56x128xf32>
    tpu.vector_store %arg14[%c0_35, %c0_36], %64 {strides = array<i32>} : memref<56x128xf32, #tpu.memory_space<vmem>>, vector<56x128xf32>,
    return
  }
}

</mosaic_0001>

<bundles_post_ra>
// kernel: tile.13
= control target key start
LH: loop header
LB: loop body
LE: loop exit
PB: predicated region body
PF: predicated region fallthrough
CT: control target
= control target key end

     0   :  { %s28_s0 = inlined_call_operand.vmem [shape: f32[8], index: 0, kind: input, shape index: {}]   ;;  %s29_s1 = inlined_call_operand.vmem [shape: f32[14,8], index: 1, kind: output, shape index: {}]  }
   0x1   :  { %v4_v0 = vld [vmem:[%s28_s0] ss:$0 sm:$0xff] }
   0x2   :  { %5 = vst [vmem:[%s29_s1] sm:$0xff] %v4_v0  ;;  %8 = vst [vmem:[%s29_s1 + $0x8] sm:$0xff] %v4_v0 }

// kernel: tile.14
= control target key start
LH: loop header
LB: loop body
LE: loop exit
PB: predicated region body
PF: predicated region fallthrough
CT: control target
= control target key end

     0   :  { %s115_s10 = smov 104   ;;  %s116_s11 = smov 88   ;;  %vm3_vm0 = vcmask 64512   ;;  %vm9_vm1 = vcmask 917312   ;;  %vm15_vm2 = vcmask 851712   ;;  %vm21_vm3 = vcmask 786112   ;;  %s183_s0 = inlined_call_operand.vmem [shape: f32[14,8], index: 0, kind: input, shape index: {}]   ;;  %s184_s1 = inlined_call_operand.vmem [shape: f32[112], index: 1, kind: output, shape index: {}]  }
   0x1   :  { %v89_v0 = vld [vmem:[%s183_s0 + $0xd] sm:$0x1]   ;;  %v91_v1 = vld [vmem:[%s183_s0 + $0xb] sm:$0x1]   ;;  %v90_v2 = vld [vmem:[%s183_s0 + $0xc] sm:$0x1]  }
   0x2   :  { %7 = vrot.lane.b32.xlu0 %v89_v0, %s115_s10  ;;  %19 = vrot.lane.b32.xlu1 %v91_v1, %s116_s11  ;;  %v92_v3 = vld [vmem:[%s183_s0 + $0xa] sm:$0x1]   ;;  %s117_s16 = smov 96   ;;  %s118_s17 = smov 80   ;;  %v93_v4 = vld [vmem:[%s183_s0 + $0x9] sm:$0x1]  }
   0x3   :  { %v94_v5 = vld [vmem:[%s183_s0 + $0x8] sm:$0x1]   ;;  %v2_v6 = vld [vmem:[%s183_s0] sm:$0x1]   ;;  %s119_s24 = smov 72   ;;  %s120_s25 = smov 64  }
   0x4   :  { %4 = vst.msk [vmem:[#allocation0] sm:$0x1] %vm3_vm0, %v2_v6   ;;  %v95_v7 = vld [vmem:[%s183_s0 + $0x7] sm:$0x1]   ;;  %v96_v8 = vld [vmem:[%s183_s0 + $0x6] sm:$0x1]  }
   0x5   :  { %s121_s30 = smov 56   ;;  %s122_s2 = smov 48   ;;  %v97_v9 = vld [vmem:[%s183_s0 + $0x5] sm:$0x1]   ;;  %v98_v10 = vld [vmem:[%s183_s0 + $0x4] sm:$0x1]  }
   0x6   :  { %13 = vrot.lane.b32.xlu0 %v90_v2, %s117_s16  ;;  %25 = vrot.lane.b32.xlu1 %v92_v3, %s118_s17  ;;  %s123_s7 = smov 40   ;;  %s124_s8 = smov 32   ;;  %v99_v11 = vld [vmem:[%s183_s0 + $0x3] sm:$0x1]   ;;  %v100_v12 = vld [vmem:[%s183_s0 + $0x2] sm:$0x1]  }
   0x7   :  { %s125_s13 = smov 24   ;;  %s126_s14 = smov 16   ;;  %v101_v13 = vld [vmem:[%s183_s0 + $0x1] sm:$0x1]   ;;  %vm27_vm4 = vcmask 720512   ;;  %vm33_vm5 = vcmask 654912  }
   0x8   :  { %s127_s0 = smov 8   ;;  %vm39_vm6 = vcmask 589312   ;;  %vm45_vm7 = vcmask 523712   ;;  %vm51_vm8 = vcmask 458112   ;;  %vm57_vm9 = vcmask 392512  }
   0x9   :  { %vm63_vm10 = vcmask 326912   ;;  %vm69_vm11 = vcmask 261312   ;;  %vm75_vm12 = vcmask 195712   ;;  %vm81_vm13 = vcmask 130112  }
   0xa   :  { %31 = vrot.lane.b32.xlu0 %v93_v4, %s119_s24  ;;  %37 = vrot.lane.b32.xlu1 %v94_v5, %s120_s25 }
   0xe   :  { %43 = vrot.lane.b32.xlu0 %v95_v7, %s121_s30  ;;  %49 = vrot.lane.b32.xlu1 %v96_v8, %s122_s2 }
  0x12   :  { %55 = vrot.lane.b32.xlu0 %v97_v9, %s123_s7  ;;  %61 = vrot.lane.b32.xlu1 %v98_v10, %s124_s8 }
  0x16   :  { %67 = vrot.lane.b32.xlu0 %v99_v11, %s125_s13  ;;  %73 = vrot.lane.b32.xlu1 %v100_v12, %s126_s14 }
  0x1a   :  { %79 = vrot.lane.b32.xlu0 %v101_v13, %s127_s0 }
  0x74   :  { %v8_v14 = vpop.permute.xlu0 %7   ;;  %v20_v15 = vpop.permute.xlu1 %19  }
  0x75   :  { %10 = vst.msk [vmem:[#allocation0] sm:$0x1] %vm9_vm1, %v8_v14  }
  0x78   :  { %v14_v16 = vpop.permute.xlu0 %13   ;;  %v26_v17 = vpop.permute.xlu1 %25  }
  0x79   :  { %16 = vst.msk [vmem:[#allocation0] sm:$0x1] %vm15_vm2, %v14_v16  }
  0x7a   :  { %22 = vst.msk [vmem:[#allocation0] sm:$0x1] %vm21_vm3, %v20_v15  }
  0x7b   :  { %28 = vst.msk [vmem:[#allocation0] sm:$0x1] %vm27_vm4, %v26_v17  }
  0x7c   :  { %v32_v18 = vpop.permute.xlu0 %31   ;;  %v38_v19 = vpop.permute.xlu1 %37  }
  0x7d   :  { %34 = vst.msk [vmem:[#allocation0] sm:$0x1] %vm33_vm5, %v32_v18  }
  0x7e   :  { %40 = vst.msk [vmem:[#allocation0] sm:$0x1] %vm39_vm6, %v38_v19  }
  0x80   :  { %v44_v20 = vpop.permute.xlu0 %43   ;;  %v50_v21 = vpop.permute.xlu1 %49  }
  0x81   :  { %46 = vst.msk [vmem:[#allocation0] sm:$0x1] %vm45_vm7, %v44_v20  }
  0x82   :  { %52 = vst.msk [vmem:[#allocation0] sm:$0x1] %vm51_vm8, %v50_v21  }
  0x84   :  { %v56_v22 = vpop.permute.xlu0 %55   ;;  %v62_v23 = vpop.permute.xlu1 %61  }
  0x85   :  { %58 = vst.msk [vmem:[#allocation0] sm:$0x1] %vm57_vm9, %v56_v22  }
  0x86   :  { %64 = vst.msk [vmem:[#allocation0] sm:$0x1] %vm63_vm10, %v62_v23  }
  0x88   :  { %v68_v24 = vpop.permute.xlu0 %67   ;;  %v74_v25 = vpop.permute.xlu1 %73  }
  0x89   :  { %70 = vst.msk [vmem:[#allocation0] sm:$0x1] %vm69_vm11, %v68_v24  }
  0x8a   :  { %76 = vst.msk [vmem:[#allocation0] sm:$0x1] %vm75_vm12, %v74_v25  }
  0x8c   :  { %v80_v26 = vpop.permute.xlu0 %79  }
  0x8d   :  { %82 = vst.msk [vmem:[#allocation0] sm:$0x1] %vm81_vm13, %v80_v26  }
  0x94   :  { %v86_v27 = vld [vmem:[#allocation0] sm:$0x1] }
  0x95   :  { %88 = vst [vmem:[%s184_s1] sm:$0x1] %v86_v27 }

// kernel: tile.18
= control target key start
LH: loop header
LB: loop body
LE: loop exit
PB: predicated region body
PF: predicated region fallthrough
CT: control target
= control target key end

     0   :  { %s22_s0 = inlined_call_operand.vmem [shape: f32[16], index: 0, kind: input, shape index: {}]   ;;  %s23_s1 = inlined_call_operand.vmem [shape: f32[8,16], index: 1, kind: output, shape index: {}]  }
   0x1   :  { %v4_v0 = vld [vmem:[%s22_s0] ss:$0 sm:$0xff] }
   0x2   :  { %5 = vst [vmem:[%s23_s1] sm:$0xff] %v4_v0 }

// kernel: tile.19
= control target key start
LH: loop header
LB: loop body
LE: loop exit
PB: predicated region body
PF: predicated region fallthrough
CT: control target
= control target key end

     0   :  { %s67_s10 = smov 112   ;;  %s68_s11 = smov 80   ;;  %vm3_vm0 = vcmask 130048   ;;  %vm9_vm1 = vcmask 1048448   ;;  %vm15_vm2 = vcmask 917248   ;;  %vm21_vm3 = vcmask 786048   ;;  %s111_s0 = inlined_call_operand.vmem [shape: f32[8,16], index: 0, kind: input, shape index: {}]   ;;  %s112_s1 = inlined_call_operand.vmem [shape: f32[1,128], index: 1, kind: output, shape index: {}]  }
   0x1   :  { %v53_v0 = vld [vmem:[%s111_s0 + $0x7] sm:$0x1]   ;;  %v55_v1 = vld [vmem:[%s111_s0 + $0x5] sm:$0x1]   ;;  %v54_v2 = vld [vmem:[%s111_s0 + $0x6] sm:$0x1]  }
   0x2   :  { %7 = vrot.lane.b32.xlu0 %v53_v0, %s67_s10  ;;  %19 = vrot.lane.b32.xlu1 %v55_v1, %s68_s11  ;;  %v56_v3 = vld [vmem:[%s111_s0 + $0x4] sm:$0x1]   ;;  %v2_v4 = vld [vmem:[%s111_s0] sm:$0x1]   ;;  %s69_s18 = smov 96   ;;  %s70_s19 = smov 64  }
   0x3   :  { %4 = vst.msk [vmem:[#allocation0] sm:$0x1] %vm3_vm0, %v2_v4   ;;  %v57_v5 = vld [vmem:[%s111_s0 + $0x3] sm:$0x1]   ;;  %v58_v6 = vld [vmem:[%s111_s0 + $0x2] sm:$0x1]  }
   0x4   :  { %s71_s24 = smov 48   ;;  %s72_s25 = smov 32   ;;  %v59_v7 = vld [vmem:[%s111_s0 + $0x1] sm:$0x1]   ;;  %vm27_vm4 = vcmask 654848   ;;  %vm33_vm5 = vcmask 523648  }
   0x5   :  { %s73_s0 = smov 16   ;;  %vm39_vm6 = vcmask 392448   ;;  %vm45_vm7 = vcmask 261248  }
   0x6   :  { %13 = vrot.lane.b32.xlu0 %v54_v2, %s69_s18  ;;  %25 = vrot.lane.b32.xlu1 %v56_v3, %s70_s19 }
   0xa   :  { %31 = vrot.lane.b32.xlu0 %v57_v5, %s71_s24  ;;  %37 = vrot.lane.b32.xlu1 %v58_v6, %s72_s25 }
   0xe   :  { %43 = vrot.lane.b32.xlu0 %v59_v7, %s73_s0 }
  0x74   :  { %v8_v8 = vpop.permute.xlu0 %7   ;;  %v20_v9 = vpop.permute.xlu1 %19  }
  0x75   :  { %10 = vst.msk [vmem:[#allocation0] sm:$0x1] %vm9_vm1, %v8_v8  }
  0x78   :  { %v14_v10 = vpop.permute.xlu0 %13   ;;  %v26_v11 = vpop.permute.xlu1 %25  }
  0x79   :  { %16 = vst.msk [vmem:[#allocation0] sm:$0x1] %vm15_vm2, %v14_v10  }
  0x7a   :  { %22 = vst.msk [vmem:[#allocation0] sm:$0x1] %vm21_vm3, %v20_v9  }
  0x7b   :  { %28 = vst.msk [vmem:[#allocation0] sm:$0x1] %vm27_vm4, %v26_v11  }
  0x7c   :  { %v32_v12 = vpop.permute.xlu0 %31   ;;  %v38_v13 = vpop.permute.xlu1 %37  }
  0x7d   :  { %34 = vst.msk [vmem:[#allocation0] sm:$0x1] %vm33_vm5, %v32_v12  }
  0x7e   :  { %40 = vst.msk [vmem:[#allocation0] sm:$0x1] %vm39_vm6, %v38_v13  }
  0x80   :  { %v44_v14 = vpop.permute.xlu0 %43  }
  0x81   :  { %46 = vst.msk [vmem:[#allocation0] sm:$0x1] %vm45_vm7, %v44_v14  }
  0x88   :  { %v50_v15 = vld [vmem:[#allocation0] sm:$0x1] }
  0x89   :  { %52 = vst [vmem:[%s112_s1] sm:$0x1] %v50_v15 }

// kernel: lenet_forward.1
= control target key start
LH: loop header
LB: loop body
LE: loop exit
PB: predicated region body
PF: predicated region fallthrough
CT: control target
= control target key end

     0   :  { %vm870_vm0 = vcmask 261120   ;;  %s6996_s0 = inlined_call_operand.vmem [shape: bf16[1024,160], index: 0, kind: input, shape index: {}]   ;;  %s6997_s1 = inlined_call_operand.vmem [shape: bf16[160,256], index: 1, kind: input, shape index: {}]   ;;  %s6998_s2 = inlined_call_operand.vmem [shape: f32[1,128], index: 2, kind: input, shape index: {}]   ;;  %s6999_s3 = inlined_call_operand.vmem [shape: bf16[640,256], index: 3, kind: input, shape index: {}]   ;;  %s7000_s4 = inlined_call_operand.vmem [shape: f32[1,128], index: 4, kind: input, shape index: {}]   ;;  %s7001_s5 = inlined_call_operand.vmem [shape: bf16[56,400], index: 5, kind: input, shape index: {}]   ;;  %s7002_s6 = inlined_call_operand.vmem [shape: bf16[400,128], index: 6, kind: input, shape index: {}]   ;;  %s7003_s7 = inlined_call_operand.vmem [shape: f32[1,128], index: 7, kind: input, shape index: {}]   ;;  %s7004_s8 = inlined_call_operand.vmem [shape: bf16[128,128], index: 8, kind: input, shape index: {}]   ;;  %s7005_s9 = inlined_call_operand.vmem [shape: f32[1,128], index: 9, kind: input, shape index: {}]   ;;  %s7006_s10 = inlined_call_operand.vmem [shape: bf16[128,128], index: 10, kind: input, shape index: {}]   ;;  %s7007_s11 = inlined_call_operand.vmem [shape: f32[1,128], index: 11, kind: input, shape index: {}]   ;;  %s7008_s12 = inlined_call_operand.vmem [shape: f32[160,128], index: 12, kind: output, shape index: {0}]   ;;  %s7009_s13 = inlined_call_operand.hbm [shape: f32[56,128], index: 13, kind: output, shape index: {1}]   ;;  %s7010_s14 = inlined_call_operand.vmem [shape: f32[56,128], index: 14, kind: output, shape index: {2}]  }
   0x1   :  { %v4721_v0 = vld [vmem:[%s6997_s1 + $0x4] ss:$8 sps:$4 sm:$0xff]   ;;  %v4723_v1 = vld [vmem:[%s6997_s1] ss:$8 sps:$4 sm:$0xff]   ;;  %v4724_v2 = vld [vmem:[%s6997_s1 + $0x14] ss:$8 sps:$4 sm:$0xff]  }
   0x2   :  { %1063 = vmatprep.subr.bf16.mxu0 %v4721_v0  ;;  %v4726_v3 = vld [vmem:[%s6997_s1 + $0x10] ss:$8 sps:$4 sm:$0xff]   ;;  %v4727_v4 = vld [vmem:[%s6997_s1 + $0x24] ss:$8 sps:$4 sm:$0xff]   ;;  %v4729_v5 = vld [vmem:[%s6997_s1 + $0x20] ss:$8 sps:$4 sm:$0xff]  }
   0x3   :  { %1064 = vmatpush1.bf16.msra.mxu0 %v4723_v1  ;;  %v4730_v6 = vld [vmem:[%s6997_s1 + $0x34] ss:$8 sps:$4 sm:$0xff]   ;;  %v4732_v7 = vld [vmem:[%s6997_s1 + $0x30] ss:$8 sps:$4 sm:$0xff]   ;;  %v4733_v8 = vld [vmem:[%s6997_s1 + $0x44] ss:$8 sps:$4 sm:$0xff]  }
   0x4   :  { %1065 = vmatprep.subr.bf16.mxu0 %v4724_v2  ;;  %v4753_v9 = vld [vmem:[%s6996_s0 + $0x4] ss:$8 sps:$4 sm:$0xff]   ;;  %v4735_v10 = vld [vmem:[%s6997_s1 + $0x40] ss:$8 sps:$4 sm:$0xff]   ;;  %v4736_v11 = vld [vmem:[%s6997_s1 + $0x54] ss:$8 sps:$4 sm:$0xff]  }
   0x5   :  { %4235 = vmatprep.mubr.msk.bf16.mxu0 %vm870_vm0, %v4753_v9  ;;  %v4738_v12 = vld [vmem:[%s6997_s1 + $0x50] ss:$8 sps:$4 sm:$0xff]   ;;  %v4739_v13 = vld [vmem:[%s6997_s1 + $0x64] ss:$8 sps:$4 sm:$0xff]   ;;  %v4741_v14 = vld [vmem:[%s6997_s1 + $0x60] ss:$8 sps:$4 sm:$0xff]  }
   0x6   :  { %v4742_v15 = vld [vmem:[%s6997_s1 + $0x74] ss:$8 sps:$4 sm:$0xff]   ;;  %v4744_v16 = vld [vmem:[%s6997_s1 + $0x70] ss:$8 sps:$4 sm:$0xff]   ;;  %v4745_v17 = vld [vmem:[%s6997_s1 + $0x84] ss:$8 sps:$4 sm:$0xff]  }
   0x7   :  { %1066 = vmatpush1.bf16.msra.mxu0 %v4726_v3  ;;  %v4747_v18 = vld [vmem:[%s6997_s1 + $0x80] ss:$8 sps:$4 sm:$0xff]   ;;  %v4748_v19 = vld [vmem:[%s6997_s1 + $0x94] ss:$8 sps:$4 sm:$0xff]   ;;  %v4750_v20 = vld [vmem:[%s6997_s1 + $0x90] ss:$8 sps:$4 sm:$0xff]  }
   0x8   :  { %1067 = vmatprep.subr.bf16.mxu0 %v4727_v4  ;;  %v4751_v21 = vld [vmem:[%s6996_s0] ss:$8 sps:$4 sm:$0xff]   ;;  %v4754_v22 = vld [vmem:[%s6996_s0 + $0x14] ss:$8 sps:$4 sm:$0xff]   ;;  %v4756_v23 = vld [vmem:[%s6996_s0 + $0x10] ss:$8 sps:$4 sm:$0xff]  }
   0x9   :  { %v4757_v24 = vld [vmem:[%s6996_s0 + $0x24] ss:$8 sps:$4 sm:$0xff]   ;;  %v4759_v25 = vld [vmem:[%s6996_s0 + $0x20] ss:$8 sps:$4 sm:$0xff]   ;;  %v4760_v26 = vld [vmem:[%s6996_s0 + $0x34] ss:$8 sps:$4 sm:$0xff]  }
   0xa   :  { %v4762_v27 = vld [vmem:[%s6996_s0 + $0x30] ss:$8 sps:$4 sm:$0xff]   ;;  %v4763_v28 = vld [vmem:[%s6996_s0 + $0x44] ss:$8 sps:$4 sm:$0xff]   ;;  %v4765_v29 = vld [vmem:[%s6996_s0 + $0x40] ss:$8 sps:$4 sm:$0xff]  }
   0xb   :  { %1068 = vmatpush1.bf16.msra.mxu0 %v4729_v5  ;;  %v4766_v30 = vld [vmem:[%s6996_s0 + $0x54] ss:$8 sps:$4 sm:$0xff]   ;;  %v4768_v31 = vld [vmem:[%s6996_s0 + $0x50] ss:$8 sps:$4 sm:$0xff]   ;;  %v4769_v32 = vld [vmem:[%s6996_s0 + $0x64] ss:$8 sps:$4 sm:$0xff]  }
   0xc   :  { %1069 = vmatprep.subr.bf16.mxu0 %v4730_v6  ;;  %v4771_v33 = vld [vmem:[%s6996_s0 + $0x60] ss:$8 sps:$4 sm:$0xff]   ;;  %v4772_v34 = vld [vmem:[%s6996_s0 + $0x74] ss:$8 sps:$4 sm:$0xff]   ;;  %v4774_v35 = vld [vmem:[%s6996_s0 + $0x70] ss:$8 sps:$4 sm:$0xff]  }
   0xd   :  { %v4775_v36 = vld [vmem:[%s6996_s0 + $0x84] ss:$8 sps:$4 sm:$0xff]   ;;  %v4777_v37 = vld [vmem:[%s6996_s0 + $0x80] ss:$8 sps:$4 sm:$0xff]   ;;  %v4778_v38 = vld [vmem:[%s6996_s0 + $0x94] ss:$8 sps:$4 sm:$0xff]  }
   0xe   :  { %v4780_v39 = vld [vmem:[%s6996_s0 + $0x90] ss:$8 sps:$4 sm:$0xff]   ;;  %v4781_v40 = vld [vmem:[%s6996_s0 + $0xa4] ss:$8 sps:$4 sm:$0xff]   ;;  %v4783_v41 = vld [vmem:[%s6996_s0 + $0xa0] ss:$8 sps:$4 sm:$0xff]  }
   0xf   :  { %1070 = vmatpush1.bf16.msra.mxu0 %v4732_v7  ;;  %v4784_v42 = vld [vmem:[%s6996_s0 + $0xb4] ss:$8 sps:$4 sm:$0xff]   ;;  %v4786_v43 = vld [vmem:[%s6996_s0 + $0xb0] ss:$8 sps:$4 sm:$0xff]   ;;  %v4787_v44 = vld [vmem:[%s6996_s0 + $0xc4] ss:$8 sps:$4 sm:$0xff]  }
  0x10   :  { %1071 = vmatprep.subr.bf16.mxu0 %v4733_v8 }
  0x13   :  { %1072 = vmatpush1.bf16.msra.mxu0 %v4735_v10 }
  0x14   :  { %1073 = vmatprep.subr.bf16.mxu0 %v4736_v11 }
  0x17   :  { %1074 = vmatpush1.bf16.msra.mxu0 %v4738_v12 }
  0x18   :  { %1075 = vmatprep.subr.bf16.mxu0 %v4739_v13 }
  0x1b   :  { %1076 = vmatpush1.bf16.msra.mxu0 %v4741_v14 }
  0x1c   :  { %1077 = vmatprep.subr.bf16.mxu0 %v4742_v15 }
  0x1f   :  { %1078 = vmatpush1.bf16.msra.mxu0 %v4744_v16 }
  0x20   :  { %1079 = vmatprep.subr.bf16.mxu0 %v4745_v17 }
  0x23   :  { %1080 = vmatpush1.bf16.msra.mxu0 %v4747_v18 }
  0x24   :  { %1081 = vmatprep.subr.bf16.mxu0 %v4748_v19 }
  0x27   :  { %1082 = vmatpush1.bf16.msra.mxu0 %v4750_v20 }
  0x2a   :  { %1096 = vmatmul.mubr.bf16.vlgmr.msra.gmra.mrb[0].mxu0 %v4751_v21 }
  0x2b   :  { %4236 = vmatprep.mubr.msk.bf16.mxu0 %vm870_vm0, %v4754_v22 }
  0x32   :  { %1106 = vmatmul.mubr.bf16.gmra.mrb[4].mxu0 %v4756_v23 }
  0x33   :  { %4237 = vmatprep.mubr.msk.bf16.mxu0 %vm870_vm0, %v4757_v24 }
  0x3a   :  { %1116 = vmatmul.mubr.bf16.gmra.mrb[8].mxu0 %v4759_v25 }
  0x3b   :  { %4238 = vmatprep.mubr.msk.bf16.mxu0 %vm870_vm0, %v4760_v26 }
  0x42   :  { %1126 = vmatmul.mubr.bf16.gmra.mrb[12].mxu0 %v4762_v27 }
  0x43   :  { %4239 = vmatprep.mubr.msk.bf16.mxu0 %vm870_vm0, %v4763_v28 }
  0x4a   :  { %1136 = vmatmul.mubr.bf16.gmra.mrb[16].mxu0 %v4765_v29 }
  0x4b   :  { %4240 = vmatprep.mubr.msk.bf16.mxu0 %vm870_vm0, %v4766_v30 }
  0x52   :  { %1146 = vmatmul.mubr.bf16.gmra.mrb[20].mxu0 %v4768_v31 }
  0x53   :  { %4241 = vmatprep.mubr.msk.bf16.mxu0 %vm870_vm0, %v4769_v32 }
  0x5a   :  { %1156 = vmatmul.mubr.bf16.gmra.mrb[24].mxu0 %v4771_v33 }
  0x5b   :  { %4242 = vmatprep.mubr.msk.bf16.mxu0 %vm870_vm0, %v4772_v34 }
  0x62   :  { %1166 = vmatmul.mubr.bf16.gmra.mrb[28].mxu0 %v4774_v35 }
  0x63   :  { %4243 = vmatprep.mubr.msk.bf16.mxu0 %vm870_vm0, %v4775_v36 }
  0x6a   :  { %1176 = vmatmul.mubr.bf16.gmra.mrb[32].mxu0 %v4777_v37 }
  0x6b   :  { %4244 = vmatprep.mubr.msk.bf16.mxu0 %vm870_vm0, %v4778_v38 }
  0x72   :  { %1186 = vmatmul.mubr.bf16.gmra.mrb[36].mxu0 %v4780_v39 }
  0x73   :  { %4245 = vmatprep.mubr.msk.bf16.mxu0 %vm870_vm0, %v4781_v40 }
  0x7a   :  { %1196 = vmatmul.mubr.bf16.gmra.mrb[40].mxu0 %v4783_v41 }
  0x7b   :  { %4246 = vmatprep.mubr.msk.bf16.mxu0 %vm870_vm0, %v4784_v42 }
  0x82   :  { %1206 = vmatmul.mubr.bf16.gmra.mrb[44].mxu0 %v4786_v43 }
  0x83   :  { %4247 = vmatprep.mubr.msk.bf16.mxu0 %vm870_vm0, %v4787_v44 }
  0x84   :  { %20 = vsyncpa [#allocation3], 0  ;;  %v4789_v45 = vld [vmem:[%s6996_s0 + $0xc0] ss:$8 sps:$4 sm:$0xff]   ;;  %v4790_v46 = vld [vmem:[%s6996_s0 + $0xd4] ss:$8 sps:$4 sm:$0xff]  }
  0x85   :  { %v4792_v47 = vld [vmem:[%s6996_s0 + $0xd0] ss:$8 sps:$4 sm:$0xff]   ;;  %v4793_v48 = vld [vmem:[%s6996_s0 + $0xe4] ss:$8 sps:$4 sm:$0xff]   ;;  %v4795_v49 = vld [vmem:[%s6996_s0 + $0xe0] ss:$8 sps:$4 sm:$0xff]  }
  0x86   :  { %v4796_v50 = vld [vmem:[%s6996_s0 + $0xf4] ss:$8 sps:$4 sm:$0xff]   ;;  %v4798_v51 = vld [vmem:[%s6996_s0 + $0xf0] ss:$8 sps:$4 sm:$0xff]   ;;  %v4799_v52 = vld [vmem:[%s6996_s0 + $0x104] ss:$8 sps:$4 sm:$0xff]  }
  0x87   :  { %v4801_v53 = vld [vmem:[%s6996_s0 + $0x100] ss:$8 sps:$4 sm:$0xff]   ;;  %v4802_v54 = vld [vmem:[%s6996_s0 + $0x114] ss:$8 sps:$4 sm:$0xff]   ;;  %v4804_v55 = vld [vmem:[%s6996_s0 + $0x110] ss:$8 sps:$4 sm:$0xff]  }
  0x88   :  { %v4805_v56 = vld [vmem:[%s6996_s0 + $0x124] ss:$8 sps:$4 sm:$0xff]   ;;  %v4807_v57 = vld [vmem:[%s6996_s0 + $0x120] ss:$8 sps:$4 sm:$0xff]   ;;  %v4808_v58 = vld [vmem:[%s6996_s0 + $0x134] ss:$8 sps:$4 sm:$0xff]  }
  0x89   :  { %v4810_v59 = vld [vmem:[%s6996_s0 + $0x130] ss:$8 sps:$4 sm:$0xff]   ;;  %v4811_v60 = vld [vmem:[%s6996_s0 + $0x144] ss:$8 sps:$4 sm:$0xff]   ;;  %v4813_v61 = vld [vmem:[%s6996_s0 + $0x140] ss:$8 sps:$4 sm:$0xff]  }
  0x8a   :  { %1216 = vmatmul.mubr.bf16.gmra.mrb[48].mxu0 %v4789_v45  ;;  %v4814_v62 = vld [vmem:[%s6996_s0 + $0x154] ss:$8 sps:$4 sm:$0xff]   ;;  %v4816_v63 = vld [vmem:[%s6996_s0 + $0x150] ss:$8 sps:$4 sm:$0xff]   ;;  %v4817_v0 = vld [vmem:[%s6996_s0 + $0x164] ss:$8 sps:$4 sm:$0xff]  }
  0x8b   :  { %4248 = vmatprep.mubr.msk.bf16.mxu0 %vm870_vm0, %v4790_v46  ;;  %v4819_v1 = vld [vmem:[%s6996_s0 + $0x160] ss:$8 sps:$4 sm:$0xff]   ;;  %v4820_v2 = vld [vmem:[%s6996_s0 + $0x174] ss:$8 sps:$4 sm:$0xff]   ;;  %v4822_v3 = vld [vmem:[%s6996_s0 + $0x170] ss:$8 sps:$4 sm:$0xff]  }
  0x8c   :  { %v4823_v4 = vld [vmem:[%s6996_s0 + $0x184] ss:$8 sps:$4 sm:$0xff]   ;;  %v4825_v5 = vld [vmem:[%s6996_s0 + $0x180] ss:$8 sps:$4 sm:$0xff]   ;;  %v4826_v6 = vld [vmem:[%s6996_s0 + $0x194] ss:$8 sps:$4 sm:$0xff]  }
  0x8d   :  { %v4828_v7 = vld [vmem:[%s6996_s0 + $0x190] ss:$8 sps:$4 sm:$0xff]   ;;  %v4829_v8 = vld [vmem:[%s6996_s0 + $0x1a4] ss:$8 sps:$4 sm:$0xff]   ;;  %v4831_v9 = vld [vmem:[%s6996_s0 + $0x1a0] ss:$8 sps:$4 sm:$0xff]  }
  0x8e   :  { %v4832_v10 = vld [vmem:[%s6996_s0 + $0x1b4] ss:$8 sps:$4 sm:$0xff]   ;;  %v4834_v13 = vld [vmem:[%s6996_s0 + $0x1b0] ss:$8 sps:$4 sm:$0xff]   ;;  %v4835_v15 = vld [vmem:[%s6996_s0 + $0x1c4] ss:$8 sps:$4 sm:$0xff]  }
  0x8f   :  { %v4837_v19 = vld [vmem:[%s6996_s0 + $0x1c0] ss:$8 sps:$4 sm:$0xff]   ;;  %v4838_v21 = vld [vmem:[%s6996_s0 + $0x1d4] ss:$8 sps:$4 sm:$0xff]   ;;  %v4840_v25 = vld [vmem:[%s6996_s0 + $0x1d0] ss:$8 sps:$4 sm:$0xff]  }
  0x90   :  { %v4841_v27 = vld [vmem:[%s6996_s0 + $0x1e4] ss:$8 sps:$4 sm:$0xff]   ;;  %v4843_v31 = vld [vmem:[%s6996_s0 + $0x1e0] ss:$8 sps:$4 sm:$0xff]   ;;  %v4844_v33 = vld [vmem:[%s6996_s0 + $0x1f4] ss:$8 sps:$4 sm:$0xff]  }
  0x91   :  { %v4846_v37 = vld [vmem:[%s6996_s0 + $0x1f0] ss:$8 sps:$4 sm:$0xff]   ;;  %v4847_v39 = vld [vmem:[%s6996_s0 + $0x204] ss:$8 sps:$4 sm:$0xff]   ;;  %v4849_v43 = vld [vmem:[%s6996_s0 + $0x200] ss:$8 sps:$4 sm:$0xff]  }
  0x92   :  { %1226 = vmatmul.mubr.bf16.gmra.mrb[52].mxu0 %v4792_v47  ;;  %v4850_v45 = vld [vmem:[%s6996_s0 + $0x214] ss:$8 sps:$4 sm:$0xff]   ;;  %vm3616_vm1 = vcmask 130048  }
  0x93   :  { %4249 = vmatprep.mubr.msk.bf16.mxu0 %vm870_vm0, %v4793_v48 }
  0x9a   :  { %1236 = vmatmul.mubr.bf16.gmra.mrb[56].mxu0 %v4795_v49  ;;  %v4852_v49 = vld [vmem:[%s6996_s0 + $0x210] ss:$8 sps:$4 sm:$0xff]  }
  0x9b   :  { %4250 = vmatprep.mubr.msk.bf16.mxu0 %vm870_vm0, %v4796_v50 }
  0xa2   :  { %1242 = vmatmul.mubr.bf16.gmra.mrb[60].mxu0 %v4798_v51  ;;  %v4853_v51 = vld [vmem:[%s6996_s0 + $0x224] ss:$8 sps:$4 sm:$0xff]  }
  0xa3   :  { %4251 = vmatprep.mubr.msk.bf16.mxu0 %vm870_vm0, %v4799_v52 }
  0xaa   :  { %1248 = vmatmul.mubr.bf16.gmra.mrb[64].mxu0 %v4801_v53 }
  0xab   :  { %4252 = vmatprep.mubr.msk.bf16.mxu0 %vm870_vm0, %v4802_v54 }
  0xb2   :  { %1258 = vmatmul.mubr.bf16.gmra.mrb[68].mxu0 %v4804_v55  ;;  %v4855_v55 = vld [vmem:[%s6996_s0 + $0x220] ss:$8 sps:$4 sm:$0xff]  }
  0xb3   :  { %4253 = vmatprep.mubr.msk.bf16.mxu0 %vm870_vm0, %v4805_v56 }
  0xba   :  { %1268 = vmatmul.mubr.bf16.gmra.mrb[72].mxu0 %v4807_v57  ;;  %v4856_v57 = vld [vmem:[%s6996_s0 + $0x234] ss:$8 sps:$4 sm:$0xff]  }
  0xbb   :  { %4254 = vmatprep.mubr.msk.bf16.mxu0 %vm870_vm0, %v4808_v58 }
  0xc2   :  { %1278 = vmatmul.mubr.bf16.gmra.mrb[76].mxu0 %v4810_v59 }
  0xc3   :  { %4255 = vmatprep.mubr.msk.bf16.mxu0 %vm870_vm0, %v4811_v60 }
  0xca   :  { %1288 = vmatmul.mubr.bf16.gmra.mrb[80].mxu0 %v4813_v61  ;;  %v4858_v61 = vld [vmem:[%s6996_s0 + $0x230] ss:$8 sps:$4 sm:$0xff]  }
  0xcb   :  { %4256 = vmatprep.mubr.msk.bf16.mxu0 %vm870_vm0, %v4814_v62 }
  0xd2   :  { %1298 = vmatmul.mubr.bf16.gmra.mrb[84].mxu0 %v4816_v63  ;;  %v4859_v63 = vld [vmem:[%s6996_s0 + $0x244] ss:$8 sps:$4 sm:$0xff]  }
  0xd3   :  { %4257 = vmatprep.mubr.msk.bf16.mxu0 %vm870_vm0, %v4817_v0 }
  0xda   :  { %1308 = vmatmul.mubr.bf16.gmra.mrb[88].mxu0 %v4819_v1 }
  0xdb   :  { %4258 = vmatprep.mubr.msk.bf16.mxu0 %vm870_vm0, %v4820_v2 }
  0xe2   :  { %1318 = vmatmul.mubr.bf16.gmra.mrb[92].mxu0 %v4822_v3  ;;  %v4861_v3 = vld [vmem:[%s6996_s0 + $0x240] ss:$8 sps:$4 sm:$0xff]  }
  0xe3   :  { %4259 = vmatprep.mubr.msk.bf16.mxu0 %vm870_vm0, %v4823_v4 }
  0xea   :  { %1328 = vmatmul.mubr.bf16.gmra.mrb[96].mxu0 %v4825_v5  ;;  %v4862_v5 = vld [vmem:[%s6996_s0 + $0x254] ss:$8 sps:$4 sm:$0xff]  }
  0xeb   :  { %4260 = vmatprep.mubr.msk.bf16.mxu0 %vm870_vm0, %v4826_v6 }
  0xf2   :  { %1338 = vmatmul.mubr.bf16.gmra.mrb[100].mxu0 %v4828_v7 }
  0xf3   :  { %4261 = vmatprep.mubr.msk.bf16.mxu0 %vm870_vm0, %v4829_v8 }
  0xfa   :  { %1348 = vmatmul.mubr.bf16.gmra.mrb[104].mxu0 %v4831_v9  ;;  %v4864_v9 = vld [vmem:[%s6996_s0 + $0x250] ss:$8 sps:$4 sm:$0xff]  }
  0xfb   :  { %4262 = vmatprep.mubr.msk.bf16.mxu0 %vm870_vm0, %v4832_v10 }
  0xfd   :  { %v5483_v11 = vpop.f32.mrb[0].mxu0 }
  0xfe   :  { %v5485_v12 = vpop.f32.mrb[1].mxu0 }
  0xff   :  { %v5490_v14 = vpop.f32.mrb[2].mxu0 }
 0x100   :  { %v5495_v16 = vpop.f32.mrb[3].mxu0 }
 0x102   :  { %1358 = vmatmul.mubr.bf16.gmra.mrb[108].mxu0 %v4834_v13  ;;  %v4865_v13 = vld [vmem:[%s6996_s0 + $0x264] ss:$8 sps:$4 sm:$0xff]  }
 0x103   :  { %4263 = vmatprep.mubr.msk.bf16.mxu0 %vm870_vm0, %v4835_v15 }
 0x105   :  { %v5498_v17 = vpop.f32.mrb[4].mxu0 }
 0x106   :  { %v5500_v18 = vpop.f32.mrb[5].mxu0 }
 0x107   :  { %v5505_v20 = vpop.f32.mrb[6].mxu0 }
 0x108   :  { %v5510_v22 = vpop.f32.mrb[7].mxu0 }
 0x10a   :  { %1368 = vmatmul.mubr.bf16.gmra.mrb[112].mxu0 %v4837_v19 }
 0x10b   :  { %4264 = vmatprep.mubr.msk.bf16.mxu0 %vm870_vm0, %v4838_v21 }
 0x10d   :  { %v5513_v23 = vpop.f32.mrb[8].mxu0 }
 0x10e   :  { %v5515_v24 = vpop.f32.mrb[9].mxu0 }
 0x10f   :  { %v5520_v26 = vpop.f32.mrb[10].mxu0 }
 0x110   :  { %v5525_v28 = vpop.f32.mrb[11].mxu0 }
 0x112   :  { %1378 = vmatmul.mubr.bf16.gmra.mrb[116].mxu0 %v4840_v25  ;;  %v4867_v25 = vld [vmem:[%s6996_s0 + $0x260] ss:$8 sps:$4 sm:$0xff]  }
 0x113   :  { %4265 = vmatprep.mubr.msk.bf16.mxu0 %vm870_vm0, %v4841_v27 }
 0x115   :  { %v5528_v29 = vpop.f32.mrb[12].mxu0 }
 0x116   :  { %v5530_v30 = vpop.f32.mrb[13].mxu0 }
 0x117   :  { %v5535_v32 = vpop.f32.mrb[14].mxu0 }
 0x118   :  { %v5540_v34 = vpop.f32.mrb[15].mxu0 }
 0x11a   :  { %1388 = vmatmul.mubr.bf16.gmra.mrb[120].mxu0 %v4843_v31  ;;  %v4868_v31 = vld [vmem:[%s6996_s0 + $0x274] ss:$8 sps:$4 sm:$0xff]  }
 0x11b   :  { %4266 = vmatprep.mubr.msk.bf16.mxu0 %vm870_vm0, %v4844_v33 }
 0x11d   :  { %v5543_v35 = vpop.f32.mrb[16].mxu0 }
 0x11e   :  { %v5545_v36 = vpop.f32.mrb[17].mxu0 }
 0x11f   :  { %v5550_v38 = vpop.f32.mrb[18].mxu0 }
 0x120   :  { %v5555_v40 = vpop.f32.mrb[19].mxu0 }
 0x122   :  { %1394 = vmatmul.mubr.bf16.gmra.mrb[124].mxu0 %v4846_v37 }
 0x123   :  { %4267 = vmatprep.mubr.msk.bf16.mxu0 %vm870_vm0, %v4847_v39 }
 0x125   :  { %v5558_v41 = vpop.f32.mrb[20].mxu0 }
 0x126   :  { %v5560_v42 = vpop.f32.mrb[21].mxu0 }
 0x127   :  { %v5565_v44 = vpop.f32.mrb[22].mxu0 }
 0x128   :  { %v5570_v46 = vpop.f32.mrb[23].mxu0 }
 0x12a   :  { %1400 = vmatmul.mubr.bf16.gmra.mrb[128].mxu0 %v4849_v43  ;;  %v4870_v43 = vld [vmem:[%s6996_s0 + $0x270] ss:$8 sps:$4 sm:$0xff]  }
 0x12b   :  { %4268 = vmatprep.mubr.msk.bf16.mxu0 %vm870_vm0, %v4850_v45 }
 0x12d   :  { %v5573_v47 = vpop.f32.mrb[24].mxu0 }
 0x12e   :  { %v5575_v48 = vpop.f32.mrb[25].mxu0 }
 0x12f   :  { %v5580_v50 = vpop.f32.mrb[26].mxu0 }
 0x130   :  { %v5585_v52 = vpop.f32.mrb[27].mxu0 }
 0x132   :  { %1410 = vmatmul.mubr.bf16.gmra.mrb[132].mxu0 %v4852_v49  ;;  %v4871_v49 = vld [vmem:[%s6996_s0 + $0x284] ss:$8 sps:$4 sm:$0xff]  }
 0x133   :  { %4269 = vmatprep.mubr.msk.bf16.mxu0 %vm870_vm0, %v4853_v51 }
 0x135   :  { %v5588_v53 = vpop.f32.mrb[28].mxu0 }
 0x136   :  { %v5590_v54 = vpop.f32.mrb[29].mxu0 }
 0x137   :  { %v5595_v56 = vpop.f32.mrb[30].mxu0 }
 0x138   :  { %v5600_v58 = vpop.f32.mrb[31].mxu0 }
 0x13a   :  { %1420 = vmatmul.mubr.bf16.gmra.mrb[136].mxu0 %v4855_v55 }
 0x13b   :  { %4270 = vmatprep.mubr.msk.bf16.mxu0 %vm870_vm0, %v4856_v57 }
 0x13d   :  { %v5603_v59 = vpop.f32.mrb[32].mxu0 }
 0x13e   :  { %v5605_v60 = vpop.f32.mrb[33].mxu0 }
 0x13f   :  { %v5610_v62 = vpop.f32.mrb[34].mxu0 }
 0x140   :  { %v5615_v0 = vpop.f32.mrb[35].mxu0 }
 0x142   :  { %1430 = vmatmul.mubr.bf16.gmra.mrb[140].mxu0 %v4858_v61  ;;  %v4873_v61 = vld [vmem:[%s6996_s0 + $0x280] ss:$8 sps:$4 sm:$0xff]  }
 0x143   :  { %4271 = vmatprep.mubr.msk.bf16.mxu0 %vm870_vm0, %v4859_v63 }
 0x145   :  { %v5618_v1 = vpop.f32.mrb[36].mxu0 }
 0x146   :  { %v5620_v2 = vpop.f32.mrb[37].mxu0 }
 0x147   :  { %v5625_v4 = vpop.f32.mrb[38].mxu0 }
 0x148   :  { %v5630_v6 = vpop.f32.mrb[39].mxu0 }
 0x14a   :  { %1440 = vmatmul.mubr.bf16.gmra.mrb[144].mxu0 %v4861_v3  ;;  %v4874_v3 = vld [vmem:[%s6996_s0 + $0x294] ss:$8 sps:$4 sm:$0xff]  }
 0x14b   :  { %4272 = vmatprep.mubr.msk.bf16.mxu0 %vm870_vm0, %v4862_v5 }
 0x14d   :  { %v5633_v7 = vpop.f32.mrb[40].mxu0 }
 0x14e   :  { %v5635_v8 = vpop.f32.mrb[41].mxu0 }
 0x14f   :  { %v5640_v10 = vpop.f32.mrb[42].mxu0 }
 0x150   :  { %v5645_v15 = vpop.f32.mrb[43].mxu0 }
 0x152   :  { %1450 = vmatmul.mubr.bf16.gmra.mrb[148].mxu0 %v4864_v9 }
 0x153   :  { %4273 = vmatprep.mubr.msk.bf16.mxu0 %vm870_vm0, %v4865_v13 }
 0x155   :  { %v5648_v19 = vpop.f32.mrb[44].mxu0 }
 0x156   :  { %v5650_v21 = vpop.f32.mrb[45].mxu0 }
 0x157   :  { %v5655_v27 = vpop.f32.mrb[46].mxu0 }
 0x158   :  { %v5660_v33 = vpop.f32.mrb[47].mxu0 }
 0x15a   :  { %1460 = vmatmul.mubr.bf16.gmra.mrb[152].mxu0 %v4867_v25  ;;  %v4876_v25 = vld [vmem:[%s6996_s0 + $0x290] ss:$8 sps:$4 sm:$0xff]  }
 0x15b   :  { %4274 = vmatprep.mubr.msk.bf16.mxu0 %vm870_vm0, %v4868_v31 }
 0x15d   :  { %v5663_v37 = vpop.f32.mrb[48].mxu0 }
 0x15e   :  { %v5665_v39 = vpop.f32.mrb[49].mxu0 }
 0x15f   :  { %v5670_v45 = vpop.f32.mrb[50].mxu0 }
 0x160   :  { %7013 = vst [vmem:[#allocation5_spill] sm:$0xff] %v5670_v45  ;;  %v5675_v51 = vpop.f32.mrb[51].mxu0 }
 0x161   :  { %7014 = vst [vmem:[#allocation6_spill] sm:$0xff] %v5675_v51 }
 0x162   :  { %1470 = vmatmul.mubr.bf16.gmra.mrb[156].mxu0 %v4870_v43  ;;  %v4877_v43 = vld [vmem:[%s6996_s0 + $0x2a4] ss:$8 sps:$4 sm:$0xff]  }
 0x163   :  { %4275 = vmatprep.mubr.msk.bf16.mxu0 %vm870_vm0, %v4871_v49 }
 0x165   :  { %v5678_v55 = vpop.f32.mrb[52].mxu0 }
 0x166   :  { %7015 = vst [vmem:[#allocation7_spill] sm:$0xff] %v5678_v55  ;;  %v5680_v57 = vpop.f32.mrb[53].mxu0 }
 0x167   :  { %7016 = vst [vmem:[#allocation8_spill] sm:$0xff] %v5680_v57  ;;  %v5685_v63 = vpop.f32.mrb[54].mxu0 }
 0x168   :  { %7017 = vst [vmem:[#allocation9_spill] sm:$0xff] %v5685_v63  ;;  %v5690_v5 = vpop.f32.mrb[55].mxu0 }
 0x169   :  { %7018 = vst [vmem:[#allocation10_spill] sm:$0xff] %v5690_v5 }
 0x16a   :  { %1480 = vmatmul.mubr.bf16.gmra.mrb[160].mxu0 %v4873_v61  ;;  %v4879_v61 = vld [vmem:[%s6996_s0 + $0x2a0] ss:$8 sps:$4 sm:$0xff]  }
 0x16b   :  { %4276 = vmatprep.mubr.msk.bf16.mxu0 %vm870_vm0, %v4874_v3 }
 0x16d   :  { %v1237_v9 = vpop.f32.mrb[56].mxu0 }
 0x16e   :  { %v1238_v13 = vpop.f32.mrb[57].mxu0  ;;  %v4880_v9 = vld [vmem:[%s6996_s0 + $0x2b4] ss:$8 sps:$4 sm:$0xff]  }
 0x16f   :  { %v1239_v31 = vpop.f32.mrb[58].mxu0 }
 0x170   :  { %v1240_v49 = vpop.f32.mrb[59].mxu0 }
 0x172   :  { %1490 = vmatmul.mubr.bf16.gmra.mrb[164].mxu0 %v4876_v25 }
 0x173   :  { %4277 = vmatprep.mubr.msk.bf16.mxu0 %vm870_vm0, %v4877_v43  ;;  %v4883_v43 = vld [vmem:[%s6996_s0 + $0x2c4] ss:$8 sps:$4 sm:$0xff]  }
 0x175   :  { %v1243_v63 = vpop.f32.mrb[60].mxu0 }
 0x176   :  { %v1244_v5 = vpop.f32.mrb[61].mxu0  ;;  %v4882_v63 = vld [vmem:[%s6996_s0 + $0x2b0] ss:$8 sps:$4 sm:$0xff]  }
 0x177   :  { %v1245_v3 = vpop.f32.mrb[62].mxu0 }
 0x178   :  { %v1246_v13 = vpop.f32.mrb[63].mxu0 }
 0x17a   :  { %1500 = vmatmul.mubr.bf16.gmra.mrb[168].mxu0 %v4879_v61 }
 0x17b   :  { %4278 = vmatprep.mubr.msk.bf16.mxu0 %vm870_vm0, %v4880_v9  ;;  %v4885_v9 = vld [vmem:[%s6996_s0 + $0x2c0] ss:$8 sps:$4 sm:$0xff]  }
 0x17d   :  { %v5707_v31 = vpop.f32.mrb[64].mxu0 }
 0x17e   :  { %7019 = vst [vmem:[#allocation11_spill] sm:$0xff] %v5707_v31  ;;  %v5709_v25 = vpop.f32.mrb[65].mxu0  ;;  %v4971_v31 = vld [vmem:[%s6999_s3 + $0xb4] ss:$8 sps:$4 sm:$0xff]  }
 0x17f   :  { %7020 = vst [vmem:[#allocation12_spill] sm:$0xff] %v5709_v25  ;;  %v5714_v5 = vpop.f32.mrb[66].mxu0 }
 0x180   :  { %7021 = vst [vmem:[#allocation13_spill] sm:$0xff] %v5714_v5  ;;  %v5719_v49 = vpop.f32.mrb[67].mxu0  ;;  %v4886_v5 = vld [vmem:[%s6996_s0 + $0x2d4] ss:$8 sps:$4 sm:$0xff]  }
 0x181   :  { %7022 = vst [vmem:[#allocation14_spill] sm:$0xff] %v5719_v49 }
 0x182   :  { %1510 = vmatmul.mubr.bf16.gmra.mrb[172].mxu0 %v4882_v63 }
 0x183   :  { %4279 = vmatprep.mubr.msk.bf16.mxu0 %vm870_vm0, %v4883_v43 }
 0x185   :  { %v5722_v61 = vpop.f32.mrb[68].mxu0 }
 0x186   :  { %7023 = vst [vmem:[#allocation15_spill] sm:$0xff] %v5722_v61  ;;  %v5724_v3 = vpop.f32.mrb[69].mxu0 }
 0x187   :  { %7024 = vst [vmem:[#allocation16_spill] sm:$0xff] %v5724_v3  ;;  %v5729_v13 = vpop.f32.mrb[70].mxu0  ;;  %v4888_v3 = vld [vmem:[%s6996_s0 + $0x2d0] ss:$8 sps:$4 sm:$0xff]  }
 0x188   :  { %7025 = vst [vmem:[#allocation17_spill] sm:$0xff] %v5729_v13  ;;  %v5734_v25 = vpop.f32.mrb[71].mxu0  ;;  %v4889_v13 = vld [vmem:[%s6996_s0 + $0x2e4] ss:$8 sps:$4 sm:$0xff]  }
 0x189   :  { %7026 = vst [vmem:[#allocation18_spill] sm:$0xff] %v5734_v25 }
 0x18a   :  { %1520 = vmatmul.mubr.bf16.gmra.mrb[176].mxu0 %v4885_v9 }
 0x18b   :  { %4280 = vmatprep.mubr.msk.bf16.mxu0 %vm870_vm0, %v4886_v5 }
 0x18d   :  { %v5737_v63 = vpop.f32.mrb[72].mxu0 }
 0x18e   :  { %7027 = vst [vmem:[#allocation19_spill] sm:$0xff] %v5737_v63  ;;  %v5739_v43 = vpop.f32.mrb[73].mxu0 }
 0x18f   :  { %7028 = vst [vmem:[#allocation20_spill] sm:$0xff] %v5739_v43  ;;  %v5744_v61 = vpop.f32.mrb[74].mxu0  ;;  %v4891_v43 = vld [vmem:[%s6996_s0 + $0x2e0] ss:$8 sps:$4 sm:$0xff]  }
 0x190   :  { %7029 = vst [vmem:[#allocation21_spill] sm:$0xff] %v5744_v61  ;;  %v5749_v49 = vpop.f32.mrb[75].mxu0  ;;  %v4892_v61 = vld [vmem:[%s6996_s0 + $0x2f4] ss:$8 sps:$4 sm:$0xff]  }
 0x191   :  { %7030 = vst [vmem:[#allocation22_spill] sm:$0xff] %v5749_v49 }
 0x192   :  { %1530 = vmatmul.mubr.bf16.gmra.mrb[180].mxu0 %v4888_v3 }
 0x193   :  { %4281 = vmatprep.mubr.msk.bf16.mxu0 %vm870_vm0, %v4889_v13 }
 0x195   :  { %v5752_v5 = vpop.f32.mrb[76].mxu0 }
 0x196   :  { %7031 = vst [vmem:[#allocation23_spill] sm:$0xff] %v5752_v5  ;;  %v5754_v9 = vpop.f32.mrb[77].mxu0 }
 0x197   :  { %7032 = vst [vmem:[#allocation24_spill] sm:$0xff] %v5754_v9  ;;  %v5759_v63 = vpop.f32.mrb[78].mxu0  ;;  %v4894_v9 = vld [vmem:[%s6996_s0 + $0x2f0] ss:$8 sps:$4 sm:$0xff]  }
 0x198   :  { %7033 = vst [vmem:[#allocation25_spill] sm:$0xff] %v5759_v63  ;;  %v5764_v25 = vpop.f32.mrb[79].mxu0  ;;  %v4895_v63 = vld [vmem:[%s6996_s0 + $0x304] ss:$8 sps:$4 sm:$0xff]  }
 0x199   :  { %7034 = vst [vmem:[#allocation26_spill] sm:$0xff] %v5764_v25 }
 0x19a   :  { %1540 = vmatmul.mubr.bf16.gmra.mrb[184].mxu0 %v4891_v43 }
 0x19b   :  { %4282 = vmatprep.mubr.msk.bf16.mxu0 %vm870_vm0, %v4892_v61 }
 0x19d   :  { %v5767_v3 = vpop.f32.mrb[80].mxu0 }
 0x19e   :  { %7035 = vst [vmem:[#allocation27_spill] sm:$0xff] %v5767_v3  ;;  %v5769_v13 = vpop.f32.mrb[81].mxu0 }
 0x19f   :  { %7036 = vst [vmem:[#allocation28_spill] sm:$0xff] %v5769_v13  ;;  %v5774_v5 = vpop.f32.mrb[82].mxu0  ;;  %v4897_v13 = vld [vmem:[%s6996_s0 + $0x300] ss:$8 sps:$4 sm:$0xff]  }
 0x1a0   :  { %7037 = vst [vmem:[#allocation29_spill] sm:$0xff] %v5774_v5  ;;  %v5779_v49 = vpop.f32.mrb[83].mxu0  ;;  %v4898_v5 = vld [vmem:[%s6996_s0 + $0x314] ss:$8 sps:$4 sm:$0xff]  }
 0x1a1   :  { %7038 = vst [vmem:[#allocation30_spill] sm:$0xff] %v5779_v49 }
 0x1a2   :  { %1546 = vmatmul.mubr.bf16.gmra.mrb[188].mxu0 %v4894_v9 }
 0x1a3   :  { %4283 = vmatprep.mubr.msk.bf16.mxu0 %vm870_vm0, %v4895_v63 }
 0x1a5   :  { %v5782_v61 = vpop.f32.mrb[84].mxu0 }
 0x1a6   :  { %7039 = vst [vmem:[#allocation31_spill] sm:$0xff] %v5782_v61  ;;  %v5784_v43 = vpop.f32.mrb[85].mxu0 }
 0x1a7   :  { %7040 = vst [vmem:[#allocation32_spill] sm:$0xff] %v5784_v43  ;;  %v5789_v3 = vpop.f32.mrb[86].mxu0  ;;  %v4900_v43 = vld [vmem:[%s6996_s0 + $0x310] ss:$8 sps:$4 sm:$0xff]  }
 0x1a8   :  { %7041 = vst [vmem:[#allocation33_spill] sm:$0xff] %v5789_v3  ;;  %v5794_v25 = vpop.f32.mrb[87].mxu0  ;;  %v4901_v3 = vld [vmem:[%s6996_s0 + $0x324] ss:$8 sps:$4 sm:$0xff]  }
 0x1a9   :  { %7042 = vst [vmem:[#allocation34_spill] sm:$0xff] %v5794_v25 }
 0x1aa   :  { %1552 = vmatmul.mubr.bf16.gmra.mrb[192].mxu0 %v4897_v13 }
 0x1ab   :  { %4284 = vmatprep.mubr.msk.bf16.mxu0 %vm870_vm0, %v4898_v5 }
 0x1ad   :  { %v5797_v63 = vpop.f32.mrb[88].mxu0 }
 0x1ae   :  { %7043 = vst [vmem:[#allocation35_spill] sm:$0xff] %v5797_v63  ;;  %v5799_v9 = vpop.f32.mrb[89].mxu0 }
 0x1af   :  { %7044 = vst [vmem:[#allocation36_spill] sm:$0xff] %v5799_v9  ;;  %v5804_v61 = vpop.f32.mrb[90].mxu0  ;;  %v4903_v9 = vld [vmem:[%s6996_s0 + $0x320] ss:$8 sps:$4 sm:$0xff]  }
 0x1b0   :  { %7045 = vst [vmem:[#allocation37_spill] sm:$0xff] %v5804_v61  ;;  %v5809_v49 = vpop.f32.mrb[91].mxu0  ;;  %v4904_v61 = vld [vmem:[%s6996_s0 + $0x334] ss:$8 sps:$4 sm:$0xff]  }
 0x1b1   :  { %7046 = vst [vmem:[#allocation38_spill] sm:$0xff] %v5809_v49 }
 0x1b2   :  { %1562 = vmatmul.mubr.bf16.gmra.mrb[196].mxu0 %v4900_v43 }
 0x1b3   :  { %4285 = vmatprep.mubr.msk.bf16.mxu0 %vm870_vm0, %v4901_v3 }
 0x1b5   :  { %v5812_v5 = vpop.f32.mrb[92].mxu0 }
 0x1b6   :  { %7047 = vst [vmem:[#allocation39_spill] sm:$0xff] %v5812_v5  ;;  %v5814_v13 = vpop.f32.mrb[93].mxu0 }
 0x1b7   :  { %7048 = vst [vmem:[#allocation40_spill] sm:$0xff] %v5814_v13  ;;  %v5819_v63 = vpop.f32.mrb[94].mxu0  ;;  %v4906_v13 = vld [vmem:[%s6996_s0 + $0x330] ss:$8 sps:$4 sm:$0xff]  }
 0x1b8   :  { %7049 = vst [vmem:[#allocation41_spill] sm:$0xff] %v5819_v63  ;;  %v5824_v25 = vpop.f32.mrb[95].mxu0  ;;  %v4907_v63 = vld [vmem:[%s6996_s0 + $0x344] ss:$8 sps:$4 sm:$0xff]  }
 0x1b9   :  { %7050 = vst [vmem:[#allocation42_spill] sm:$0xff] %v5824_v25 }
 0x1ba   :  { %1572 = vmatmul.mubr.bf16.gmra.mrb[200].mxu0 %v4903_v9 }
 0x1bb   :  { %4286 = vmatprep.mubr.msk.bf16.mxu0 %vm870_vm0, %v4904_v61 }
 0x1bd   :  { %v5827_v3 = vpop.f32.mrb[96].mxu0 }
 0x1be   :  { %7051 = vst [vmem:[#allocation43_spill] sm:$0xff] %v5827_v3  ;;  %v5829_v43 = vpop.f32.mrb[97].mxu0 }
 0x1bf   :  { %7052 = vst [vmem:[#allocation44_spill] sm:$0xff] %v5829_v43  ;;  %v5834_v5 = vpop.f32.mrb[98].mxu0  ;;  %v4909_v43 = vld [vmem:[%s6996_s0 + $0x340] ss:$8 sps:$4 sm:$0xff]  }
 0x1c0   :  { %7053 = vst [vmem:[#allocation45_spill] sm:$0xff] %v5834_v5  ;;  %v5839_v49 = vpop.f32.mrb[99].mxu0  ;;  %v4910_v5 = vld [vmem:[%s6996_s0 + $0x354] ss:$8 sps:$4 sm:$0xff]  }
 0x1c1   :  { %7054 = vst [vmem:[#allocation46_spill] sm:$0xff] %v5839_v49 }
 0x1c2   :  { %1582 = vmatmul.mubr.bf16.gmra.mrb[204].mxu0 %v4906_v13  ;;  %v4939_v13 = vld [vmem:[%s6999_s3] ss:$8 sps:$4 sm:$0xff]  }
 0x1c3   :  { %4287 = vmatprep.mubr.msk.bf16.mxu0 %vm870_vm0, %v4907_v63  ;;  %v4937_v63 = vld [vmem:[%s6999_s3 + $0x4] ss:$8 sps:$4 sm:$0xff]  }
 0x1c4   :  { %2499 = vmatprep.subr.bf16.mxu1 %v4937_v63  ;;  %v4942_v63 = vld [vmem:[%s6999_s3 + $0x10] ss:$8 sps:$4 sm:$0xff]  }
 0x1c5   :  { %v5842_v61 = vpop.f32.mrb[100].mxu0  ;;  %2500 = vmatpush1.bf16.msra.mxu1 %v4939_v13 }
 0x1c6   :  { %7055 = vst [vmem:[#allocation47_spill] sm:$0xff] %v5842_v61  ;;  %v5844_v9 = vpop.f32.mrb[101].mxu0 }
 0x1c7   :  { %7056 = vst [vmem:[#allocation48_spill] sm:$0xff] %v5844_v9  ;;  %v5849_v3 = vpop.f32.mrb[102].mxu0 }
 0x1c8   :  { %7057 = vst [vmem:[#allocation49_spill] sm:$0xff] %v5849_v3  ;;  %v5854_v25 = vpop.f32.mrb[103].mxu0 }
 0x1c9   :  { %7058 = vst [vmem:[#allocation50_spill] sm:$0xff] %v5854_v25  ;;  %v4940_v25 = vld [vmem:[%s6999_s3 + $0x14] ss:$8 sps:$4 sm:$0xff]  }
 0x1ca   :  { %1592 = vmatmul.mubr.bf16.gmra.mrb[208].mxu0 %v4909_v43  ;;  %v4912_v43 = vld [vmem:[%s6996_s0 + $0x350] ss:$8 sps:$4 sm:$0xff]   ;;  %2501 = vmatprep.subr.bf16.mxu1 %v4940_v25  ;;  %v4915_v25 = vld [vmem:[%s6996_s0 + $0x360] ss:$8 sps:$4 sm:$0xff]  }
 0x1cb   :  { %4288 = vmatprep.mubr.msk.bf16.mxu0 %vm870_vm0, %v4910_v5  ;;  %v4913_v5 = vld [vmem:[%s6996_s0 + $0x364] ss:$8 sps:$4 sm:$0xff]   ;;  %2502 = vmatpush1.bf16.msra.mxu1 %v4942_v63 }
 0x1cd   :  { %v5863_v9 = vpop.f32.mrb[104].mxu0 }
 0x1ce   :  { %7059 = vst [vmem:[#allocation51_spill] sm:$0xff] %v5863_v9  ;;  %v5865_v3 = vpop.f32.mrb[105].mxu0 }
 0x1cf   :  { %7060 = vst [vmem:[#allocation52_spill] sm:$0xff] %v5865_v3  ;;  %v5873_v61 = vpop.f32.mrb[106].mxu0  ;;  %v4943_v3 = vld [vmem:[%s6999_s3 + $0x24] ss:$8 sps:$4 sm:$0xff]  }
 0x1d0   :  { %7061 = vst [vmem:[#allocation53_spill] sm:$0xff] %v5873_v61  ;;  %v5881_v13 = vpop.f32.mrb[107].mxu0  ;;  %v4945_v61 = vld [vmem:[%s6999_s3 + $0x20] ss:$8 sps:$4 sm:$0xff]   ;;  %2503 = vmatprep.subr.bf16.mxu1 %v4943_v3  ;;  %v4948_v3 = vld [vmem:[%s6999_s3 + $0x30] ss:$8 sps:$4 sm:$0xff]  }
 0x1d1   :  { %7062 = vst [vmem:[#allocation54_spill] sm:$0xff] %v5881_v13  ;;  %2504 = vmatpush1.bf16.msra.mxu1 %v4945_v61 }
 0x1d2   :  { %1602 = vmatmul.mubr.bf16.gmra.mrb[212].mxu0 %v4912_v43  ;;  %v4946_v43 = vld [vmem:[%s6999_s3 + $0x34] ss:$8 sps:$4 sm:$0xff]  }
 0x1d3   :  { %4289 = vmatprep.mubr.msk.bf16.mxu0 %vm870_vm0, %v4913_v5  ;;  %v4916_v5 = vld [vmem:[%s6996_s0 + $0x374] ss:$8 sps:$4 sm:$0xff]   ;;  %2505 = vmatprep.subr.bf16.mxu1 %v4946_v43 }
 0x1d4   :  { %v4952_v43 = vld [vmem:[%s6999_s3 + $0x54] ss:$8 sps:$4 sm:$0xff]  }
 0x1d5   :  { %v5890_v9 = vpop.f32.mrb[108].mxu0  ;;  %2506 = vmatpush1.bf16.msra.mxu1 %v4948_v3 }
 0x1d6   :  { %7063 = vst [vmem:[#allocation55_spill] sm:$0xff] %v5890_v9  ;;  %v5892_v49 = vpop.f32.mrb[109].mxu0 }
 0x1d7   :  { %7064 = vst [vmem:[#allocation56_spill] sm:$0xff] %v5892_v49  ;;  %v5900_v63 = vpop.f32.mrb[110].mxu0  ;;  %v4949_v49 = vld [vmem:[%s6999_s3 + $0x44] ss:$8 sps:$4 sm:$0xff]  }
 0x1d8   :  { %7065 = vst [vmem:[#allocation57_spill] sm:$0xff] %v5900_v63  ;;  %v5908_v61 = vpop.f32.mrb[111].mxu0  ;;  %v4951_v63 = vld [vmem:[%s6999_s3 + $0x40] ss:$8 sps:$4 sm:$0xff]   ;;  %2507 = vmatprep.subr.bf16.mxu1 %v4949_v49  ;;  %v4954_v49 = vld [vmem:[%s6999_s3 + $0x50] ss:$8 sps:$4 sm:$0xff]  }
 0x1d9   :  { %7066 = vst [vmem:[#allocation58_spill] sm:$0xff] %v5908_v61  ;;  %2508 = vmatpush1.bf16.msra.mxu1 %v4951_v63 }
 0x1da   :  { %1612 = vmatmul.mubr.bf16.gmra.mrb[216].mxu0 %v4915_v25  ;;  %v4918_v25 = vld [vmem:[%s6996_s0 + $0x370] ss:$8 sps:$4 sm:$0xff]   ;;  %2509 = vmatprep.subr.bf16.mxu1 %v4952_v43  ;;  %v4958_v43 = vld [vmem:[%s6999_s3 + $0x74] ss:$8 sps:$4 sm:$0xff]  }
 0x1db   :  { %4290 = vmatprep.mubr.msk.bf16.mxu0 %vm870_vm0, %v4916_v5  ;;  %v4919_v5 = vld [vmem:[%s6996_s0 + $0x384] ss:$8 sps:$4 sm:$0xff]  }
 0x1dd   :  { %v5917_v9 = vpop.f32.mrb[112].mxu0  ;;  %2510 = vmatpush1.bf16.msra.mxu1 %v4954_v49 }
 0x1de   :  { %7067 = vst [vmem:[#allocation59_spill] sm:$0xff] %v5917_v9  ;;  %v5919_v13 = vpop.f32.mrb[113].mxu0 }
 0x1df   :  { %7068 = vst [vmem:[#allocation60_spill] sm:$0xff] %v5919_v13  ;;  %v5927_v3 = vpop.f32.mrb[114].mxu0  ;;  %v4955_v13 = vld [vmem:[%s6999_s3 + $0x64] ss:$8 sps:$4 sm:$0xff]  }
 0x1e0   :  { %7069 = vst [vmem:[#allocation61_spill] sm:$0xff] %v5927_v3  ;;  %v5935_v63 = vpop.f32.mrb[115].mxu0  ;;  %v4957_v3 = vld [vmem:[%s6999_s3 + $0x60] ss:$8 sps:$4 sm:$0xff]   ;;  %2511 = vmatprep.subr.bf16.mxu1 %v4955_v13  ;;  %v4960_v13 = vld [vmem:[%s6999_s3 + $0x70] ss:$8 sps:$4 sm:$0xff]  }
 0x1e1   :  { %7070 = vst [vmem:[#allocation62_spill] sm:$0xff] %v5935_v63  ;;  %2512 = vmatpush1.bf16.msra.mxu1 %v4957_v3 }
 0x1e2   :  { %1622 = vmatmul.mubr.bf16.gmra.mrb[220].mxu0 %v4918_v25  ;;  %v4921_v25 = vld [vmem:[%s6996_s0 + $0x380] ss:$8 sps:$4 sm:$0xff]   ;;  %2513 = vmatprep.subr.bf16.mxu1 %v4958_v43  ;;  %v4924_v43 = vld [vmem:[%s6996_s0 + $0x390] ss:$8 sps:$4 sm:$0xff]  }
 0x1e3   :  { %4291 = vmatprep.mubr.msk.bf16.mxu0 %vm870_vm0, %v4919_v5  ;;  %v4922_v5 = vld [vmem:[%s6996_s0 + $0x394] ss:$8 sps:$4 sm:$0xff]  }
 0x1e5   :  { %v5944_v9 = vpop.f32.mrb[116].mxu0  ;;  %2514 = vmatpush1.bf16.msra.mxu1 %v4960_v13 }
 0x1e6   :  { %7071 = vst [vmem:[#allocation63_spill] sm:$0xff] %v5944_v9  ;;  %v5946_v61 = vpop.f32.mrb[117].mxu0 }
 0x1e7   :  { %7072 = vst [vmem:[#allocation64_spill] sm:$0xff] %v5946_v61  ;;  %v5954_v49 = vpop.f32.mrb[118].mxu0  ;;  %v4961_v61 = vld [vmem:[%s6999_s3 + $0x84] ss:$8 sps:$4 sm:$0xff]  }
 0x1e8   :  { %7073 = vst [vmem:[#allocation65_spill] sm:$0xff] %v5954_v49  ;;  %v5962_v3 = vpop.f32.mrb[119].mxu0  ;;  %v4963_v49 = vld [vmem:[%s6999_s3 + $0x80] ss:$8 sps:$4 sm:$0xff]   ;;  %2515 = vmatprep.subr.bf16.mxu1 %v4961_v61  ;;  %v4966_v61 = vld [vmem:[%s6999_s3 + $0x90] ss:$8 sps:$4 sm:$0xff]  }
 0x1e9   :  { %7074 = vst [vmem:[#allocation66_spill] sm:$0xff] %v5962_v3  ;;  %2516 = vmatpush1.bf16.msra.mxu1 %v4963_v49  ;;  %v4968_v49 = vld [vmem:[%s6999_s3 + $0xa4] ss:$8 sps:$4 sm:$0xff]   ;;  %v4970_v3 = vld [vmem:[%s6999_s3 + $0xa0] ss:$8 sps:$4 sm:$0xff]  }
 0x1ea   :  { %1632 = vmatmul.mubr.bf16.gmra.mrb[224].mxu0 %v4921_v25  ;;  %v4964_v25 = vld [vmem:[%s6999_s3 + $0x94] ss:$8 sps:$4 sm:$0xff]  }
 0x1eb   :  { %4292 = vmatprep.mubr.msk.bf16.mxu0 %vm870_vm0, %v4922_v5  ;;  %v4925_v5 = vld [vmem:[%s6996_s0 + $0x3a4] ss:$8 sps:$4 sm:$0xff]   ;;  %2517 = vmatprep.subr.bf16.mxu1 %v4964_v25 }
 0x1ed   :  { %v1389_v9 = vpop.f32.mrb[120].mxu0  ;;  %2518 = vmatpush1.bf16.msra.mxu1 %v4966_v61  ;;  %v4927_v61 = vld [vmem:[%s6996_s0 + $0x3a0] ss:$8 sps:$4 sm:$0xff]  }
 0x1ee   :  { %v1390_v63 = vpop.f32.mrb[121].mxu0  ;;  %2519 = vmatprep.subr.bf16.mxu1 %v4968_v49  ;;  %v4976_v49 = vld [vmem:[%s6999_s3 + $0xc0] ss:$8 sps:$4 sm:$0xff]  }
 0x1ef   :  { %v1391_v13 = vpop.f32.mrb[122].mxu0  ;;  %v4967_v63 = vld [vmem:[%s7002_s6 + $0x80] sm:$0xff]  }
 0x1f0   :  { %v1392_v9 = vpop.f32.mrb[123].mxu0  ;;  %v7011_v13 = vmov 0  }
 0x1f1   :  { %3693 = vmatprep.subr.bf16.mxu0 %v7011_v13  ;;  %2520 = vmatpush1.bf16.msra.mxu1 %v4970_v3  ;;  %v4974_v3 = vld [vmem:[%s6999_s3 + $0xc4] ss:$8 sps:$4 sm:$0xff]  }
 0x1f2   :  { %1642 = vmatmul.mubr.bf16.gmra.mrb[228].mxu0 %v4924_v43  ;;  %v4928_v43 = vld [vmem:[%s6996_s0 + $0x3b4] ss:$8 sps:$4 sm:$0xff]   ;;  %2521 = vmatprep.subr.bf16.mxu1 %v4971_v31  ;;  %v4930_v31 = vld [vmem:[%s6996_s0 + $0x3b0] ss:$8 sps:$4 sm:$0xff]  }
 0x1f3   :  { %4293 = vmatprep.mubr.msk.bf16.mxu0 %vm870_vm0, %v4925_v5  ;;  %3694 = vmatpush1.bf16.msra.mxu0 %v4967_v63  ;;  %v4973_v5 = vld [vmem:[%s6999_s3 + $0xb0] ss:$8 sps:$4 sm:$0xff]  }
 0x1f4   :  { %3695 = vmatprep.subr.bf16.mxu0 %v7011_v13 }
 0x1f5   :  { %v1395_v25 = vpop.f32.mrb[124].mxu0  ;;  %2522 = vmatpush1.bf16.msra.mxu1 %v4973_v5  ;;  %v4977_v5 = vld [vmem:[%s6999_s3 + $0xd4] ss:$8 sps:$4 sm:$0xff]  }
 0x1f6   :  { %v1396_v9 = vpop.f32.mrb[125].mxu0  ;;  %2523 = vmatprep.subr.bf16.mxu1 %v4974_v3 }
 0x1f7   :  { %v1397_v57 = vpop.f32.mrb[126].mxu0 }
 0x1f8   :  { %v1398_v63 = vpop.f32.mrb[127].mxu0 }
 0x1f9   :  { %2524 = vmatpush1.bf16.msra.mxu1 %v4976_v49 }
 0x1fa   :  { %1652 = vmatmul.mubr.bf16.gmra.mrb[232].mxu0 %v4927_v61  ;;  %v4931_v61 = vld [vmem:[%s6996_s0 + $0x3c4] ss:$8 sps:$4 sm:$0xff]   ;;  %2525 = vmatprep.subr.bf16.mxu1 %v4977_v5 }
 0x1fb   :  { %4294 = vmatprep.mubr.msk.bf16.mxu0 %vm870_vm0, %v4928_v43  ;;  %v6031_v43 = vld [vmem:[%s6998_s2] ss:$0 sm:$0xff] }
 0x1fd   :  { %v1401_v57 = vpop.f32.mrb[128].mxu0 }
 0x1fe   :  { %v1704_v25 = vmax.f32 %v5483_v11, %v1401_v57  ;;  %v1403_v9 = vpop.f32.mrb[129].mxu0  ;;  %v4979_v11 = vld [vmem:[%s6999_s3 + $0xd0] ss:$8 sps:$4 sm:$0xff]  }
 0x1ff   :  { %v1705_v63 = vmax.f32 %v5485_v12, %v1403_v9  ;;  %v1405_v13 = vpop.f32.mrb[130].mxu0  ;;  %2526 = vmatpush1.bf16.msra.mxu1 %v4979_v11  ;;  %v4980_v9 = vld [vmem:[%s6999_s3 + $0xe4] ss:$8 sps:$4 sm:$0xff]  }
 0x200   :  { %v1706_v3 = vmax.f32 %v5490_v14, %v1405_v13  ;;  %v1407_v49 = vpop.f32.mrb[131].mxu0  ;;  %v4982_v14 = vld [vmem:[%s6999_s3 + $0xe0] ss:$8 sps:$4 sm:$0xff]   ;;  %2527 = vmatprep.subr.bf16.mxu1 %v4980_v9 }
 0x201   :  { %v1816_v57 = vmax.f32 %v1704_v25, %v1705_v63  ;;  %v1707_v12 = vmax.f32 %v5495_v16, %v1407_v49  ;;  %v4933_v16 = vld [vmem:[%s6996_s0 + $0x3c0] ss:$8 sps:$4 sm:$0xff]   ;;  %v4934_v63 = vld [vmem:[%s6996_s0 + $0x3d4] ss:$8 sps:$4 sm:$0xff]  }
 0x202   :  { %1662 = vmatmul.mubr.bf16.gmra.mrb[236].mxu0 %v4930_v31 }
 0x203   :  { %v1879_v55 = vadd.f32 %v6031_v43, %v1816_v57  ;;  %v1817_v51 = vmax.f32 %v1706_v3, %v1707_v12  ;;  %4295 = vmatprep.mubr.msk.bf16.mxu0 %vm870_vm0, %v4931_v61  ;;  %2528 = vmatpush1.bf16.msra.mxu1 %v4982_v14  ;;  %v4983_v61 = vld [vmem:[%s6999_s3 + $0xf4] ss:$8 sps:$4 sm:$0xff]   ;;  %v4985_v57 = vld [vmem:[%s6999_s3 + $0xf0] ss:$8 sps:$4 sm:$0xff]  }
 0x204   :  { %2529 = vmatprep.subr.bf16.mxu1 %v4983_v61 }
 0x205   :  { %v1880_v13 = vadd.f32 %v6031_v43, %v1817_v51  ;;  %v1411_v25 = vpop.f32.mrb[132].mxu0  ;;  %v1935_v11 = vmax.f32 %v1879_v55, 0.0 }
 0x206   :  { %v1708_v31 = vmax.f32 %v5498_v17, %v1411_v25  ;;  %v1413_v5 = vpop.f32.mrb[133].mxu0 }
 0x207   :  { %v1936_v3 = vmax.f32 %v1880_v13, 0.0  ;;  %v1709_v51 = vmax.f32 %v5500_v18, %v1413_v5  ;;  %v1415_v49 = vpop.f32.mrb[134].mxu0  ;;  %2530 = vmatpush1.bf16.msra.mxu1 %v4985_v57 }
 0x208   :  { %v1710_v17 = vmax.f32 %v5505_v20, %v1415_v49  ;;  %v1417_v12 = vpop.f32.mrb[135].mxu0 }
 0x209   :  { %v1818_v9 = vmax.f32 %v1708_v31, %v1709_v51  ;;  %v1711_v14 = vmax.f32 %v5510_v22, %v1417_v12  ;;  %v6060_v25 = vpack.c.bf16 %v1936_v3, %v1935_v11  ;;  %v4936_v31 = vld [vmem:[%s6996_s0 + $0x3d0] ss:$8 sps:$4 sm:$0xff]   ;;  %v4988_v3 = vld [vmem:[%s6999_s3 + $0x104] ss:$8 sps:$4 sm:$0xff]  }
 0x20a   :  { %1672 = vmatmul.mubr.bf16.gmra.mrb[240].mxu0 %v4933_v16  ;;  %2732 = vmatprep.subr.bf16.mxu1 %v4988_v3 }
 0x20b   :  { %v1881_v55 = vadd.f32 %v6031_v43, %v1818_v9  ;;  %v1819_v13 = vmax.f32 %v1710_v17, %v1711_v14  ;;  %4296 = vmatprep.mubr.msk.bf16.mxu0 %vm870_vm0, %v4934_v63 }
 0x20d   :  { %v1882_v18 = vadd.f32 %v6031_v43, %v1819_v13  ;;  %v1421_v5 = vpop.f32.mrb[136].mxu0  ;;  %v1937_v22 = vmax.f32 %v1881_v55, 0.0 }
 0x20e   :  { %v1712_v45 = vmax.f32 %v5513_v23, %v1421_v5  ;;  %v1423_v20 = vpop.f32.mrb[137].mxu0 }
 0x20f   :  { %v1938_v61 = vmax.f32 %v1882_v18, 0.0  ;;  %v1713_v11 = vmax.f32 %v5515_v24, %v1423_v20  ;;  %v1425_v16 = vpop.f32.mrb[138].mxu0 }
 0x210   :  { %v1714_v63 = vmax.f32 %v5520_v26, %v1425_v16  ;;  %v1427_v51 = vpop.f32.mrb[139].mxu0 }
 0x211   :  { %v1820_v49 = vmax.f32 %v1712_v45, %v1713_v11  ;;  %v1715_v23 = vmax.f32 %v5525_v28, %v1427_v51  ;;  %v6075_v57 = vpack.c.bf16 %v1938_v61, %v1937_v22 }
 0x212   :  { %1682 = vmatmul.mubr.bf16.gmra.mrb[244].mxu0 %v4936_v31 }
 0x213   :  { %v1883_v17 = vadd.f32 %v6031_v43, %v1820_v49  ;;  %v1821_v12 = vmax.f32 %v1714_v63, %v1715_v23 }
 0x215   :  { %v1884_v24 = vadd.f32 %v6031_v43, %v1821_v12  ;;  %v1431_v9 = vpop.f32.mrb[140].mxu0  ;;  %v1939_v13 = vmax.f32 %v1883_v17, 0.0 }
 0x216   :  { %v1716_v14 = vmax.f32 %v5528_v29, %v1431_v9  ;;  %v1433_v55 = vpop.f32.mrb[141].mxu0 }
 0x217   :  { %v1940_v18 = vmax.f32 %v1884_v24, 0.0  ;;  %v1717_v26 = vmax.f32 %v5530_v30, %v1433_v55  ;;  %v1435_v45 = vpop.f32.mrb[142].mxu0 }
 0x218   :  { %v1718_v28 = vmax.f32 %v5535_v32, %v1435_v45  ;;  %v1437_v5 = vpop.f32.mrb[143].mxu0 }
 0x219   :  { %v1822_v20 = vmax.f32 %v1716_v14, %v1717_v26  ;;  %v1719_v31 = vmax.f32 %v5540_v34, %v1437_v5  ;;  %v6083_v22 = vpack.c.bf16 %v1940_v18, %v1939_v13 }
 0x21b   :  { %v1885_v61 = vadd.f32 %v6031_v43, %v1822_v20  ;;  %v1823_v11 = vmax.f32 %v1718_v28, %v1719_v31 }
 0x21d   :  { %v1886_v16 = vadd.f32 %v6031_v43, %v1823_v11  ;;  %v1441_v29 = vpop.f32.mrb[144].mxu0  ;;  %v1941_v51 = vmax.f32 %v1885_v61, 0.0 }
 0x21e   :  { %v1720_v3 = vmax.f32 %v5543_v35, %v1441_v29  ;;  %v1443_v63 = vpop.f32.mrb[145].mxu0 }
 0x21f   :  { %v1942_v30 = vmax.f32 %v1886_v16, 0.0  ;;  %v1721_v49 = vmax.f32 %v5545_v36, %v1443_v63  ;;  %v1445_v32 = vpop.f32.mrb[146].mxu0 }
 0x220   :  { %v1722_v23 = vmax.f32 %v5550_v38, %v1445_v32  ;;  %v1447_v17 = vpop.f32.mrb[147].mxu0 }
 0x221   :  { %v1824_v34 = vmax.f32 %v1720_v3, %v1721_v49  ;;  %v1723_v12 = vmax.f32 %v5555_v40, %v1447_v17  ;;  %v6091_v24 = vpack.c.bf16 %v1942_v30, %v1941_v51  ;;  %v4998_v17 = vld [vmem:[%s7002_s6 + $0x88] sm:$0xff]  }
 0x222   :  { %3696 = vmatpush1.bf16.msra.mxu0 %v4998_v17 }
 0x223   :  { %v1887_v9 = vadd.f32 %v6031_v43, %v1824_v34  ;;  %v1825_v14 = vmax.f32 %v1722_v23, %v1723_v12  ;;  %v7075_v12 = vmov 0  }
 0x224   :  { %3697 = vmatprep.subr.bf16.mxu0 %v7075_v12 }
 0x225   :  { %v1888_v55 = vadd.f32 %v6031_v43, %v1825_v14  ;;  %v1451_v35 = vpop.f32.mrb[148].mxu0  ;;  %v1943_v26 = vmax.f32 %v1887_v9, 0.0 }
 0x226   :  { %v1724_v13 = vmax.f32 %v5558_v41, %v1451_v35  ;;  %v1453_v18 = vpop.f32.mrb[149].mxu0 }
 0x227   :  { %v1944_v36 = vmax.f32 %v1888_v55, 0.0  ;;  %v1725_v45 = vmax.f32 %v5560_v42, %v1453_v18  ;;  %v1455_v38 = vpop.f32.mrb[150].mxu0 }
 0x228   :  { %v1726_v28 = vmax.f32 %v5565_v44, %v1455_v38  ;;  %v1457_v5 = vpop.f32.mrb[151].mxu0 }
 0x229   :  { %v6098_v40 = vpack.c.bf16 %v1944_v36, %v1943_v26  ;;  %v1826_v20 = vmax.f32 %v1724_v13, %v1725_v45  ;;  %v1727_v31 = vmax.f32 %v5570_v46, %v1457_v5 }
 0x22b   :  { %v1889_v61 = vadd.f32 %v6031_v43, %v1826_v20  ;;  %v1827_v11 = vmax.f32 %v1726_v28, %v1727_v31 }
 0x22d   :  { %v1890_v16 = vadd.f32 %v6031_v43, %v1827_v11  ;;  %v1461_v41 = vpop.f32.mrb[152].mxu0  ;;  %v1945_v63 = vmax.f32 %v1889_v61, 0.0 }
 0x22e   :  { %v1728_v29 = vmax.f32 %v5573_v47, %v1461_v41  ;;  %v1463_v3 = vpop.f32.mrb[153].mxu0 }
 0x22f   :  { %v1946_v42 = vmax.f32 %v1890_v16, 0.0  ;;  %v1729_v51 = vmax.f32 %v5575_v48, %v1463_v3  ;;  %v1465_v44 = vpop.f32.mrb[154].mxu0 }
 0x230   :  { %v1730_v30 = vmax.f32 %v5580_v50, %v1465_v44  ;;  %v1467_v49 = vpop.f32.mrb[155].mxu0 }
 0x231   :  { %v6106_v32 = vpack.c.bf16 %v1946_v42, %v1945_v63  ;;  %v1828_v46 = vmax.f32 %v1728_v29, %v1729_v51  ;;  %v1731_v23 = vmax.f32 %v5585_v52, %v1467_v49 }
 0x233   :  { %v1891_v47 = vadd.f32 %v6031_v43, %v1828_v46  ;;  %v1829_v34 = vmax.f32 %v1730_v30, %v1731_v23 }
 0x235   :  { %v1892_v48 = vadd.f32 %v6031_v43, %v1829_v34  ;;  %v1471_v9 = vpop.f32.mrb[156].mxu0  ;;  %v1947_v55 = vmax.f32 %v1891_v47, 0.0 }
 0x236   :  { %v1732_v50 = vmax.f32 %v5588_v53, %v1471_v9  ;;  %v1473_v14 = vpop.f32.mrb[157].mxu0 }
 0x237   :  { %v1948_v35 = vmax.f32 %v1892_v48, 0.0  ;;  %v1733_v52 = vmax.f32 %v5590_v54, %v1473_v14  ;;  %v1475_v13 = vpop.f32.mrb[158].mxu0 }
 0x238   :  { %v1734_v18 = vmax.f32 %v5595_v56, %v1475_v13  ;;  %v1477_v26 = vpop.f32.mrb[159].mxu0 }
 0x239   :  { %v6118_v36 = vpack.c.bf16 %v1948_v35, %v1947_v55  ;;  %v1830_v45 = vmax.f32 %v1732_v50, %v1733_v52  ;;  %v1735_v38 = vmax.f32 %v5600_v58, %v1477_v26 }
 0x23b   :  { %v1893_v28 = vadd.f32 %v6031_v43, %v1830_v45  ;;  %v1831_v5 = vmax.f32 %v1734_v18, %v1735_v38 }
 0x23d   :  { %v1894_v20 = vadd.f32 %v6031_v43, %v1831_v5  ;;  %v1481_v53 = vpop.f32.mrb[160].mxu0  ;;  %v1949_v11 = vmax.f32 %v1893_v28, 0.0 }
 0x23e   :  { %v1736_v31 = vmax.f32 %v5603_v59, %v1481_v53  ;;  %v1483_v61 = vpop.f32.mrb[161].mxu0 }
 0x23f   :  { %v1950_v54 = vmax.f32 %v1894_v20, 0.0  ;;  %v1737_v16 = vmax.f32 %v5605_v60, %v1483_v61  ;;  %v1485_v56 = vpop.f32.mrb[162].mxu0 }
 0x240   :  { %v1738_v41 = vmax.f32 %v5610_v62, %v1485_v56  ;;  %v1487_v29 = vpop.f32.mrb[163].mxu0 }
 0x241   :  { %v6126_v3 = vpack.c.bf16 %v1950_v54, %v1949_v11  ;;  %v1832_v58 = vmax.f32 %v1736_v31, %v1737_v16  ;;  %v1739_v63 = vmax.f32 %v5615_v0, %v1487_v29 }
 0x243   :  { %v1895_v42 = vadd.f32 %v6031_v43, %v1832_v58  ;;  %v1833_v51 = vmax.f32 %v1738_v41, %v1739_v63 }
 0x245   :  { %v1896_v44 = vadd.f32 %v6031_v43, %v1833_v51  ;;  %v1491_v59 = vpop.f32.mrb[164].mxu0  ;;  %v1951_v46 = vmax.f32 %v1895_v42, 0.0 }
 0x246   :  { %v1740_v30 = vmax.f32 %v5618_v1, %v1491_v59  ;;  %v1493_v49 = vpop.f32.mrb[165].mxu0 }
 0x247   :  { %v1952_v60 = vmax.f32 %v1896_v44, 0.0  ;;  %v1741_v23 = vmax.f32 %v5620_v2, %v1493_v49  ;;  %v1495_v62 = vpop.f32.mrb[166].mxu0 }
 0x248   :  { %v1742_v17 = vmax.f32 %v5625_v4, %v1495_v62  ;;  %v1497_v47 = vpop.f32.mrb[167].mxu0 }
 0x249   :  { %v6134_v34 = vpack.c.bf16 %v1952_v60, %v1951_v46  ;;  %v1834_v0 = vmax.f32 %v1740_v30, %v1741_v23  ;;  %v1743_v48 = vmax.f32 %v5630_v6, %v1497_v47  ;;  %v7076_v30 = vld [vmem:[#allocation5_spill] sm:$0xff]  ;;  %v7077_v23 = vld [vmem:[#allocation6_spill] sm:$0xff] }
 0x24b   :  { %v1897_v9 = vadd.f32 %v6031_v43, %v1834_v0  ;;  %v1835_v50 = vmax.f32 %v1742_v17, %v1743_v48  ;;  %v7078_v48 = vld [vmem:[#allocation7_spill] sm:$0xff] }
 0x24d   :  { %v1898_v14 = vadd.f32 %v6031_v43, %v1835_v50  ;;  %v1501_v1 = vpop.f32.mrb[168].mxu0  ;;  %v1953_v52 = vmax.f32 %v1897_v9, 0.0 }
 0x24e   :  { %v1744_v55 = vmax.f32 %v5633_v7, %v1501_v1  ;;  %v1503_v35 = vpop.f32.mrb[169].mxu0  ;;  %v7079_v1 = vld [vmem:[#allocation8_spill] sm:$0xff] }
 0x24f   :  { %v1954_v2 = vmax.f32 %v1898_v14, 0.0  ;;  %v1745_v13 = vmax.f32 %v5635_v8, %v1503_v35  ;;  %v1505_v4 = vpop.f32.mrb[170].mxu0 }
 0x250   :  { %v1746_v18 = vmax.f32 %v5640_v10, %v1505_v4  ;;  %v1507_v26 = vpop.f32.mrb[171].mxu0 }
 0x251   :  { %v6142_v45 = vpack.c.bf16 %v1954_v2, %v1953_v52  ;;  %v1836_v6 = vmax.f32 %v1744_v55, %v1745_v13  ;;  %v1747_v38 = vmax.f32 %v5645_v15, %v1507_v26  ;;  %v5014_v52 = vld [vmem:[%s7002_s6 + $0x90] sm:$0xff]   ;;  %v7080_v2 = vld [vmem:[#allocation9_spill] sm:$0xff]  ;;  %v7081_v26 = vld [vmem:[#allocation10_spill] sm:$0xff] }
 0x252   :  { %3698 = vmatpush1.bf16.msra.mxu0 %v5014_v52 }
 0x253   :  { %v1899_v28 = vadd.f32 %v6031_v43, %v1836_v6  ;;  %v1837_v5 = vmax.f32 %v1746_v18, %v1747_v38  ;;  %3699 = vmatprep.subr.bf16.mxu0 %v7075_v12 }
 0x255   :  { %v1900_v20 = vadd.f32 %v6031_v43, %v1837_v5  ;;  %v1511_v7 = vpop.f32.mrb[172].mxu0  ;;  %v1955_v61 = vmax.f32 %v1899_v28, 0.0 }
 0x256   :  { %v1748_v53 = vmax.f32 %v5648_v19, %v1511_v7  ;;  %v1513_v31 = vpop.f32.mrb[173].mxu0 }
 0x257   :  { %v1956_v8 = vmax.f32 %v1900_v20, 0.0  ;;  %v1749_v11 = vmax.f32 %v5650_v21, %v1513_v31  ;;  %v1515_v10 = vpop.f32.mrb[174].mxu0 }
 0x258   :  { %v1750_v54 = vmax.f32 %v5655_v27, %v1515_v10  ;;  %v1517_v16 = vpop.f32.mrb[175].mxu0 }
 0x259   :  { %v6150_v56 = vpack.c.bf16 %v1956_v8, %v1955_v61  ;;  %v1838_v15 = vmax.f32 %v1748_v53, %v1749_v11  ;;  %v1751_v41 = vmax.f32 %v5660_v33, %v1517_v16 }
 0x25b   :  { %v1901_v29 = vadd.f32 %v6031_v43, %v1838_v15  ;;  %v1839_v58 = vmax.f32 %v1750_v54, %v1751_v41 }
 0x25d   :  { %v1902_v63 = vadd.f32 %v6031_v43, %v1839_v58  ;;  %v1521_v19 = vpop.f32.mrb[176].mxu0  ;;  %v1957_v44 = vmax.f32 %v1901_v29, 0.0  ;;  %v7082_v58 = vld [vmem:[#allocation11_spill] sm:$0xff] }
 0x25e   :  { %v1752_v42 = vmax.f32 %v5663_v37, %v1521_v19  ;;  %v1523_v51 = vpop.f32.mrb[177].mxu0 }
 0x25f   :  { %v1958_v21 = vmax.f32 %v1902_v63, 0.0  ;;  %v1753_v59 = vmax.f32 %v5665_v39, %v1523_v51  ;;  %v1525_v27 = vpop.f32.mrb[178].mxu0 }
 0x260   :  { %v1754_v49 = vmax.f32 %v7076_v30, %v1525_v27  ;;  %v1527_v46 = vpop.f32.mrb[179].mxu0 }
 0x261   :  { %v6158_v60 = vpack.c.bf16 %v1958_v21, %v1957_v44  ;;  %v1840_v33 = vmax.f32 %v1752_v42, %v1753_v59  ;;  %v1755_v62 = vmax.f32 %v7077_v23, %v1527_v46  ;;  %v7083_v42 = vld [vmem:[#allocation12_spill] sm:$0xff]  ;;  %v7084_v21 = vld [vmem:[#allocation13_spill] sm:$0xff] }
 0x263   :  { %v1903_v17 = vadd.f32 %v6031_v43, %v1840_v33  ;;  %v1841_v47 = vmax.f32 %v1754_v49, %v1755_v62  ;;  %v7085_v49 = vld [vmem:[#allocation14_spill] sm:$0xff] }
 0x265   :  { %v1904_v0 = vadd.f32 %v6031_v43, %v1841_v47  ;;  %v1531_v37 = vpop.f32.mrb[180].mxu0  ;;  %v1959_v14 = vmax.f32 %v1903_v17, 0.0  ;;  %v7086_v47 = vld [vmem:[#allocation15_spill] sm:$0xff] }
 0x266   :  { %v1756_v9 = vmax.f32 %v7078_v48, %v1531_v37  ;;  %v1533_v50 = vpop.f32.mrb[181].mxu0  ;;  %v7087_v48 = vld [vmem:[#allocation16_spill] sm:$0xff] }
 0x267   :  { %v1960_v39 = vmax.f32 %v1904_v0, 0.0  ;;  %v1757_v55 = vmax.f32 %v7079_v1, %v1533_v50  ;;  %v1535_v35 = vpop.f32.mrb[182].mxu0  ;;  %v7088_v1 = vld [vmem:[#allocation17_spill] sm:$0xff] }
 0x268   :  { %v1758_v13 = vmax.f32 %v7080_v2, %v1535_v35  ;;  %v1537_v4 = vpop.f32.mrb[183].mxu0  ;;  %v7089_v2 = vld [vmem:[#allocation18_spill] sm:$0xff] }
 0x269   :  { %v1842_v18 = vmax.f32 %v1756_v9, %v1757_v55  ;;  %v1759_v6 = vmax.f32 %v7081_v26, %v1537_v4  ;;  %v6170_v38 = vpack.c.bf16 %v1960_v39, %v1959_v14  ;;  %v4991_v26 = vld [vmem:[%s6999_s3 + $0x114] ss:$8 sps:$4 sm:$0xff]  }
 0x26b   :  { %v1905_v28 = vadd.f32 %v6031_v43, %v1842_v18  ;;  %v1843_v5 = vmax.f32 %v1758_v13, %v1759_v6  ;;  %v4986_v18 = vld [vmem:[%s6999_s3 + $0x100] ss:$8 sps:$4 sm:$0xff]  }
 0x26d   :  { %v1906_v20 = vadd.f32 %v6031_v43, %v1843_v5  ;;  %v1541_v7 = vpop.f32.mrb[184].mxu0  ;;  %v1961_v31 = vmax.f32 %v1905_v28, 0.0 }
 0x26e   :  { %v1542_v53 = vpop.f32.mrb[185].mxu0  ;;  %v4989_v7 = vld [vmem:[%s6999_s3 + $0x110] ss:$8 sps:$4 sm:$0xff]  }
 0x26f   :  { %v1962_v61 = vmax.f32 %v1906_v20, 0.0  ;;  %v1543_v8 = vpop.f32.mrb[186].mxu0  ;;  %v7090_v53 = vld [vmem:[#allocation19_spill] sm:$0xff] }
 0x270   :  { %v1544_v11 = vpop.f32.mrb[187].mxu0  ;;  %v4994_v8 = vld [vmem:[%s6999_s3 + $0x124] ss:$8 sps:$4 sm:$0xff]  }
 0x271   :  { %v6175_v10 = vpack.c.bf16 %v1962_v61, %v1961_v31 }
 0x275   :  { %v1547_v54 = vpop.f32.mrb[188].mxu0 }
 0x276   :  { %v1548_v16 = vpop.f32.mrb[189].mxu0 }
 0x277   :  { %v1549_v15 = vpop.f32.mrb[190].mxu0  ;;  %v7091_v16 = vld [vmem:[#allocation20_spill] sm:$0xff] }
 0x278   :  { %v1550_v41 = vpop.f32.mrb[191].mxu0 }
 0x279   :  { %v7092_v41 = vld [vmem:[#allocation21_spill] sm:$0xff] }
 0x27d   :  { %v1553_v29 = vpop.f32.mrb[192].mxu0 }
 0x27e   :  { %v1760_v63 = vmax.f32 %v7082_v58, %v1553_v29  ;;  %v1555_v19 = vpop.f32.mrb[193].mxu0 }
 0x27f   :  { %v1761_v51 = vmax.f32 %v7083_v42, %v1555_v19  ;;  %v1557_v44 = vpop.f32.mrb[194].mxu0  ;;  %v7093_v19 = vld [vmem:[#allocation22_spill] sm:$0xff] }
 0x280   :  { %v1762_v59 = vmax.f32 %v7084_v21, %v1557_v44  ;;  %v1559_v27 = vpop.f32.mrb[195].mxu0  ;;  %v4992_v44 = vld [vmem:[%s6999_s3 + $0x120] ss:$8 sps:$4 sm:$0xff]   ;;  %v4997_v21 = vld [vmem:[%s6999_s3 + $0x134] ss:$8 sps:$4 sm:$0xff]  }
 0x281   :  { %v1844_v30 = vmax.f32 %v1760_v63, %v1761_v51  ;;  %v1763_v46 = vmax.f32 %v7085_v49, %v1559_v27 }
 0x283   :  { %v1845_v33 = vmax.f32 %v1762_v59, %v1763_v46  ;;  %v1907_v23 = vadd.f32 %v6031_v43, %v1844_v30  ;;  %v4995_v46 = vld [vmem:[%s6999_s3 + $0x130] ss:$8 sps:$4 sm:$0xff]  }
 0x285   :  { %v1563_v62 = vpop.f32.mrb[196].mxu0  ;;  %v1908_v17 = vadd.f32 %v6031_v43, %v1845_v33  ;;  %v1963_v14 = vmax.f32 %v1907_v23, 0.0  ;;  %v7094_v33 = vld [vmem:[#allocation23_spill] sm:$0xff] }
 0x286   :  { %v1764_v0 = vmax.f32 %v7086_v47, %v1563_v62  ;;  %v1565_v37 = vpop.f32.mrb[197].mxu0 }
 0x287   :  { %v1765_v9 = vmax.f32 %v7087_v48, %v1565_v37  ;;  %v1567_v50 = vpop.f32.mrb[198].mxu0  ;;  %v1964_v39 = vmax.f32 %v1908_v17, 0.0  ;;  %v5001_v17 = vld [vmem:[%s6999_s3 + $0x144] ss:$8 sps:$4 sm:$0xff]   ;;  %v7095_v37 = vld [vmem:[#allocation24_spill] sm:$0xff] }
 0x288   :  { %v1766_v55 = vmax.f32 %v7088_v1, %v1567_v50  ;;  %v1569_v35 = vpop.f32.mrb[199].mxu0 }
 0x289   :  { %v1846_v52 = vmax.f32 %v1764_v0, %v1765_v9  ;;  %v1767_v13 = vmax.f32 %v7089_v2, %v1569_v35  ;;  %v6187_v4 = vpack.c.bf16 %v1964_v39, %v1963_v14  ;;  %v7096_v9 = vld [vmem:[#allocation25_spill] sm:$0xff] }
 0x28a   :  { %v5004_v2 = vld [vmem:[%s6999_s3 + $0x154] ss:$8 sps:$4 sm:$0xff]  }
 0x28b   :  { %v1909_v6 = vadd.f32 %v6031_v43, %v1846_v52  ;;  %v1847_v28 = vmax.f32 %v1766_v55, %v1767_v13  ;;  %2531 = vmatprep.mubr.bf16.mxu1 %v6187_v4  ;;  %v7097_v55 = vld [vmem:[#allocation26_spill] sm:$0xff] }
 0x28c   :  { %2532 = vmatmul.mubr.bf16.vlgmr.msra.gmra.mrb[0].mxu1 %v6060_v25  ;;  %v4999_v52 = vld [vmem:[%s6999_s3 + $0x140] ss:$8 sps:$4 sm:$0xff]  }
 0x28d   :  { %v1910_v5 = vadd.f32 %v6031_v43, %v1847_v28  ;;  %2733 = vmatpush1.bf16.msra.mxu1 %v4986_v18  ;;  %v1573_v20 = vpop.f32.mrb[200].mxu0  ;;  %v1965_v11 = vmax.f32 %v1909_v6, 0.0 }
 0x28e   :  { %v1768_v31 = vmax.f32 %v7090_v53, %v1573_v20  ;;  %v1575_v61 = vpop.f32.mrb[201].mxu0  ;;  %2734 = vmatprep.subr.bf16.mxu1 %v4991_v26  ;;  %v5033_v26 = vld [vmem:[%s7002_s6 + $0x98] sm:$0xff]   ;;  %v7098_v20 = vld [vmem:[#allocation27_spill] sm:$0xff] }
 0x28f   :  { %v1966_v54 = vmax.f32 %v1910_v5, 0.0  ;;  %v1769_v25 = vmax.f32 %v7091_v16, %v1575_v61  ;;  %v1577_v15 = vpop.f32.mrb[202].mxu0  ;;  %v5002_v5 = vld [vmem:[%s6999_s3 + $0x150] ss:$8 sps:$4 sm:$0xff]   ;;  %3700 = vmatpush1.bf16.msra.mxu0 %v5033_v26 }
 0x290   :  { %v1770_v29 = vmax.f32 %v7092_v41, %v1577_v15  ;;  %v1579_v58 = vpop.f32.mrb[203].mxu0  ;;  %3701 = vmatprep.subr.bf16.mxu0 %v7075_v12 }
 0x291   :  { %v1848_v63 = vmax.f32 %v1768_v31, %v1769_v25  ;;  %v1771_v42 = vmax.f32 %v7093_v19, %v1579_v58  ;;  %v6209_v51 = vpack.c.bf16 %v1966_v54, %v1965_v11  ;;  %2735 = vmatpush1.bf16.msra.mxu1 %v4989_v7  ;;  %v5007_v31 = vld [vmem:[%s6999_s3 + $0x164] ss:$8 sps:$4 sm:$0xff]   ;;  %v7099_v11 = vld [vmem:[#allocation28_spill] sm:$0xff]  ;;  %v7100_v25 = vld [vmem:[#allocation29_spill] sm:$0xff] }
 0x292   :  { %2736 = vmatprep.subr.bf16.mxu1 %v4994_v8 }
 0x293   :  { %v1911_v59 = vadd.f32 %v6031_v43, %v1848_v63  ;;  %v1849_v27 = vmax.f32 %v1770_v29, %v1771_v42  ;;  %2541 = vmatprep.mubr.bf16.mxu1 %v6209_v51  ;;  %v7101_v63 = vld [vmem:[#allocation30_spill] sm:$0xff] }
 0x294   :  { %2542 = vmatmul.mubr.bf16.gmra.mrb[4].mxu1 %v6075_v57  ;;  %v5005_v42 = vld [vmem:[%s6999_s3 + $0x160] ss:$8 sps:$4 sm:$0xff]  }
 0x295   :  { %v1912_v30 = vadd.f32 %v6031_v43, %v1849_v27  ;;  %v1583_v49 = vpop.f32.mrb[204].mxu0  ;;  %2737 = vmatpush1.bf16.msra.mxu1 %v4992_v44  ;;  %v1967_v47 = vmax.f32 %v1911_v59, 0.0  ;;  %v5010_v44 = vld [vmem:[%s6999_s3 + $0x174] ss:$8 sps:$4 sm:$0xff]  }
 0x296   :  { %v1772_v23 = vmax.f32 %v7094_v33, %v1583_v49  ;;  %v1585_v62 = vpop.f32.mrb[205].mxu0  ;;  %2738 = vmatprep.subr.bf16.mxu1 %v4997_v21  ;;  %v5008_v49 = vld [vmem:[%s6999_s3 + $0x170] ss:$8 sps:$4 sm:$0xff]  }
 0x297   :  { %v1968_v0 = vmax.f32 %v1912_v30, 0.0  ;;  %v1773_v57 = vmax.f32 %v7095_v37, %v1585_v62  ;;  %v1587_v48 = vpop.f32.mrb[206].mxu0  ;;  %v5013_v62 = vld [vmem:[%s6999_s3 + $0x184] ss:$8 sps:$4 sm:$0xff]  }
 0x298   :  { %v1774_v50 = vmax.f32 %v7096_v9, %v1587_v48  ;;  %v1589_v14 = vpop.f32.mrb[207].mxu0  ;;  %v7104_v48 = vld [vmem:[#allocation33_spill] sm:$0xff] }
 0x299   :  { %v6230_v39 = vpack.c.bf16 %v1968_v0, %v1967_v47  ;;  %v1850_v1 = vmax.f32 %v1772_v23, %v1773_v57  ;;  %v1775_v35 = vmax.f32 %v7097_v55, %v1589_v14  ;;  %2739 = vmatpush1.bf16.msra.mxu1 %v4995_v46  ;;  %v7102_v46 = vld [vmem:[#allocation31_spill] sm:$0xff]  ;;  %v7103_v0 = vld [vmem:[#allocation32_spill] sm:$0xff]  ;;  %v7105_v55 = vld [vmem:[#allocation34_spill] sm:$0xff] }
 0x29a   :  { %2740 = vmatprep.subr.bf16.mxu1 %v5001_v17 }
 0x29b   :  { %v1913_v13 = vadd.f32 %v6031_v43, %v1850_v1  ;;  %v1851_v18 = vmax.f32 %v1774_v50, %v1775_v35  ;;  %2551 = vmatprep.mubr.bf16.mxu1 %v6230_v39 }
 0x29c   :  { %2552 = vmatmul.mubr.bf16.gmra.mrb[8].mxu1 %v6083_v22 }
 0x29d   :  { %v1914_v6 = vadd.f32 %v6031_v43, %v1851_v18  ;;  %v1593_v28 = vpop.f32.mrb[208].mxu0  ;;  %2741 = vmatpush1.bf16.msra.mxu1 %v4999_v52  ;;  %v1969_v61 = vmax.f32 %v1913_v13, 0.0  ;;  %v5011_v52 = vld [vmem:[%s6999_s3 + $0x180] ss:$8 sps:$4 sm:$0xff]  }
 0x29e   :  { %v1776_v7 = vmax.f32 %v7098_v20, %v1593_v28  ;;  %v1595_v53 = vpop.f32.mrb[209].mxu0  ;;  %2742 = vmatprep.subr.bf16.mxu1 %v5004_v2  ;;  %v5017_v2 = vld [vmem:[%s6999_s3 + $0x194] ss:$8 sps:$4 sm:$0xff]   ;;  %v5015_v28 = vld [vmem:[%s6999_s3 + $0x190] ss:$8 sps:$4 sm:$0xff]  }
 0x29f   :  { %v1970_v8 = vmax.f32 %v1914_v6, 0.0  ;;  %v1777_v54 = vmax.f32 %v7099_v11, %v1595_v53  ;;  %v1597_v16 = vpop.f32.mrb[210].mxu0  ;;  %v5020_v53 = vld [vmem:[%s6999_s3 + $0x1a4] ss:$8 sps:$4 sm:$0xff]  }
 0x2a0   :  { %v1778_v15 = vmax.f32 %v7100_v25, %v1597_v16  ;;  %v1599_v41 = vpop.f32.mrb[211].mxu0  ;;  %v7108_v16 = vld [vmem:[#allocation37_spill] sm:$0xff] }
 0x2a1   :  { %v6256_v29 = vpack.c.bf16 %v1970_v8, %v1969_v61  ;;  %v1852_v58 = vmax.f32 %v1776_v7, %v1777_v54  ;;  %v1779_v19 = vmax.f32 %v7101_v63, %v1599_v41  ;;  %2743 = vmatpush1.bf16.msra.mxu1 %v5002_v5  ;;  %v7106_v5 = vld [vmem:[#allocation35_spill] sm:$0xff]  ;;  %v7107_v8 = vld [vmem:[#allocation36_spill] sm:$0xff]  ;;  %v7109_v63 = vld [vmem:[#allocation38_spill] sm:$0xff] }
 0x2a2   :  { %2744 = vmatprep.subr.bf16.mxu1 %v5007_v31 }
 0x2a3   :  { %v1915_v21 = vadd.f32 %v6031_v43, %v1852_v58  ;;  %v1853_v59 = vmax.f32 %v1778_v15, %v1779_v19  ;;  %2561 = vmatprep.mubr.bf16.mxu1 %v6256_v29 }
 0x2a4   :  { %2562 = vmatmul.mubr.bf16.gmra.mrb[12].mxu1 %v6091_v24 }
 0x2a5   :  { %v1916_v27 = vadd.f32 %v6031_v43, %v1853_v59  ;;  %v1603_v30 = vpop.f32.mrb[212].mxu0  ;;  %2745 = vmatpush1.bf16.msra.mxu1 %v5005_v42  ;;  %v1971_v17 = vmax.f32 %v1915_v21, 0.0  ;;  %v5018_v42 = vld [vmem:[%s6999_s3 + $0x1a0] ss:$8 sps:$4 sm:$0xff]  }
 0x2a6   :  { %v1780_v33 = vmax.f32 %v7102_v46, %v1603_v30  ;;  %v1605_v23 = vpop.f32.mrb[213].mxu0  ;;  %2746 = vmatprep.subr.bf16.mxu1 %v5010_v44  ;;  %v5023_v44 = vld [vmem:[%s6999_s3 + $0x1b4] ss:$8 sps:$4 sm:$0xff]   ;;  %v7110_v46 = vld [vmem:[#allocation39_spill] sm:$0xff] }
 0x2a7   :  { %v1972_v47 = vmax.f32 %v1916_v27, 0.0  ;;  %v1781_v37 = vmax.f32 %v7103_v0, %v1605_v23  ;;  %v1607_v57 = vpop.f32.mrb[214].mxu0  ;;  %v7111_v0 = vld [vmem:[#allocation40_spill] sm:$0xff] }
 0x2a8   :  { %v1782_v9 = vmax.f32 %v7104_v48, %v1607_v57  ;;  %v1609_v50 = vpop.f32.mrb[215].mxu0  ;;  %v7112_v48 = vld [vmem:[#allocation41_spill] sm:$0xff] }
 0x2a9   :  { %v6278_v14 = vpack.c.bf16 %v1972_v47, %v1971_v17  ;;  %v1854_v1 = vmax.f32 %v1780_v33, %v1781_v37  ;;  %v1783_v35 = vmax.f32 %v7105_v55, %v1609_v50  ;;  %2747 = vmatpush1.bf16.msra.mxu1 %v5008_v49  ;;  %v5021_v49 = vld [vmem:[%s6999_s3 + $0x1b0] ss:$8 sps:$4 sm:$0xff]  }
 0x2aa   :  { %2748 = vmatprep.subr.bf16.mxu1 %v5013_v62  ;;  %v5026_v62 = vld [vmem:[%s6999_s3 + $0x1c4] ss:$8 sps:$4 sm:$0xff]  }
 0x2ab   :  { %v1917_v13 = vadd.f32 %v6031_v43, %v1854_v1  ;;  %v1855_v18 = vmax.f32 %v1782_v9, %v1783_v35  ;;  %2571 = vmatprep.mubr.bf16.mxu1 %v6278_v14  ;;  %v7113_v35 = vld [vmem:[#allocation42_spill] sm:$0xff] }
 0x2ac   :  { %2572 = vmatmul.mubr.bf16.gmra.mrb[16].mxu1 %v6098_v40 }
 0x2ad   :  { %v1918_v26 = vadd.f32 %v6031_v43, %v1855_v18  ;;  %v1613_v6 = vpop.f32.mrb[216].mxu0  ;;  %2749 = vmatpush1.bf16.msra.mxu1 %v5011_v52  ;;  %v1973_v31 = vmax.f32 %v1917_v13, 0.0  ;;  %v5029_v13 = vld [vmem:[%s6999_s3 + $0x1d4] ss:$8 sps:$4 sm:$0xff]  }
 0x2ae   :  { %v1784_v20 = vmax.f32 %v7106_v5, %v1613_v6  ;;  %v1615_v7 = vpop.f32.mrb[217].mxu0  ;;  %2750 = vmatprep.subr.bf16.mxu1 %v5017_v2  ;;  %v5024_v2 = vld [vmem:[%s6999_s3 + $0x1c0] ss:$8 sps:$4 sm:$0xff]   ;;  %v5027_v5 = vld [vmem:[%s6999_s3 + $0x1d0] ss:$8 sps:$4 sm:$0xff]  }
 0x2af   :  { %v1974_v61 = vmax.f32 %v1918_v26, 0.0  ;;  %v1785_v11 = vmax.f32 %v7107_v8, %v1615_v7  ;;  %v1617_v54 = vpop.f32.mrb[218].mxu0 }
 0x2b0   :  { %v1786_v25 = vmax.f32 %v7108_v16, %v1617_v54  ;;  %v1619_v15 = vpop.f32.mrb[219].mxu0 }
 0x2b1   :  { %v6300_v41 = vpack.c.bf16 %v1974_v61, %v1973_v31  ;;  %v1856_v58 = vmax.f32 %v1784_v20, %v1785_v11  ;;  %v1787_v19 = vmax.f32 %v7109_v63, %v1619_v15  ;;  %2751 = vmatpush1.bf16.msra.mxu1 %v5015_v28  ;;  %v7114_v20 = vld [vmem:[#allocation43_spill] sm:$0xff]  ;;  %v7115_v11 = vld [vmem:[#allocation44_spill] sm:$0xff] }
 0x2b2   :  { %2752 = vmatprep.subr.bf16.mxu1 %v5020_v53  ;;  %v5032_v31 = vld [vmem:[%s6999_s3 + $0x1e4] ss:$8 sps:$4 sm:$0xff]  }
 0x2b3   :  { %v1919_v21 = vadd.f32 %v6031_v43, %v1856_v58  ;;  %v1857_v59 = vmax.f32 %v1786_v25, %v1787_v19  ;;  %2581 = vmatprep.mubr.bf16.mxu1 %v6300_v41  ;;  %v7116_v25 = vld [vmem:[#allocation45_spill] sm:$0xff] }
 0x2b4   :  { %2582 = vmatmul.mubr.bf16.gmra.mrb[20].mxu1 %v6106_v32 }
 0x2b5   :  { %v1920_v27 = vadd.f32 %v6031_v43, %v1857_v59  ;;  %v1623_v30 = vpop.f32.mrb[220].mxu0  ;;  %2753 = vmatpush1.bf16.msra.mxu1 %v5018_v42  ;;  %v1975_v17 = vmax.f32 %v1919_v21, 0.0  ;;  %v7117_v42 = vld [vmem:[#allocation46_spill] sm:$0xff]  ;;  %v5036_v59 = vld [vmem:[%s6999_s3 + $0x1f4] ss:$8 sps:$4 sm:$0xff]  }
 0x2b6   :  { %v1788_v33 = vmax.f32 %v7110_v46, %v1623_v30  ;;  %v1625_v23 = vpop.f32.mrb[221].mxu0  ;;  %2754 = vmatprep.subr.bf16.mxu1 %v5023_v44  ;;  %v5030_v21 = vld [vmem:[%s6999_s3 + $0x1e0] ss:$8 sps:$4 sm:$0xff]  }
 0x2b7   :  { %v1976_v47 = vmax.f32 %v1920_v27, 0.0  ;;  %v1789_v37 = vmax.f32 %v7111_v0, %v1625_v23  ;;  %v1627_v57 = vpop.f32.mrb[222].mxu0  ;;  %v7118_v23 = vld [vmem:[#allocation47_spill] sm:$0xff] }
 0x2b8   :  { %v1790_v9 = vmax.f32 %v7112_v48, %v1627_v57  ;;  %v1629_v50 = vpop.f32.mrb[223].mxu0  ;;  %v7119_v57 = vld [vmem:[#allocation48_spill] sm:$0xff] }
 0x2b9   :  { %v6322_v1 = vpack.c.bf16 %v1976_v47, %v1975_v17  ;;  %v1858_v55 = vmax.f32 %v1788_v33, %v1789_v37  ;;  %v1791_v52 = vmax.f32 %v7113_v35, %v1629_v50  ;;  %2755 = vmatpush1.bf16.msra.mxu1 %v5021_v49  ;;  %v5034_v33 = vld [vmem:[%s6999_s3 + $0x1f0] ss:$8 sps:$4 sm:$0xff]   ;;  %v5039_v47 = vld [vmem:[%s6999_s3 + $0x204] ss:$8 sps:$4 sm:$0xff]  }
 0x2ba   :  { %2756 = vmatprep.subr.bf16.mxu1 %v5026_v62  ;;  %v7120_v50 = vld [vmem:[#allocation49_spill] sm:$0xff] }
 0x2bb   :  { %v1921_v18 = vadd.f32 %v6031_v43, %v1858_v55  ;;  %v1859_v26 = vmax.f32 %v1790_v9, %v1791_v52  ;;  %2591 = vmatprep.mubr.bf16.mxu1 %v6322_v1 }
 0x2bc   :  { %2592 = vmatmul.mubr.bf16.gmra.mrb[24].mxu1 %v6118_v36 }
 0x2bd   :  { %v1922_v6 = vadd.f32 %v6031_v43, %v1859_v26  ;;  %v1633_v28 = vpop.f32.mrb[224].mxu0  ;;  %2757 = vmatpush1.bf16.msra.mxu1 %v5024_v2  ;;  %v1977_v61 = vmax.f32 %v1921_v18, 0.0 }
 0x2be   :  { %v1792_v7 = vmax.f32 %v7114_v20, %v1633_v28  ;;  %v1635_v53 = vpop.f32.mrb[225].mxu0  ;;  %2758 = vmatprep.subr.bf16.mxu1 %v5029_v13  ;;  %v7121_v13 = vld [vmem:[#allocation50_spill] sm:$0xff]  ;;  %v7122_v20 = vld [vmem:[#allocation51_spill] sm:$0xff] }
 0x2bf   :  { %v1978_v8 = vmax.f32 %v1922_v6, 0.0  ;;  %v1793_v54 = vmax.f32 %v7115_v11, %v1635_v53  ;;  %v1637_v16 = vpop.f32.mrb[226].mxu0 }
 0x2c0   :  { %v1794_v15 = vmax.f32 %v7116_v25, %v1637_v16  ;;  %v1639_v58 = vpop.f32.mrb[227].mxu0  ;;  %v7124_v16 = vld [vmem:[#allocation53_spill] sm:$0xff] }
 0x2c1   :  { %v6344_v63 = vpack.c.bf16 %v1978_v8, %v1977_v61  ;;  %v1860_v19 = vmax.f32 %v1792_v7, %v1793_v54  ;;  %v1795_v44 = vmax.f32 %v7117_v42, %v1639_v58  ;;  %2759 = vmatpush1.bf16.msra.mxu1 %v5027_v5  ;;  %v7123_v8 = vld [vmem:[#allocation52_spill] sm:$0xff]  ;;  %v7125_v42 = vld [vmem:[#allocation54_spill] sm:$0xff] }
 0x2c2   :  { %2760 = vmatprep.subr.bf16.mxu1 %v5032_v31 }
 0x2c3   :  { %v1923_v27 = vadd.f32 %v6031_v43, %v1860_v19  ;;  %v1861_v30 = vmax.f32 %v1794_v15, %v1795_v44  ;;  %2601 = vmatprep.mubr.bf16.mxu1 %v6344_v63 }
 0x2c4   :  { %2602 = vmatmul.mubr.bf16.gmra.mrb[28].mxu1 %v6126_v3 }
 0x2c5   :  { %v1924_v49 = vadd.f32 %v6031_v43, %v1861_v30  ;;  %v1643_v46 = vpop.f32.mrb[228].mxu0  ;;  %2761 = vmatpush1.bf16.msra.mxu1 %v5030_v21  ;;  %v1979_v0 = vmax.f32 %v1923_v27, 0.0 }
 0x2c6   :  { %v1796_v62 = vmax.f32 %v7118_v23, %v1643_v46  ;;  %v1645_v17 = vpop.f32.mrb[229].mxu0  ;;  %2762 = vmatprep.subr.bf16.mxu1 %v5036_v59  ;;  %v7126_v46 = vld [vmem:[#allocation55_spill] sm:$0xff] }
 0x2c7   :  { %v1980_v37 = vmax.f32 %v1924_v49, 0.0  ;;  %v1797_v48 = vmax.f32 %v7119_v57, %v1645_v17  ;;  %v1647_v9 = vpop.f32.mrb[230].mxu0  ;;  %v5046_v49 = vld [vmem:[%s7002_s6 + $0xa0] sm:$0xff]   ;;  %v7128_v57 = vld [vmem:[#allocation57_spill] sm:$0xff] }
 0x2c8   :  { %v1798_v55 = vmax.f32 %v7120_v50, %v1647_v9  ;;  %v1649_v35 = vpop.f32.mrb[231].mxu0  ;;  %3702 = vmatpush1.bf16.msra.mxu0 %v5046_v49 }
 0x2c9   :  { %v6366_v52 = vpack.c.bf16 %v1980_v37, %v1979_v0  ;;  %v1862_v2 = vmax.f32 %v1796_v62, %v1797_v48  ;;  %v1799_v18 = vmax.f32 %v7121_v13, %v1649_v35  ;;  %2763 = vmatpush1.bf16.msra.mxu1 %v5034_v33  ;;  %3703 = vmatprep.subr.bf16.mxu0 %v7075_v12 }
 0x2ca   :  { %2965 = vmatprep.subr.bf16.mxu1 %v5039_v47  ;;  %v7127_v47 = vld [vmem:[#allocation56_spill] sm:$0xff] }
 0x2cb   :  { %v1925_v26 = vadd.f32 %v6031_v43, %v1862_v2  ;;  %v1863_v6 = vmax.f32 %v1798_v55, %v1799_v18  ;;  %2611 = vmatprep.mubr.bf16.mxu1 %v6366_v52  ;;  %v7129_v55 = vld [vmem:[#allocation58_spill] sm:$0xff] }
 0x2cc   :  { %2612 = vmatmul.mubr.bf16.gmra.mrb[32].mxu1 %v6134_v34 }
 0x2cd   :  { %v1926_v28 = vadd.f32 %v6031_v43, %v1863_v6  ;;  %v1653_v5 = vpop.f32.mrb[232].mxu0  ;;  %v1981_v31 = vmax.f32 %v1925_v26, 0.0 }
 0x2ce   :  { %v1800_v7 = vmax.f32 %v7122_v20, %v1653_v5  ;;  %v1655_v53 = vpop.f32.mrb[233].mxu0 }
 0x2cf   :  { %v1982_v61 = vmax.f32 %v1926_v28, 0.0  ;;  %v1801_v11 = vmax.f32 %v7123_v8, %v1655_v53  ;;  %v1657_v54 = vpop.f32.mrb[234].mxu0  ;;  %v7130_v28 = vld [vmem:[#allocation59_spill] sm:$0xff] }
 0x2d0   :  { %v1802_v25 = vmax.f32 %v7124_v16, %v1657_v54  ;;  %v1659_v15 = vpop.f32.mrb[235].mxu0 }
 0x2d1   :  { %v6376_v58 = vpack.c.bf16 %v1982_v61, %v1981_v31  ;;  %v1864_v19 = vmax.f32 %v1800_v7, %v1801_v11  ;;  %v1803_v44 = vmax.f32 %v7125_v42, %v1659_v15  ;;  %v7131_v31 = vld [vmem:[#allocation60_spill] sm:$0xff]  ;;  %v7132_v11 = vld [vmem:[#allocation61_spill] sm:$0xff]  ;;  %v7133_v15 = vld [vmem:[#allocation62_spill] sm:$0xff] }
 0x2d3   :  { %v1927_v21 = vadd.f32 %v6031_v43, %v1864_v19  ;;  %v1865_v59 = vmax.f32 %v1802_v25, %v1803_v44  ;;  %2621 = vmatprep.mubr.bf16.mxu1 %v6376_v58 }
 0x2d4   :  { %2622 = vmatmul.mubr.bf16.gmra.mrb[36].mxu1 %v6142_v45 }
 0x2d5   :  { %v1928_v27 = vadd.f32 %v6031_v43, %v1865_v59  ;;  %v1663_v30 = vpop.f32.mrb[236].mxu0  ;;  %2631 = vmatprep.mubr.bf16.mxu1 %v6083_v22  ;;  %v1983_v62 = vmax.f32 %v1927_v21, 0.0 }
 0x2d6   :  { %v1804_v33 = vmax.f32 %v7126_v46, %v1663_v30  ;;  %v1665_v23 = vpop.f32.mrb[237].mxu0 }
 0x2d7   :  { %v1984_v17 = vmax.f32 %v1928_v27, 0.0  ;;  %v1805_v0 = vmax.f32 %v7127_v47, %v1665_v23  ;;  %v1667_v37 = vpop.f32.mrb[238].mxu0  ;;  %v7134_v27 = vld [vmem:[#allocation63_spill] sm:$0xff]  ;;  %v7135_v23 = vld [vmem:[#allocation64_spill] sm:$0xff]  ;;  %v7136_v47 = vld [vmem:[#allocation65_spill] sm:$0xff] }
 0x2d8   :  { %v1806_v48 = vmax.f32 %v7128_v57, %v1667_v37  ;;  %v1669_v9 = vpop.f32.mrb[239].mxu0 }
 0x2d9   :  { %v1866_v50 = vmax.f32 %v1804_v33, %v1805_v0  ;;  %v1807_v35 = vmax.f32 %v7129_v55, %v1669_v9  ;;  %v6392_v2 = vpack.c.bf16 %v1984_v17, %v1983_v62 }
 0x2db   :  { %v1929_v13 = vadd.f32 %v6031_v43, %v1866_v50  ;;  %v1867_v18 = vmax.f32 %v1806_v48, %v1807_v35  ;;  %v7137_v48 = vld [vmem:[#allocation66_spill] sm:$0xff] }
 0x2dc   :  { %2632 = vmatmul.mubr.bf16.gmra.mrb[40].mxu1 %v6187_v4 }
 0x2dd   :  { %v1930_v26 = vadd.f32 %v6031_v43, %v1867_v18  ;;  %v1673_v6 = vpop.f32.mrb[240].mxu0  ;;  %2641 = vmatprep.mubr.bf16.mxu1 %v6091_v24  ;;  %v1985_v7 = vmax.f32 %v1929_v13, 0.0  ;;  %v5126_v43 = vld [vmem:[%s6998_s2] ss:$0 sm:$0xff] }
 0x2de   :  { %v1808_v5 = vmax.f32 %v7130_v28, %v1673_v6  ;;  %v1675_v20 = vpop.f32.mrb[241].mxu0  ;;  %v5053_v6 = vld [vmem:[%s7002_s6 + $0xa8] sm:$0xff]  }
 0x2df   :  { %v1986_v53 = vmax.f32 %v1930_v26, 0.0  ;;  %v1809_v61 = vmax.f32 %v7131_v31, %v1675_v20  ;;  %v1677_v8 = vpop.f32.mrb[242].mxu0  ;;  %3704 = vmatpush1.bf16.msra.mxu0 %v5053_v6  ;;  %v5037_v28 = vld [vmem:[%s6999_s3 + $0x200] ss:$8 sps:$4 sm:$0xff]   ;;  %v5040_v20 = vld [vmem:[%s6999_s3 + $0x210] ss:$8 sps:$4 sm:$0xff]  }
 0x2e0   :  { %v1810_v54 = vmax.f32 %v7132_v11, %v1677_v8  ;;  %v1679_v16 = vpop.f32.mrb[243].mxu0  ;;  %3705 = vmatprep.subr.bf16.mxu0 %v7075_v12  ;;  %v5047_v31 = vld [vmem:[%s6999_s3 + $0x230] ss:$8 sps:$4 sm:$0xff]   ;;  %v5050_v8 = vld [vmem:[%s6999_s3 + $0x240] ss:$8 sps:$4 sm:$0xff]  }
 0x2e1   :  { %v1868_v25 = vmax.f32 %v1808_v5, %v1809_v61  ;;  %v1811_v19 = vmax.f32 %v7133_v15, %v1679_v16  ;;  %v6402_v4 = vpack.c.bf16 %v1986_v53, %v1985_v7  ;;  %v5042_v5 = vld [vmem:[%s6999_s3 + $0x214] ss:$8 sps:$4 sm:$0xff]   ;;  %v5045_v7 = vld [vmem:[%s6999_s3 + $0x224] ss:$8 sps:$4 sm:$0xff]   ;;  %v5043_v53 = vld [vmem:[%s6999_s3 + $0x220] ss:$8 sps:$4 sm:$0xff]  }
 0x2e2   :  { %v5052_v61 = vld [vmem:[%s6999_s3 + $0x244] ss:$8 sps:$4 sm:$0xff]   ;;  %v5054_v11 = vld [vmem:[%s6999_s3 + $0x250] ss:$8 sps:$4 sm:$0xff]   ;;  %v5057_v16 = vld [vmem:[%s6999_s3 + $0x260] ss:$8 sps:$4 sm:$0xff]  }
 0x2e3   :  { %v1931_v42 = vadd.f32 %v5126_v43, %v1868_v25  ;;  %v1869_v44 = vmax.f32 %v1810_v54, %v1811_v19  ;;  %v5059_v54 = vld [vmem:[%s6999_s3 + $0x264] ss:$8 sps:$4 sm:$0xff]   ;;  %v5062_v25 = vld [vmem:[%s6999_s3 + $0x274] ss:$8 sps:$4 sm:$0xff]   ;;  %v5060_v19 = vld [vmem:[%s6999_s3 + $0x270] ss:$8 sps:$4 sm:$0xff]  }
 0x2e4   :  { %2642 = vmatmul.mubr.bf16.gmra.mrb[44].mxu1 %v6209_v51  ;;  %v5063_v15 = vld [vmem:[%s7002_s6 + $0xb0] sm:$0xff]  }
 0x2e5   :  { %v1932_v21 = vadd.f32 %v5126_v43, %v1869_v44  ;;  %v1683_v59 = vpop.f32.mrb[244].mxu0  ;;  %2651 = vmatprep.mubr.bf16.mxu1 %v6098_v40  ;;  %v1987_v46 = vmax.f32 %v1931_v42, 0.0  ;;  %3706 = vmatpush1.bf16.msra.mxu0 %v5063_v15  ;;  %v5070_v42 = vld [vmem:[%s7002_s6 + $0xb8] sm:$0xff]   ;;  %v5066_v44 = vld [vmem:[%s7002_s6 + $0x48] sm:$0xff]  }
 0x2e6   :  { %v1812_v30 = vmax.f32 %v7134_v27, %v1683_v59  ;;  %v1685_v49 = vpop.f32.mrb[245].mxu0  ;;  %3707 = vmatprep.subr.bf16.mxu0 %v7075_v12  ;;  %v5068_v59 = vld [vmem:[%s7002_s6 + $0x50] sm:$0xff]  }
 0x2e7   :  { %v1988_v33 = vmax.f32 %v1932_v21, 0.0  ;;  %v1813_v62 = vmax.f32 %v7135_v23, %v1685_v49  ;;  %v1687_v17 = vpop.f32.mrb[246].mxu0  ;;  %v5067_v21 = vld [vmem:[%s7002_s6 + $0x8] sm:$0xff]   ;;  %v5069_v27 = vld [vmem:[%s7002_s6 + $0x10] sm:$0xff]   ;;  %v5073_v49 = vld [vmem:[%s7002_s6 + $0x60] sm:$0xff]  }
 0x2e8   :  { %v1814_v0 = vmax.f32 %v7136_v47, %v1687_v17  ;;  %v1689_v37 = vpop.f32.mrb[247].mxu0  ;;  %v5084_v23 = vld [vmem:[%s6996_s0 + $0x3e0] ss:$8 sps:$4 sm:$0xff]   ;;  %v5078_v17 = vld [vmem:[%s7002_s6 + $0x70] sm:$0xff]   ;;  %v5080_v47 = vld [vmem:[%s7002_s6 + $0x78] sm:$0xff]  }
 0x2e9   :  { %v1870_v57 = vmax.f32 %v1812_v30, %v1813_v62  ;;  %v1815_v9 = vmax.f32 %v7137_v48, %v1689_v37  ;;  %v6413_v50 = vpack.c.bf16 %v1988_v33, %v1987_v46  ;;  %3708 = vmatpush1.bf16.msra.mxu0 %v5070_v42  ;;  %v5072_v30 = vld [vmem:[%s7002_s6 + $0x18] sm:$0xff]   ;;  %v5074_v46 = vld [vmem:[%s7002_s6 + $0x20] sm:$0xff]   ;;  %v5076_v62 = vld [vmem:[%s7002_s6 + $0x28] sm:$0xff]  }
 0x2ea   :  { %3709 = vmatprep.subr.bf16.mxu0 %v7075_v12  ;;  %v5082_v33 = vld [vmem:[%s6996_s0 + $0x3e4] ss:$8 sps:$4 sm:$0xff]   ;;  %v5087_v37 = vld [vmem:[%s6996_s0 + $0x3f0] ss:$8 sps:$4 sm:$0xff]  }
 0x2eb   :  { %v1933_v51 = vadd.f32 %v5126_v43, %v1870_v57  ;;  %v1871_v55 = vmax.f32 %v1814_v0, %v1815_v9  ;;  %4297 = vmatprep.mubr.msk.bf16.mxu0 %vm870_vm0, %v5082_v33  ;;  %v5085_v0 = vld [vmem:[%s6996_s0 + $0x3f4] ss:$8 sps:$4 sm:$0xff]   ;;  %v5091_v48 = vld [vmem:[%s7001_s5 + $0x8] ss:$16 sps:$4 sm:$0xff]  }
 0x2ec   :  { %2652 = vmatmul.mubr.bf16.gmra.mrb[48].mxu1 %v6230_v39  ;;  %1692 = vmatmul.mubr.bf16.gmra.mrb[248].mxu0 %v5084_v23  ;;  %v5081_v57 = vld [vmem:[%s7002_s6 + $0x38] sm:$0xff]   ;;  %v5115_v23 = vld [vmem:[%s7004_s8 + $0x28] sm:$0xff]  }
 0x2ed   :  { %v1934_v35 = vadd.f32 %v5126_v43, %v1871_v55  ;;  %2661 = vmatprep.mubr.bf16.mxu1 %v6106_v32  ;;  %v1989_v13 = vmax.f32 %v1933_v51, 0.0  ;;  %v5064_v43 = vld [vmem:[%s7002_s6 + $0x40] sm:$0xff]   ;;  %4298 = vmatprep.mubr.msk.bf16.mxu0 %vm870_vm0, %v5085_v0  ;;  %v5099_v9 = vld [vmem:[%s7001_s5 + $0x2c] ss:$16 sps:$4 sm:$0xff]   ;;  %v5103_v55 = vld [vmem:[%s7001_s5 + $0x48] ss:$16 sps:$4 sm:$0xff]  }
 0x2ee   :  { %v5105_v51 = vld [vmem:[%s7001_s5 + $0x4c] ss:$16 sps:$4 sm:$0xff]  }
 0x2ef   :  { %v1990_v18 = vmax.f32 %v1934_v35, 0.0 }
 0x2f1   :  { %v6417_v26 = vpack.c.bf16 %v1990_v18, %v1989_v13 }
 0x2f4   :  { %2662 = vmatmul.mubr.bf16.gmra.mrb[52].mxu1 %v6256_v29  ;;  %1698 = vmatmul.mubr.bf16.gmra.mrb[252].mxu0 %v5087_v37  ;;  %v5116_v37 = vld [vmem:[%s7004_s8 + $0x30] sm:$0xff]  }
 0x2f5   :  { %2671 = vmatprep.mubr.bf16.mxu1 %v6118_v36 }
 0x2fc   :  { %2672 = vmatmul.mubr.bf16.gmra.mrb[56].mxu1 %v6278_v14 }
 0x2fd   :  { %2681 = vmatprep.mubr.bf16.mxu1 %v6126_v3 }
 0x304   :  { %2682 = vmatmul.mubr.bf16.gmra.mrb[60].mxu1 %v6300_v41 }
 0x305   :  { %2691 = vmatprep.mubr.bf16.mxu1 %v6134_v34 }
 0x30c   :  { %2692 = vmatmul.mubr.bf16.gmra.mrb[64].mxu1 %v6322_v1 }
 0x30d   :  { %2701 = vmatprep.mubr.bf16.mxu1 %v6142_v45 }
 0x314   :  { %2702 = vmatmul.mubr.bf16.gmra.mrb[68].mxu1 %v6344_v63 }
 0x315   :  { %2711 = vmatprep.mubr.bf16.mxu1 %v6150_v56 }
 0x31c   :  { %2712 = vmatmul.mubr.bf16.gmra.mrb[72].mxu1 %v6366_v52 }
 0x31d   :  { %2721 = vmatprep.mubr.bf16.mxu1 %v6158_v60 }
 0x324   :  { %2722 = vmatmul.mubr.bf16.gmra.mrb[76].mxu1 %v6376_v58 }
 0x325   :  { %2764 = vmatprep.mubr.bf16.mxu1 %v6230_v39 }
 0x32c   :  { %2765 = vmatmul.mubr.bf16.vlgmr.msra.gmra.mrb[0].mxu1 %v6083_v22  ;;  %v5049_v22 = vld [vmem:[%s6999_s3 + $0x234] ss:$8 sps:$4 sm:$0xff]  }
 0x32d   :  { %2966 = vmatpush1.bf16.msra.mxu1 %v5037_v28  ;;  %2774 = vmatprep.mubr.bf16.mxu1 %v6256_v29 }
 0x32e   :  { %2967 = vmatprep.subr.bf16.mxu1 %v5042_v5 }
 0x331   :  { %2968 = vmatpush1.bf16.msra.mxu1 %v5040_v20 }
 0x332   :  { %2969 = vmatprep.subr.bf16.mxu1 %v5045_v7 }
 0x334   :  { %2775 = vmatmul.mubr.bf16.gmra.mrb[4].mxu1 %v6091_v24  ;;  %v5056_v24 = vld [vmem:[%s6999_s3 + $0x254] ss:$8 sps:$4 sm:$0xff]  }
 0x335   :  { %2784 = vmatprep.mubr.bf16.mxu1 %v6278_v14  ;;  %2970 = vmatpush1.bf16.msra.mxu1 %v5043_v53 }
 0x336   :  { %2971 = vmatprep.subr.bf16.mxu1 %v5049_v22 }
 0x339   :  { %2972 = vmatpush1.bf16.msra.mxu1 %v5047_v31  ;;  %v5110_v31 = vld [vmem:[%s7004_s8] sm:$0xff]  }
 0x33a   :  { %2973 = vmatprep.subr.bf16.mxu1 %v5052_v61 }
 0x33c   :  { %2785 = vmatmul.mubr.bf16.gmra.mrb[8].mxu1 %v6098_v40 }
 0x33d   :  { %2794 = vmatprep.mubr.bf16.mxu1 %v6300_v41  ;;  %2974 = vmatpush1.bf16.msra.mxu1 %v5050_v8 }
 0x33e   :  { %2975 = vmatprep.subr.bf16.mxu1 %v5056_v24 }
 0x341   :  { %2976 = vmatpush1.bf16.msra.mxu1 %v5054_v11  ;;  %v5111_v11 = vld [vmem:[%s7004_s8 + $0x8] sm:$0xff]  }
 0x342   :  { %2977 = vmatprep.subr.bf16.mxu1 %v5059_v54 }
 0x344   :  { %2795 = vmatmul.mubr.bf16.gmra.mrb[12].mxu1 %v6106_v32 }
 0x345   :  { %2804 = vmatprep.mubr.bf16.mxu1 %v6322_v1  ;;  %2978 = vmatpush1.bf16.msra.mxu1 %v5057_v16 }
 0x346   :  { %2979 = vmatprep.subr.bf16.mxu1 %v5062_v25 }
 0x349   :  { %2980 = vmatpush1.bf16.msra.mxu1 %v5060_v19 }
 0x34a   :  { %4445 = vmatprep.subr.bf16.mxu1 %v5064_v43  ;;  %v5112_v43 = vld [vmem:[%s7004_s8 + $0x10] sm:$0xff]  }
 0x34c   :  { %2805 = vmatmul.mubr.bf16.gmra.mrb[16].mxu1 %v6118_v36 }
 0x34d   :  { %2814 = vmatprep.mubr.bf16.mxu1 %v6344_v63 }
 0x354   :  { %2815 = vmatmul.mubr.bf16.gmra.mrb[20].mxu1 %v6126_v3 }
 0x355   :  { %2824 = vmatprep.mubr.bf16.mxu1 %v6366_v52 }
 0x35c   :  { %2825 = vmatmul.mubr.bf16.gmra.mrb[24].mxu1 %v6134_v34 }
 0x35d   :  { %2834 = vmatprep.mubr.bf16.mxu1 %v6376_v58 }
 0x364   :  { %2835 = vmatmul.mubr.bf16.gmra.mrb[28].mxu1 %v6142_v45 }
 0x365   :  { %2844 = vmatprep.mubr.bf16.mxu1 %v6392_v2 }
 0x36c   :  { %2845 = vmatmul.mubr.bf16.gmra.mrb[32].mxu1 %v6150_v56 }
 0x36d   :  { %2854 = vmatprep.mubr.bf16.mxu1 %v6402_v4 }
 0x374   :  { %2855 = vmatmul.mubr.bf16.gmra.mrb[36].mxu1 %v6158_v60 }
 0x375   :  { %2864 = vmatprep.mubr.bf16.mxu1 %v6098_v40 }
 0x37c   :  { %2865 = vmatmul.mubr.bf16.gmra.mrb[40].mxu1 %v6230_v39  ;;  %v5077_v39 = vld [vmem:[%s7002_s6 + $0xc0] sm:$0xff]  }
 0x37d   :  { %2874 = vmatprep.mubr.bf16.mxu1 %v6106_v32  ;;  %3710 = vmatpush1.bf16.msra.mxu0 %v5077_v39 }
 0x384   :  { %2875 = vmatmul.mubr.bf16.gmra.mrb[44].mxu1 %v6256_v29  ;;  %v5065_v29 = vld [vmem:[%s7002_s6] sm:$0xff]  }
 0x385   :  { %2884 = vmatprep.mubr.bf16.mxu1 %v6118_v36 }
 0x38c   :  { %2885 = vmatmul.mubr.bf16.gmra.mrb[48].mxu1 %v6278_v14 }
 0x38d   :  { %2894 = vmatprep.mubr.bf16.mxu1 %v6126_v3 }
 0x394   :  { %2895 = vmatmul.mubr.bf16.gmra.mrb[52].mxu1 %v6300_v41 }
 0x395   :  { %2904 = vmatprep.mubr.bf16.mxu1 %v6134_v34 }
 0x39c   :  { %2905 = vmatmul.mubr.bf16.gmra.mrb[56].mxu1 %v6322_v1 }
 0x39d   :  { %2914 = vmatprep.mubr.bf16.mxu1 %v6142_v45 }
 0x3a4   :  { %2915 = vmatmul.mubr.bf16.gmra.mrb[60].mxu1 %v6344_v63 }
 0x3a5   :  { %2924 = vmatprep.mubr.bf16.mxu1 %v6150_v56 }
 0x3ac   :  { %2925 = vmatmul.mubr.bf16.gmra.mrb[64].mxu1 %v6366_v52 }
 0x3ad   :  { %2934 = vmatprep.mubr.bf16.mxu1 %v6158_v60 }
 0x3b4   :  { %2935 = vmatmul.mubr.bf16.gmra.mrb[68].mxu1 %v6376_v58 }
 0x3b5   :  { %2944 = vmatprep.mubr.bf16.mxu1 %v6170_v38 }
 0x3bc   :  { %2945 = vmatmul.mubr.bf16.gmra.mrb[72].mxu1 %v6392_v2 }
 0x3bd   :  { %2954 = vmatprep.mubr.bf16.mxu1 %v6175_v10 }
 0x3bf   :  { %v1693_v53 = vpop.f32.mrb[248].mxu0 }
 0x3c0   :  { %v1694_v22 = vpop.f32.mrb[249].mxu0 }
 0x3c1   :  { %v1695_v61 = vpop.f32.mrb[250].mxu0 }
 0x3c2   :  { %v1696_v8 = vpop.f32.mrb[251].mxu0 }
 0x3c3   :  { %v5118_v8 = vld [vmem:[%s7006_s10] sm:$0xff]  }
 0x3c4   :  { %2955 = vmatmul.mubr.bf16.gmra.mrb[76].mxu1 %v6402_v4  ;;  %4533 = vmatprep.subr.bf16.mxu0 %v5118_v8 }
 0x3c5   :  { %2997 = vmatprep.mubr.bf16.mxu1 %v7075_v12 }
 0x3c7   :  { %v1699_v15 = vpop.f32.mrb[252].mxu0 }
 0x3c8   :  { %v1700_v19 = vpop.f32.mrb[253].mxu0 }
 0x3c9   :  { %v1701_v42 = vpop.f32.mrb[254].mxu0  ;;  %v5120_v19 = vld [vmem:[%s7006_s10 + $0x10] sm:$0xff]  }
 0x3ca   :  { %v1702_v39 = vpop.f32.mrb[255].mxu0 }
 0x3cc   :  { %2998 = vmatmul.mubr.bf16.vlgmr.msra.gmra.mrb[0].mxu1 %v6098_v40  ;;  %v5071_v40 = vld [vmem:[%s7002_s6 + $0x58] sm:$0xff]  }
 0x3cd   :  { %4446 = vmatpush3.bf16.msra.mxu1 %v5065_v29  ;;  %3007 = vmatprep.mubr.bf16.mxu1 %v7075_v12 }
 0x3ce   :  { %4447 = vmatprep.subr.bf16.mxu1 %v5066_v44  ;;  %v5113_v44 = vld [vmem:[%s7004_s8 + $0x18] sm:$0xff]  }
 0x3d1   :  { %4448 = vmatpush3.bf16.msra.mxu1 %v5067_v21 }
 0x3d2   :  { %4449 = vmatprep.subr.bf16.mxu1 %v5068_v59 }
 0x3d4   :  { %3008 = vmatmul.mubr.bf16.gmra.mrb[4].mxu1 %v6106_v32  ;;  %v5075_v32 = vld [vmem:[%s7002_s6 + $0x68] sm:$0xff]  }
 0x3d5   :  { %3017 = vmatprep.mubr.bf16.mxu1 %v7075_v12  ;;  %4450 = vmatpush3.bf16.msra.mxu1 %v5069_v27 }
 0x3d6   :  { %4451 = vmatprep.subr.bf16.mxu1 %v5071_v40 }
 0x3d9   :  { %4452 = vmatpush3.bf16.msra.mxu1 %v5072_v30 }
 0x3da   :  { %4453 = vmatprep.subr.bf16.mxu1 %v5073_v49  ;;  %v5114_v49 = vld [vmem:[%s7004_s8 + $0x20] sm:$0xff]  }
 0x3dc   :  { %3018 = vmatmul.mubr.bf16.gmra.mrb[8].mxu1 %v6118_v36  ;;  %v5079_v36 = vld [vmem:[%s7002_s6 + $0x30] sm:$0xff]  }
 0x3dd   :  { %3027 = vmatprep.mubr.bf16.mxu1 %v7075_v12  ;;  %4454 = vmatpush3.bf16.msra.mxu1 %v5074_v46 }
 0x3de   :  { %4455 = vmatprep.subr.bf16.mxu1 %v5075_v32 }
 0x3e1   :  { %4456 = vmatpush3.bf16.msra.mxu1 %v5076_v62 }
 0x3e2   :  { %4457 = vmatprep.subr.bf16.mxu1 %v5078_v17 }
 0x3e4   :  { %3028 = vmatmul.mubr.bf16.gmra.mrb[12].mxu1 %v6126_v3  ;;  %v5093_v3 = vld [vmem:[%s7001_s5 + $0xc] ss:$16 sps:$4 sm:$0xff]  }
 0x3e5   :  { %3037 = vmatprep.mubr.bf16.mxu1 %v7075_v12  ;;  %4458 = vmatpush3.bf16.msra.mxu1 %v5079_v36 }
 0x3e6   :  { %4459 = vmatprep.subr.bf16.mxu1 %v5080_v47  ;;  %4423 = vmatprep.mubr.msk.bf16.mxu0 %vm3616_vm1, %v5093_v3 }
 0x3e7   :  { %3726 = vmatmul.mubr.bf16.vlgmr.msra.gmra.mrb[0].mxu0 %v5091_v48 }
 0x3e8   :  { %4424 = vmatprep.mubr.msk.bf16.mxu0 %vm3616_vm1, %v5099_v9  ;;  %v5117_v9 = vld [vmem:[%s7004_s8 + $0x38] sm:$0xff]   ;;  %4534 = vmatpush3.bf16.msra.mxu0 %v5118_v8 }
 0x3e9   :  { %4460 = vmatpush3.bf16.msra.mxu1 %v5081_v57 }
 0x3ea   :  { %4509 = vmatprep.subr.bf16.mxu1 %v5110_v31 }
 0x3ec   :  { %3038 = vmatmul.mubr.bf16.gmra.mrb[16].mxu1 %v6134_v34  ;;  %v5097_v34 = vld [vmem:[%s7001_s5 + $0x28] ss:$16 sps:$4 sm:$0xff]  }
 0x3ed   :  { %3047 = vmatprep.mubr.bf16.mxu1 %v7075_v12 }
 0x3ef   :  { %3734 = vmatmul.mubr.bf16.gmra.mrb[4].mxu0 %v5097_v34 }
 0x3f0   :  { %4425 = vmatprep.mubr.msk.bf16.mxu0 %vm3616_vm1, %v5105_v51 }
 0x3f4   :  { %3048 = vmatmul.mubr.bf16.gmra.mrb[20].mxu1 %v6142_v45  ;;  %v3338_v45 = vld [vmem:[%s7001_s5 + $0x68] sm:$0xff] }
 0x3f5   :  { %3057 = vmatprep.mubr.bf16.mxu1 %v7075_v12  ;;  %v4397_v35 = vcombine.high %v3338_v45, %v3338_v45  ;;  %v4396_v13 = vcombine.low %v3338_v45, %v3338_v45 }
 0x3f7   :  { %3742 = vmatmul.mubr.bf16.gmra.mrb[8].mxu0 %v5103_v55 }
 0x3f8   :  { %4426 = vmatprep.mubr.msk.bf16.mxu0 %vm3616_vm1, %v4397_v35 }
 0x3fc   :  { %3058 = vmatmul.mubr.bf16.gmra.mrb[24].mxu1 %v6150_v56  ;;  %v5090_v56 = vld [vmem:[%s7001_s5 + $0x4] ss:$16 sps:$4 sm:$0xff]  }
 0x3fd   :  { %3067 = vmatprep.mubr.bf16.mxu1 %v7075_v12 }
 0x3ff   :  { %3750 = vmatmul.mubr.bf16.gmra.mrb[12].mxu0 %v4396_v13 }
 0x404   :  { %3068 = vmatmul.mubr.bf16.gmra.mrb[28].mxu1 %v6158_v60  ;;  %v5088_v60 = vld [vmem:[%s7001_s5] ss:$16 sps:$4 sm:$0xff]  }
 0x405   :  { %3077 = vmatprep.mubr.bf16.mxu1 %v7075_v12 }
 0x40c   :  { %3078 = vmatmul.mubr.bf16.gmra.mrb[32].mxu1 %v6170_v38  ;;  %v5094_v38 = vld [vmem:[%s7001_s5 + $0x24] ss:$16 sps:$4 sm:$0xff]  }
 0x40d   :  { %3087 = vmatprep.mubr.bf16.mxu1 %v7075_v12 }
 0x414   :  { %3088 = vmatmul.mubr.bf16.gmra.mrb[36].mxu1 %v6175_v10  ;;  %v5100_v10 = vld [vmem:[%s7001_s5 + $0x44] ss:$16 sps:$4 sm:$0xff]  }
 0x415   :  { %3097 = vmatprep.mubr.bf16.mxu1 %v7075_v12 }
 0x41c   :  { %3098 = vmatmul.mubr.bf16.gmra.mrb[40].mxu1 %v6278_v14  ;;  %v3337_v14 = vld [vmem:[%s7001_s5 + $0x60] sm:$0xff] }
 0x41d   :  { %3107 = vmatprep.mubr.bf16.mxu1 %v7075_v12 }
 0x424   :  { %3108 = vmatmul.mubr.bf16.gmra.mrb[44].mxu1 %v6300_v41  ;;  %v5102_v41 = vld [vmem:[%s7001_s5 + $0x40] ss:$16 sps:$4 sm:$0xff]  }
 0x425   :  { %3117 = vmatprep.mubr.bf16.mxu1 %v7075_v12 }
 0x42c   :  { %3118 = vmatmul.mubr.bf16.gmra.mrb[48].mxu1 %v6322_v1  ;;  %v4395_v1 = vcombine.high %v3337_v14, %v3337_v14 }
 0x42d   :  { %3127 = vmatprep.mubr.bf16.mxu1 %v7075_v12 }
 0x434   :  { %3128 = vmatmul.mubr.bf16.gmra.mrb[52].mxu1 %v6344_v63  ;;  %v4394_v63 = vcombine.low %v3337_v14, %v3337_v14 }
 0x435   :  { %3137 = vmatprep.mubr.bf16.mxu1 %v7075_v12 }
 0x43c   :  { %3138 = vmatmul.mubr.bf16.gmra.mrb[56].mxu1 %v6366_v52 }
 0x43d   :  { %3147 = vmatprep.mubr.bf16.mxu1 %v7075_v12 }
 0x444   :  { %3148 = vmatmul.mubr.bf16.gmra.mrb[60].mxu1 %v6376_v58 }
 0x445   :  { %3157 = vmatprep.mubr.bf16.mxu1 %v7075_v12 }
 0x44c   :  { %3158 = vmatmul.mubr.bf16.gmra.mrb[64].mxu1 %v6392_v2 }
 0x44d   :  { %3167 = vmatprep.mubr.bf16.mxu1 %v7075_v12 }
 0x454   :  { %3168 = vmatmul.mubr.bf16.gmra.mrb[68].mxu1 %v6402_v4 }
 0x455   :  { %3177 = vmatprep.mubr.bf16.mxu1 %v7075_v12 }
 0x45c   :  { %3178 = vmatmul.mubr.bf16.gmra.mrb[72].mxu1 %v6413_v50 }
 0x45d   :  { %3187 = vmatprep.mubr.bf16.mxu1 %v7075_v12  ;;  %v5096_v12 = vld [vmem:[%s7001_s5 + $0x20] ss:$16 sps:$4 sm:$0xff]  }
 0x464   :  { %3188 = vmatmul.mubr.bf16.gmra.mrb[76].mxu1 %v6417_v26 }
 0x465   :  { %3661 = vmatprep.mubr.bf16.mxu1 %v5090_v56 }
 0x46c   :  { %3662 = vmatmul.mubr.bf16.vlgmr.msra.gmra.mrb[80].mxu1 %v5088_v60 }
 0x46d   :  { %3669 = vmatprep.mubr.bf16.mxu1 %v5094_v38  ;;  %4510 = vmatpush3.bf16.msra.mxu1 %v5110_v31 }
 0x46e   :  { %4511 = vmatprep.subr.bf16.mxu1 %v5111_v11 }
 0x471   :  { %4512 = vmatpush3.bf16.msra.mxu1 %v5111_v11  ;;  %v5119_v11 = vld [vmem:[%s7006_s10 + $0x8] sm:$0xff]  }
 0x472   :  { %4513 = vmatprep.subr.bf16.mxu1 %v5112_v43  ;;  %4535 = vmatprep.subr.bf16.mxu0 %v5119_v11 }
 0x473   :  { %4536 = vmatpush3.bf16.msra.mxu0 %v5119_v11 }
 0x474   :  { %3670 = vmatmul.mubr.bf16.gmra.mrb[84].mxu1 %v5096_v12  ;;  %4537 = vmatprep.subr.bf16.mxu0 %v5120_v19 }
 0x475   :  { %3677 = vmatprep.mubr.bf16.mxu1 %v5100_v10  ;;  %4514 = vmatpush3.bf16.msra.mxu1 %v5112_v43 }
 0x476   :  { %4515 = vmatprep.subr.bf16.mxu1 %v5113_v44 }
 0x477   :  { %4538 = vmatpush3.bf16.msra.mxu0 %v5120_v19 }
 0x479   :  { %4516 = vmatpush3.bf16.msra.mxu1 %v5113_v44  ;;  %v5121_v44 = vld [vmem:[%s7006_s10 + $0x18] sm:$0xff]  }
 0x47a   :  { %4517 = vmatprep.subr.bf16.mxu1 %v5114_v49  ;;  %4539 = vmatprep.subr.bf16.mxu0 %v5121_v44 }
 0x47b   :  { %4540 = vmatpush3.bf16.msra.mxu0 %v5121_v44 }
 0x47c   :  { %3678 = vmatmul.mubr.bf16.gmra.mrb[88].mxu1 %v5102_v41 }
 0x47d   :  { %3685 = vmatprep.mubr.bf16.mxu1 %v4395_v1  ;;  %4518 = vmatpush3.bf16.msra.mxu1 %v5114_v49  ;;  %v5122_v49 = vld [vmem:[%s7006_s10 + $0x20] sm:$0xff]  }
 0x47e   :  { %4519 = vmatprep.subr.bf16.mxu1 %v5115_v23  ;;  %4541 = vmatprep.subr.bf16.mxu0 %v5122_v49 }
 0x47f   :  { %4542 = vmatpush3.bf16.msra.mxu0 %v5122_v49 }
 0x481   :  { %4520 = vmatpush3.bf16.msra.mxu1 %v5115_v23 }
 0x482   :  { %4521 = vmatprep.subr.bf16.mxu1 %v5116_v37 }
 0x484   :  { %3686 = vmatmul.mubr.bf16.gmra.mrb[92].mxu1 %v4394_v63 }
 0x485   :  { %4522 = vmatpush3.bf16.msra.mxu1 %v5116_v37 }
 0x486   :  { %4523 = vmatprep.subr.bf16.mxu1 %v5117_v9 }
 0x489   :  { %4524 = vmatpush3.bf16.msra.mxu1 %v5117_v9 }
 0x49f   :  { %v6680_v52 = vpop.f32.mrb[0].mxu1 }
 0x4a0   :  { %v6682_v58 = vpop.f32.mrb[1].mxu1 }
 0x4a1   :  { %v6684_v2 = vpop.f32.mrb[2].mxu1 }
 0x4a2   :  { %v6686_v4 = vpop.f32.mrb[3].mxu1 }
 0x4a7   :  { %v6688_v50 = vpop.f32.mrb[4].mxu1 }
 0x4a8   :  { %v6690_v18 = vpop.f32.mrb[5].mxu1 }
 0x4a9   :  { %v6692_v26 = vpop.f32.mrb[6].mxu1 }
 0x4aa   :  { %v6694_v6 = vpop.f32.mrb[7].mxu1 }
 0x4af   :  { %v6696_v28 = vpop.f32.mrb[8].mxu1 }
 0x4b0   :  { %v6698_v5 = vpop.f32.mrb[9].mxu1 }
 0x4b1   :  { %v6700_v20 = vpop.f32.mrb[10].mxu1 }
 0x4b2   :  { %v6702_v7 = vpop.f32.mrb[11].mxu1 }
 0x4b7   :  { %v6707_v24 = vpop.f32.mrb[12].mxu1 }
 0x4b8   :  { %v6712_v54 = vpop.f32.mrb[13].mxu1 }
 0x4b9   :  { %v6714_v16 = vpop.f32.mrb[14].mxu1 }
 0x4ba   :  { %v6716_v25 = vpop.f32.mrb[15].mxu1  ;;  %v6732_v40 = vpop.f32.mrb[0].mxu0 }
 0x4bb   :  { %v3729_v30 = vpop.f32.mrb[1].mxu0 }
 0x4bc   :  { %v6737_v46 = vpop.f32.mrb[2].mxu0 }
 0x4bd   :  { %v3732_v32 = vpop.f32.mrb[3].mxu0 }
 0x4bf   :  { %v6721_v29 = vpop.f32.mrb[16].mxu1 }
 0x4c0   :  { %v6726_v21 = vpop.f32.mrb[17].mxu1 }
 0x4c1   :  { %v6728_v59 = vpop.f32.mrb[18].mxu1 }
 0x4c2   :  { %v6730_v27 = vpop.f32.mrb[19].mxu1  ;;  %v6750_v47 = vpop.f32.mrb[4].mxu0 }
 0x4c3   :  { %v3737_v0 = vpop.f32.mrb[5].mxu0 }
 0x4c4   :  { %v6755_v57 = vpop.f32.mrb[6].mxu0 }
 0x4c5   :  { %v3740_v3 = vpop.f32.mrb[7].mxu0 }
 0x4c6   :  { %v6818_v3 = vld [vmem:[%s7000_s4] ss:$0 sm:$0xff] }
 0x4c7   :  { %v6739_v33 = vpop.f32.mrb[20].mxu1 }
 0x4c8   :  { %v6744_v62 = vpop.f32.mrb[21].mxu1 }
 0x4c9   :  { %v6746_v17 = vpop.f32.mrb[22].mxu1 }
 0x4ca   :  { %v6748_v36 = vpop.f32.mrb[23].mxu1  ;;  %v6768_v45 = vpop.f32.mrb[8].mxu0 }
 0x4cb   :  { %v3745_v35 = vpop.f32.mrb[9].mxu0 }
 0x4cc   :  { %v6770_v13 = vpop.f32.mrb[10].mxu0 }
 0x4cd   :  { %v3748_v56 = vpop.f32.mrb[11].mxu0 }
 0x4cf   :  { %v6757_v48 = vpop.f32.mrb[24].mxu1 }
 0x4d0   :  { %v6762_v34 = vpop.f32.mrb[25].mxu1 }
 0x4d1   :  { %v6764_v51 = vpop.f32.mrb[26].mxu1 }
 0x4d2   :  { %v6766_v55 = vpop.f32.mrb[27].mxu1  ;;  %v6780_v14 = vpop.f32.mrb[12].mxu0 }
 0x4d3   :  { %v3753_v41 = vpop.f32.mrb[13].mxu0 }
 0x4d4   :  { %v3754_v1 = vpop.f32.mrb[14].mxu0 }
 0x4d5   :  { %v3755_v63 = vpop.f32.mrb[15].mxu0 }
 0x4d7   :  { %v6772_v60 = vpop.f32.mrb[28].mxu1 }
 0x4d8   :  { %v6774_v38 = vpop.f32.mrb[29].mxu1 }
 0x4d9   :  { %v6776_v12 = vpop.f32.mrb[30].mxu1 }
 0x4da   :  { %v6778_v10 = vpop.f32.mrb[31].mxu1 }
 0x4df   :  { %v6782_v53 = vpop.f32.mrb[32].mxu1 }
 0x4e0   :  { %v6784_v22 = vpop.f32.mrb[33].mxu1 }
 0x4e1   :  { %v6786_v31 = vpop.f32.mrb[34].mxu1 }
 0x4e2   :  { %v6788_v61 = vpop.f32.mrb[35].mxu1 }
 0x4e7   :  { %v6796_v15 = vpop.f32.mrb[36].mxu1 }
 0x4e8   :  { %v6801_v43 = vpop.f32.mrb[37].mxu1 }
 0x4e9   :  { %v6803_v42 = vpop.f32.mrb[38].mxu1 }
 0x4ea   :  { %v6805_v39 = vpop.f32.mrb[39].mxu1 }
 0x4ef   :  { %v3099_v30 = vpop.f32.mrb[40].mxu1 }
 0x4f0   :  { %v3198_v32 = vmax.f32 %v6680_v52, %v3099_v30  ;;  %v3101_v23 = vpop.f32.mrb[41].mxu1  ;;  %v5123_v52 = vld [vmem:[%s7006_s10 + $0x28] sm:$0xff]  }
 0x4f1   :  { %v3199_v0 = vmax.f32 %v6682_v58, %v3101_v23  ;;  %v3103_v37 = vpop.f32.mrb[42].mxu1  ;;  %4543 = vmatprep.subr.bf16.mxu0 %v5123_v52 }
 0x4f2   :  { %v3200_v9 = vmax.f32 %v6684_v2, %v3103_v37  ;;  %v3105_v35 = vpop.f32.mrb[43].mxu1  ;;  %4544 = vmatpush3.bf16.msra.mxu0 %v5123_v52 }
 0x4f3   :  { %v3238_v56 = vmax.f32 %v3198_v32, %v3199_v0  ;;  %v3201_v41 = vmax.f32 %v6686_v4, %v3105_v35 }
 0x4f5   :  { %v3265_v58 = vadd.f32 %v6818_v3, %v3238_v56  ;;  %v3239_v1 = vmax.f32 %v3200_v9, %v3201_v41 }
 0x4f7   :  { %v3285_v63 = vmax.f32 %v3265_v58, 0.0  ;;  %v3266_v8 = vadd.f32 %v6818_v3, %v3239_v1  ;;  %v3109_v11 = vpop.f32.mrb[44].mxu1 }
 0x4f8   :  { %v3202_v2 = vmax.f32 %v6688_v50, %v3109_v11  ;;  %v3111_v19 = vpop.f32.mrb[45].mxu1 }
 0x4f9   :  { %3305 = vst [vmem:[%s7008_s12] sm:$0xff] %v3285_v63  ;;  %v3286_v4 = vmax.f32 %v3266_v8, 0.0  ;;  %v3203_v44 = vmax.f32 %v6690_v18, %v3111_v19  ;;  %v3113_v30 = vpop.f32.mrb[46].mxu1 }
 0x4fa   :  { %v3204_v32 = vmax.f32 %v6692_v26, %v3113_v30  ;;  %v3115_v23 = vpop.f32.mrb[47].mxu1 }
 0x4fb   :  { %3306 = vst [vmem:[%s7008_s12 + $0x8] sm:$0xff] %v3286_v4  ;;  %v3240_v49 = vmax.f32 %v3202_v2, %v3203_v44  ;;  %v3205_v50 = vmax.f32 %v6694_v6, %v3115_v23 }
 0x4fd   :  { %v3267_v0 = vadd.f32 %v6818_v3, %v3240_v49  ;;  %v3241_v37 = vmax.f32 %v3204_v32, %v3205_v50 }
 0x4ff   :  { %v3287_v9 = vmax.f32 %v3267_v0, 0.0  ;;  %v3268_v35 = vadd.f32 %v6818_v3, %v3241_v37  ;;  %v3119_v56 = vpop.f32.mrb[48].mxu1 }
 0x500   :  { %v3206_v18 = vmax.f32 %v6696_v28, %v3119_v56  ;;  %v3121_v41 = vpop.f32.mrb[49].mxu1 }
 0x501   :  { %3307 = vst [vmem:[%s7008_s12 + $0x10] sm:$0xff] %v3287_v9  ;;  %v3288_v26 = vmax.f32 %v3268_v35, 0.0  ;;  %v3207_v52 = vmax.f32 %v6698_v5, %v3121_v41  ;;  %v3123_v58 = vpop.f32.mrb[50].mxu1 }
 0x502   :  { %v3208_v6 = vmax.f32 %v6700_v20, %v3123_v58  ;;  %v3125_v1 = vpop.f32.mrb[51].mxu1 }
 0x503   :  { %3308 = vst [vmem:[%s7008_s12 + $0x18] sm:$0xff] %v3288_v26  ;;  %v3242_v63 = vmax.f32 %v3206_v18, %v3207_v52  ;;  %v3209_v8 = vmax.f32 %v6702_v7, %v3125_v1 }
 0x505   :  { %v3269_v28 = vadd.f32 %v6818_v3, %v3242_v63  ;;  %v3243_v11 = vmax.f32 %v3208_v6, %v3209_v8 }
 0x507   :  { %v3289_v2 = vmax.f32 %v3269_v28, 0.0  ;;  %v3270_v19 = vadd.f32 %v6818_v3, %v3243_v11  ;;  %v3129_v4 = vpop.f32.mrb[52].mxu1 }
 0x508   :  { %v3210_v5 = vmax.f32 %v6707_v24, %v3129_v4  ;;  %v3131_v44 = vpop.f32.mrb[53].mxu1 }
 0x509   :  { %3309 = vst [vmem:[%s7008_s12 + $0x20] sm:$0xff] %v3289_v2  ;;  %v3290_v20 = vmax.f32 %v3270_v19, 0.0  ;;  %v3211_v30 = vmax.f32 %v6712_v54, %v3131_v44  ;;  %v3133_v32 = vpop.f32.mrb[54].mxu1 }
 0x50a   :  { %v3212_v7 = vmax.f32 %v6714_v16, %v3133_v32  ;;  %v3135_v23 = vpop.f32.mrb[55].mxu1 }
 0x50b   :  { %3310 = vst [vmem:[%s7008_s12 + $0x28] sm:$0xff] %v3290_v20  ;;  %v3244_v49 = vmax.f32 %v3210_v5, %v3211_v30  ;;  %v3213_v50 = vmax.f32 %v6716_v25, %v3135_v23 }
 0x50d   :  { %v3271_v24 = vadd.f32 %v6818_v3, %v3244_v49  ;;  %v3245_v0 = vmax.f32 %v3212_v7, %v3213_v50 }
 0x50f   :  { %v3291_v37 = vmax.f32 %v3271_v24, 0.0  ;;  %v3272_v9 = vadd.f32 %v6818_v3, %v3245_v0  ;;  %v3139_v35 = vpop.f32.mrb[56].mxu1 }
 0x510   :  { %v3214_v54 = vmax.f32 %v6721_v29, %v3139_v35  ;;  %v3141_v56 = vpop.f32.mrb[57].mxu1 }
 0x511   :  { %3311 = vst [vmem:[%s7008_s12 + $0x30] sm:$0xff] %v3291_v37  ;;  %v3292_v16 = vmax.f32 %v3272_v9, 0.0  ;;  %v3215_v18 = vmax.f32 %v6726_v21, %v3141_v56  ;;  %v3143_v41 = vpop.f32.mrb[58].mxu1 }
 0x512   :  { %v3216_v25 = vmax.f32 %v6728_v59, %v3143_v41  ;;  %v3145_v26 = vpop.f32.mrb[59].mxu1 }
 0x513   :  { %3312 = vst [vmem:[%s7008_s12 + $0x38] sm:$0xff] %v3292_v16  ;;  %v3246_v52 = vmax.f32 %v3214_v54, %v3215_v18  ;;  %v3217_v58 = vmax.f32 %v6730_v27, %v3145_v26 }
 0x515   :  { %v3273_v29 = vadd.f32 %v6818_v3, %v3246_v52  ;;  %v3247_v6 = vmax.f32 %v3216_v25, %v3217_v58 }
 0x517   :  { %v3293_v1 = vmax.f32 %v3273_v29, 0.0  ;;  %v3274_v63 = vadd.f32 %v6818_v3, %v3247_v6  ;;  %v3149_v8 = vpop.f32.mrb[60].mxu1 }
 0x518   :  { %v3218_v21 = vmax.f32 %v6739_v33, %v3149_v8  ;;  %v3151_v28 = vpop.f32.mrb[61].mxu1 }
 0x519   :  { %3313 = vst [vmem:[%s7008_s12 + $0x40] sm:$0xff] %v3293_v1  ;;  %v3294_v59 = vmax.f32 %v3274_v63, 0.0  ;;  %v3219_v11 = vmax.f32 %v6744_v62, %v3151_v28  ;;  %v3153_v2 = vpop.f32.mrb[62].mxu1 }
 0x51a   :  { %v3220_v27 = vmax.f32 %v6746_v17, %v3153_v2  ;;  %v3155_v19 = vpop.f32.mrb[63].mxu1 }
 0x51b   :  { %3314 = vst [vmem:[%s7008_s12 + $0x48] sm:$0xff] %v3294_v59  ;;  %v3248_v4 = vmax.f32 %v3218_v21, %v3219_v11  ;;  %v3221_v5 = vmax.f32 %v6748_v36, %v3155_v19 }
 0x51d   :  { %v3275_v33 = vadd.f32 %v6818_v3, %v3248_v4  ;;  %v3249_v44 = vmax.f32 %v3220_v27, %v3221_v5 }
 0x51f   :  { %v3295_v20 = vmax.f32 %v3275_v33, 0.0  ;;  %v3276_v30 = vadd.f32 %v6818_v3, %v3249_v44  ;;  %v3159_v32 = vpop.f32.mrb[64].mxu1 }
 0x520   :  { %v3222_v62 = vmax.f32 %v6757_v48, %v3159_v32  ;;  %v3161_v7 = vpop.f32.mrb[65].mxu1 }
 0x521   :  { %3315 = vst [vmem:[%s7008_s12 + $0x50] sm:$0xff] %v3295_v20  ;;  %v3296_v17 = vmax.f32 %v3276_v30, 0.0  ;;  %v3223_v23 = vmax.f32 %v6762_v34, %v3161_v7  ;;  %v3163_v49 = vpop.f32.mrb[66].mxu1 }
 0x522   :  { %v3224_v36 = vmax.f32 %v6764_v51, %v3163_v49  ;;  %v3165_v50 = vpop.f32.mrb[67].mxu1 }
 0x523   :  { %3316 = vst [vmem:[%s7008_s12 + $0x58] sm:$0xff] %v3296_v17  ;;  %v3250_v24 = vmax.f32 %v3222_v62, %v3223_v23  ;;  %v3225_v0 = vmax.f32 %v6766_v55, %v3165_v50 }
 0x525   :  { %v3277_v48 = vadd.f32 %v6818_v3, %v3250_v24  ;;  %v3251_v37 = vmax.f32 %v3224_v36, %v3225_v0 }
 0x527   :  { %v3297_v9 = vmax.f32 %v3277_v48, 0.0  ;;  %v3278_v35 = vadd.f32 %v6818_v3, %v3251_v37  ;;  %v3169_v54 = vpop.f32.mrb[68].mxu1 }
 0x528   :  { %v3226_v34 = vmax.f32 %v6772_v60, %v3169_v54  ;;  %v3171_v56 = vpop.f32.mrb[69].mxu1 }
 0x529   :  { %3317 = vst [vmem:[%s7008_s12 + $0x60] sm:$0xff] %v3297_v9  ;;  %v3298_v51 = vmax.f32 %v3278_v35, 0.0  ;;  %v3227_v16 = vmax.f32 %v6774_v38, %v3171_v56  ;;  %v3173_v18 = vpop.f32.mrb[70].mxu1 }
 0x52a   :  { %v3228_v55 = vmax.f32 %v6776_v12, %v3173_v18  ;;  %v3175_v41 = vpop.f32.mrb[71].mxu1 }
 0x52b   :  { %3318 = vst [vmem:[%s7008_s12 + $0x68] sm:$0xff] %v3298_v51  ;;  %v3252_v25 = vmax.f32 %v3226_v34, %v3227_v16  ;;  %v3229_v26 = vmax.f32 %v6778_v10, %v3175_v41 }
 0x52d   :  { %v3279_v60 = vadd.f32 %v6818_v3, %v3252_v25  ;;  %v3253_v52 = vmax.f32 %v3228_v55, %v3229_v26 }
 0x52f   :  { %v3299_v58 = vmax.f32 %v3279_v60, 0.0  ;;  %v3280_v29 = vadd.f32 %v6818_v3, %v3253_v52  ;;  %v3179_v6 = vpop.f32.mrb[72].mxu1 }
 0x530   :  { %v3230_v38 = vmax.f32 %v6782_v53, %v3179_v6  ;;  %v3181_v1 = vpop.f32.mrb[73].mxu1 }
 0x531   :  { %3319 = vst [vmem:[%s7008_s12 + $0x70] sm:$0xff] %v3299_v58  ;;  %v3300_v12 = vmax.f32 %v3280_v29, 0.0  ;;  %v3231_v63 = vmax.f32 %v6784_v22, %v3181_v1  ;;  %v3183_v8 = vpop.f32.mrb[74].mxu1 }
 0x532   :  { %v3232_v10 = vmax.f32 %v6786_v31, %v3183_v8  ;;  %v3185_v21 = vpop.f32.mrb[75].mxu1 }
 0x533   :  { %3320 = vst [vmem:[%s7008_s12 + $0x78] sm:$0xff] %v3300_v12  ;;  %v3254_v28 = vmax.f32 %v3230_v38, %v3231_v63  ;;  %v3233_v59 = vmax.f32 %v6788_v61, %v3185_v21 }
 0x535   :  { %v3281_v53 = vadd.f32 %v6818_v3, %v3254_v28  ;;  %v3255_v11 = vmax.f32 %v3232_v10, %v3233_v59 }
 0x537   :  { %v3301_v2 = vmax.f32 %v3281_v53, 0.0  ;;  %v3282_v27 = vadd.f32 %v6818_v3, %v3255_v11  ;;  %v3189_v19 = vpop.f32.mrb[76].mxu1 }
 0x538   :  { %v3234_v22 = vmax.f32 %v6796_v15, %v3189_v19  ;;  %v3191_v4 = vpop.f32.mrb[77].mxu1 }
 0x539   :  { %3321 = vst [vmem:[%s7008_s12 + $0x80] sm:$0xff] %v3301_v2  ;;  %v3302_v31 = vmax.f32 %v3282_v27, 0.0  ;;  %v3235_v5 = vmax.f32 %v6801_v43, %v3191_v4  ;;  %v3193_v33 = vpop.f32.mrb[78].mxu1  ;;  %v4381_v43 = vld [vmem:[%s7003_s7] ss:$0 sm:$0xff] }
 0x53a   :  { %v3236_v61 = vmax.f32 %v6803_v42, %v3193_v33  ;;  %v3195_v44 = vpop.f32.mrb[79].mxu1 }
 0x53b   :  { %3322 = vst [vmem:[%s7008_s12 + $0x88] sm:$0xff] %v3302_v31  ;;  %v3256_v20 = vmax.f32 %v3234_v22, %v3235_v5  ;;  %v3237_v30 = vmax.f32 %v6805_v39, %v3195_v44 }
 0x53d   :  { %v3283_v15 = vadd.f32 %v6818_v3, %v3256_v20  ;;  %v3257_v32 = vmax.f32 %v3236_v61, %v3237_v30 }
 0x53f   :  { %v3303_v62 = vmax.f32 %v3283_v15, 0.0  ;;  %v3284_v7 = vadd.f32 %v6818_v3, %v3257_v32  ;;  %v4461_v17 = vpop.f32.mrb[80].mxu1 }
 0x540   :  { %v4462_v23 = vpop.f32.mrb[81].mxu1 }
 0x541   :  { %3323 = vst [vmem:[%s7008_s12 + $0x90] sm:$0xff] %v3303_v62  ;;  %v3304_v42 = vmax.f32 %v3284_v7, 0.0  ;;  %v4463_v49 = vadd.f32 %v4462_v23, %v4461_v17  ;;  %v4464_v36 = vpop.f32.mrb[82].mxu1 }
 0x542   :  { %v4465_v39 = vpop.f32.mrb[83].mxu1 }
 0x543   :  { %3324 = vst [vmem:[%s7008_s12 + $0x98] sm:$0xff] %v3304_v42  ;;  %v3664_v50 = vadd.f32 %v4463_v49, %v4381_v43  ;;  %v4466_v3 = vadd.f32 %v4465_v39, %v4464_v36 }
 0x545   :  { %v3728_v24 = vadd.f32 %v6732_v40, %v3664_v50  ;;  %v3667_v0 = vadd.f32 %v4466_v3, %v4381_v43 }
 0x547   :  { %v3731_v48 = vadd.f32 %v6737_v46, %v3667_v0  ;;  %v4467_v37 = vpop.f32.mrb[84].mxu1  ;;  %v3757_v35 = vmax.f32 %v3728_v24, 0.0 }
 0x548   :  { %v4468_v9 = vpop.f32.mrb[85].mxu1 }
 0x549   :  { %v3758_v54 = vmax.f32 %v3731_v48, 0.0  ;;  %v4469_v34 = vadd.f32 %v4468_v9, %v4467_v37  ;;  %v4470_v56 = vpop.f32.mrb[86].mxu1 }
 0x54a   :  { %v4471_v51 = vpop.f32.mrb[87].mxu1 }
 0x54b   :  { %v3764_v16 = vpack.c.bf16 %v3758_v54, %v3757_v35  ;;  %v3672_v18 = vadd.f32 %v4469_v34, %v4381_v43  ;;  %v4472_v55 = vadd.f32 %v4471_v51, %v4470_v56 }
 0x54d   :  { %v3736_v41 = vadd.f32 %v6750_v47, %v3672_v18  ;;  %v3675_v25 = vadd.f32 %v4472_v55, %v4381_v43  ;;  %4525 = vmatprep.mubr.bf16.mxu1 %v3764_v16 }
 0x54f   :  { %v3739_v26 = vadd.f32 %v6755_v57, %v3675_v25  ;;  %v4473_v40 = vpop.f32.mrb[88].mxu1  ;;  %v3759_v52 = vmax.f32 %v3736_v41, 0.0 }
 0x550   :  { %v4474_v60 = vpop.f32.mrb[89].mxu1 }
 0x551   :  { %v3760_v46 = vmax.f32 %v3739_v26, 0.0  ;;  %v4475_v58 = vadd.f32 %v4474_v60, %v4473_v40  ;;  %v4476_v29 = vpop.f32.mrb[90].mxu1 }
 0x552   :  { %v4477_v6 = vpop.f32.mrb[91].mxu1 }
 0x553   :  { %v3765_v38 = vpack.c.bf16 %v3760_v46, %v3759_v52  ;;  %v3680_v1 = vadd.f32 %v4475_v58, %v4381_v43  ;;  %v4478_v12 = vadd.f32 %v4477_v6, %v4476_v29 }
 0x555   :  { %v3744_v63 = vadd.f32 %v6768_v45, %v3680_v1  ;;  %v3683_v8 = vadd.f32 %v4478_v12, %v4381_v43  ;;  %4526 = vmatmul.mubr.bf16.vlgmr.msra.gmra.mrb[96].mxu1 %v3765_v38  ;;  %v5124_v45 = vld [vmem:[%s7006_s10 + $0x30] sm:$0xff]  }
 0x556   :  { %4545 = vmatprep.subr.bf16.mxu0 %v5124_v45 }
 0x557   :  { %v3747_v47 = vadd.f32 %v6770_v13, %v3683_v8  ;;  %v4479_v10 = vpop.f32.mrb[92].mxu1  ;;  %v3761_v28 = vmax.f32 %v3744_v63, 0.0  ;;  %4546 = vmatpush3.bf16.msra.mxu0 %v5124_v45  ;;  %v5125_v13 = vld [vmem:[%s7006_s10 + $0x38] sm:$0xff]  }
 0x558   :  { %v4480_v21 = vpop.f32.mrb[93].mxu1  ;;  %4547 = vmatprep.subr.bf16.mxu0 %v5125_v13 }
 0x559   :  { %v3762_v57 = vmax.f32 %v3747_v47, 0.0  ;;  %v4481_v59 = vadd.f32 %v4480_v21, %v4479_v10  ;;  %v4482_v53 = vpop.f32.mrb[94].mxu1 }
 0x55a   :  { %v4483_v11 = vpop.f32.mrb[95].mxu1 }
 0x55b   :  { %v3766_v2 = vpack.c.bf16 %v3762_v57, %v3761_v28  ;;  %v3688_v27 = vadd.f32 %v4481_v59, %v4381_v43  ;;  %4548 = vmatpush3.bf16.msra.mxu0 %v5125_v13 }
 0x55d   :  { %v3752_v19 = vadd.f32 %v6780_v14, %v3688_v27  ;;  %4529 = vmatprep.mubr.bf16.mxu1 %v3766_v2  ;;  %v4427_v14 = vld [vmem:[%s7005_s9] ss:$0 sm:$0xff]  ;;  %s5152_s9 = smov [#allocation2]  }
 0x55e   :  { %s4070_s10 = sshll.u32 %s5152_s9, 4  ;;  %s4071_s10 = int_to_ptr.vmem [resolvable:$true] %s4070_s10 }
 0x55f   :  { %v3763_v22 = vmax.f32 %v3752_v19, 0.0  ;;  %s5127_s16 = scalar_lea.vmem %s4071_s10, 896  ;;  %p5132_p1 = scmp.lt.s32.totalorder %s4071_s10, %s4071_s10 }
 0x560   :  { %p5128_p0 = scmp.ne.s32.totalorder %s4071_s10, %s5127_s16  ;;  %p5133_p2 = scmp.lt.s32.totalorder %s5127_s16, %s5127_s16 }
 0x561   :  { %v3767_v4 = vpack.c.bf16 %v3763_v22, %v3763_v22 }
 0x562   :  { %p5134_p3 = por %p5133_p2, %p5132_p1 }
 0x563   :  { %4530 = vmatmul.mubr.bf16.gmra.mrb[100].mxu1 %v3767_v4 }
 0x564   :  { %p5135_p4 = pnand %p5134_p3, %p5128_p0 }
 0x628   :  { %v4527_v31 = vpop.f32.mrb[96].mxu1 }
 0x629   :  { %v3882_v5 = vadd.f32 %v4527_v31, %v4427_v14  ;;  %v3873_v33 = vpop.f32.mrb[97].mxu1 }
 0x62a   :  { %v3874_v61 = vadd.f32 %v4427_v14, %v3873_v33  ;;  %v4528_v44 = vpop.f32.mrb[98].mxu1 }
 0x62b   :  { %v3905_v20 = vmax.f32 %v3882_v5, 0.0  ;;  %v3885_v30 = vadd.f32 %v4528_v44, %v4427_v14  ;;  %v3876_v15 = vpop.f32.mrb[99].mxu1 }
 0x62c   :  { %v3903_v32 = vmax.f32 %v3874_v61, 0.0  ;;  %v3877_v62 = vadd.f32 %v4427_v14, %v3876_v15 }
 0x62d   :  { %3912 = vst [vmem:[#allocation2 + $0x10] sm:$0xff] %v3905_v20  ;;  %v3906_v7 = vmax.f32 %v3885_v30, 0.0 }
 0x62e   :  { %3910 = vst [vmem:[#allocation2] sm:$0xff] %v3903_v32  ;;  %v3904_v17 = vmax.f32 %v3877_v62, 0.0 }
 0x62f   :  { %3913 = vst [vmem:[#allocation2 + $0x18] sm:$0xff] %v3906_v7  ;;  %v3918_v23 = vpack.c.bf16 %v3906_v7, %v3905_v20 }
 0x630   :  { %3911 = vst [vmem:[#allocation2 + $0x8] sm:$0xff] %v3904_v17  ;;  %v3917_v43 = vpack.c.bf16 %v3904_v17, %v3903_v32 }
 0x632   :  { %4549 = vmatprep.mubr.bf16.mxu0 %v3917_v43 }
 0x633   :  { %4550 = vmatmul.mubr.bf16.vlgmr.msra.gmra.mrb[16].mxu0 %v3918_v23 }
 0x636   :  { %v4531_v42 = vpop.f32.mrb[100].mxu1 }
 0x637   :  { %v3898_v49 = vadd.f32 %v4531_v42, %v4427_v14  ;;  %v3889_v36 = vpop.f32.mrb[101].mxu1 }
 0x638   :  { %v3890_v39 = vadd.f32 %v4427_v14, %v3889_v36  ;;  %v4532_v50 = vpop.f32.mrb[102].mxu1 }
 0x639   :  { %v3909_v3 = vmax.f32 %v3898_v49, 0.0  ;;  %v3892_v24 = vpop.f32.mrb[103].mxu1 }
 0x63a   :  { %v3907_v0 = vmax.f32 %v3890_v39, 0.0  ;;  %v3893_v48 = vadd.f32 %v4427_v14, %v3892_v24 }
 0x63b   :  { %3916 = vst [vmem:[#allocation2 + $0x30] sm:$0xff] %v3909_v3  ;;  %v3920_v35 = vpack.c.bf16 %v3909_v3, %v3909_v3 }
 0x63c   :  { %3914 = vst [vmem:[#allocation2 + $0x20] sm:$0xff] %v3907_v0  ;;  %v3908_v37 = vmax.f32 %v3893_v48, 0.0 }
 0x63e   :  { %3915 = vst [vmem:[#allocation2 + $0x28] sm:$0xff] %v3908_v37  ;;  %v3919_v9 = vpack.c.bf16 %v3908_v37, %v3907_v0 }
 0x640   :  { %4553 = vmatprep.mubr.bf16.mxu0 %v3919_v9 }
 0x641   :  { %4554 = vmatmul.mubr.bf16.gmra.mrb[20].mxu0 %v3920_v35 }
 0x642   :  { %5138 = shalt.err (!%p5135_p4)
}
 0x643   :  { %s5139_s18 = scalar_lea.hbm %s7009_s13, 896 }
 0x644   :  { %p5140_p5 = scmp.ne.s32.totalorder %s7009_s13, %s5139_s18  ;;  %p5143_p6 = scmp.lt.u32.totalorder %s5139_s18, %s7009_s13 }
 0x646   :  { %p5145_p7 = pnand %p5143_p6, %p5140_p5 }
 0x648   :  { %5148 = shalt.err (!%p5145_p7)
}
 0x649   :  { %s5153_s2 = smov 128   ;;  %s5154_s22 = smov 8   ;;  %v4436_v54 = vld [vmem:[%s7007_s11] ss:$0 sm:$0xff] }
 0x64a   :  { %4076 = dma.vmem_to_hbm [thread:$0]  %s4071_s10, 896, %s7009_s13, [#allocation3], %s5153_s2, %s5153_s2, %s5154_s22  }
 0x706   :  { %v4551_v34 = vpop.f32.mrb[16].mxu0 }
 0x707   :  { %v4035_v56 = vadd.f32 %v4551_v34, %v4436_v54  ;;  %v4026_v51 = vpop.f32.mrb[17].mxu0 }
 0x708   :  { %v4027_v16 = vadd.f32 %v4436_v54, %v4026_v51  ;;  %v4552_v18 = vpop.f32.mrb[18].mxu0 }
 0x709   :  { %4058 = vst [vmem:[%s7010_s14 + $0x10] sm:$0xff] %v4035_v56  ;;  %v4038_v55 = vadd.f32 %v4552_v18, %v4436_v54  ;;  %v4029_v41 = vpop.f32.mrb[19].mxu0 }
 0x70a   :  { %4056 = vst [vmem:[%s7010_s14] sm:$0xff] %v4027_v16  ;;  %v4030_v25 = vadd.f32 %v4436_v54, %v4029_v41 }
 0x70b   :  { %4059 = vst [vmem:[%s7010_s14 + $0x18] sm:$0xff] %v4038_v55 }
 0x70c   :  { %4057 = vst [vmem:[%s7010_s14 + $0x8] sm:$0xff] %v4030_v25 }
 0x714   :  { %v4555_v26 = vpop.f32.mrb[20].mxu0 }
 0x715   :  { %v4051_v40 = vadd.f32 %v4555_v26, %v4436_v54  ;;  %v4042_v60 = vpop.f32.mrb[21].mxu0 }
 0x716   :  { %v4043_v52 = vadd.f32 %v4436_v54, %v4042_v60  ;;  %v4556_v46 = vpop.f32.mrb[22].mxu0 }
 0x717   :  { %4062 = vst [vmem:[%s7010_s14 + $0x30] sm:$0xff] %v4051_v40  ;;  %v4045_v58 = vpop.f32.mrb[23].mxu0 }
 0x718   :  { %4060 = vst [vmem:[%s7010_s14 + $0x20] sm:$0xff] %v4043_v52  ;;  %v4046_v29 = vadd.f32 %v4436_v54, %v4045_v58 }
 0x71a   :  { %4061 = vst [vmem:[%s7010_s14 + $0x28] sm:$0xff] %v4046_v29 }
 0x71b   :  { %5149 = dma.done.wait [#allocation3], 896  }
 0x71c   :  { %5150 = vsyncadd [#allocation3], 4294966400 }
 0x71d   :  { %4086 = vsyncpa [#allocation3], 1 }

</bundles_post_ra>
